<compile_context>
chip_gen: v7x
topology: tpu7x:2x2x1
jax: 0.10.0
libtpu: 0.0.40
codegen_flags: <defaults>
</compile_context>

<pallas_src>
import functools

import jax
import jax.numpy as jnp
from jax.experimental import pallas as pl
from jax.experimental.pallas import tpu as pltpu

# Module hyper-parameters (from the PyTorch source), demo-sized where allowed.
INPUT_SIZE = 28
HIDDEN_SIZE = 28
NUM_CLASSES = 10
NUM_LAYERS = 2          # hard-coded as two explicit layers in the kernel
SEQ_LEN = 8             # small sequence for the demo
BATCH = 8               # sublane-aligned small batch for the demo

LANE = 128              # lane width; each LSTM gate gets its own 128-lane block


def rnn_kernel(x_ref,               # (S*B, I)           time-major, flattened
               wih0_ref,            # (I, 4*LANE)         layer-0 input weights (lane-aligned gates)
               b0_ref,              # (1, 4*LANE)         b_ih0 + b_hh0
               whh0_ref,            # (LANE, 4*LANE)      layer-0 recurrent weights (rows >= H are 0)
               w1_ref,              # (2*LANE, 4*LANE)    fused [W_ih1 ; W_hh1]
               b1_ref,              # (1, 4*LANE)         b_ih1 + b_hh1
               wfc_ref,             # (LANE, LANE)        FC weight, zero-padded
               bfc_ref,             # (1, LANE)           FC bias, zero-padded
               out_ref,             # (B, LANE)           lane-dense output block
               *, seq_len, batch, lanes):
    gp = 4 * lanes  # 512

    # ---- hoisted out of the recurrence ------------------------------------
    # Layer-0 input projection for ALL timesteps as one matmul, bias folded in.
    xg = (jnp.dot(x_ref[...], wih0_ref[...], preferred_element_type=jnp.float32)
          + b0_ref[...])                                  # (S*B, 4*LANE)
    # Hoisted bias broadcast (JAX does not CSE broadcast_in_dim inside loops).
    b1 = jnp.broadcast_to(b1_ref[...], (batch, gp))       # (B, 4*LANE)

    zeros = jnp.zeros((batch, lanes), jnp.float32)
    h1 = zeros
    c1 = zeros
    h2 = zeros
    c2 = zeros

    def gate_split(gates):
        # Gates are lane-aligned at offsets 0/128/256/384 -> whole-vreg slices.
        i = jax.nn.sigmoid(gates[:, 0 * lanes:1 * lanes])
        f = jax.nn.sigmoid(gates[:, 1 * lanes:2 * lanes])
        g = jnp.tanh(gates[:, 2 * lanes:3 * lanes])
        o = jax.nn.sigmoid(gates[:, 3 * lanes:4 * lanes])
        return i, f, g, o

    # ---- recurrence: fully unrolled static loop, state lives in vregs ------
    # (seq_len is a Python int, so slices below are static and sublane-aligned
    #  because batch == 8; padding lanes >= HIDDEN of h/c stay exactly 0.)
    for t in range(seq_len):
        xg_t = xg[t * batch:(t + 1) * batch, :]           # (B, 4*LANE)

        # Layer 0: only the recurrent matmul is on the critical path.
        g0 = xg_t + jnp.dot(h1, whh0_ref[...],
                            preferred_element_type=jnp.float32)
        i0, f0, gg0, o0 = gate_split(g0)
        c1 = f0 * c1 + i0 * gg0
        h1 = o0 * jnp.tanh(c1)

        # Layer 1: one fused matmul over the stacked [W_ih1 ; W_hh1] weights.
        inp1 = jnp.concatenate([h1, h2], axis=-1)         # (B, 2*LANE), two whole vregs
        g1 = jnp.dot(inp1, w1_ref[...],
                     preferred_element_type=jnp.float32) + b1
        i1, f1, gg1, o1 = gate_split(g1)
        c2 = f1 * c2 + i1 * gg1
        h2 = o1 * jnp.tanh(c2)

    # ---- final FC on the last timestep's top-layer hidden state ------------
    out_ref[...] = (jnp.dot(h2, wfc_ref[...], preferred_element_type=jnp.float32)
                    + bfc_ref[...])


def pack_params(params):
    """Repack logical (in, 4H)-layout params into the lane-aligned kernel layout.

    Each gate g is placed at lanes [g*LANE, g*LANE + H); contraction dims are
    zero-padded so the (128-lane padded) h vectors can be used directly without
    any in-kernel lane slicing.
    """
    (wih0, whh0, b0, wih1, whh1, b1, wfc, bfc) = params
    H, C = HIDDEN_SIZE, NUM_CLASSES

    def lane_align_gates(w):
        # (K, 4H) -> (K, 4*LANE)
        k = w.shape[0]
        out = jnp.zeros((k, 4 * LANE), jnp.float32)
        for g in range(4):
            out = out.at[:, g * LANE:g * LANE + H].set(w[:, g * H:(g + 1) * H])
        return out

    wih0_p = lane_align_gates(wih0)                                    # (I, 512)
    b0_p = lane_align_gates(b0)                                        # (1, 512)

    whh0_p = jnp.zeros((LANE, 4 * LANE), jnp.float32)
    whh0_p = whh0_p.at[:H].set(lane_align_gates(whh0))                 # (128, 512)

    # Fused layer-1 weight over a 256-deep contraction:
    #   rows [0, H)        <- W_ih1  (multiplies h1, which lives in lanes [0, H))
    #   rows [128, 128+H)  <- W_hh1  (multiplies h2)
    w1_p = jnp.zeros((2 * LANE, 4 * LANE), jnp.float32)
    w1_p = w1_p.at[:H].set(lane_align_gates(wih1))
    w1_p = w1_p.at[LANE:LANE + H].set(lane_align_gates(whh1))          # (256, 512)
    b1_p = lane_align_gates(b1)                                        # (1, 512)

    wfc_p = jnp.zeros((LANE, LANE), jnp.float32).at[:H, :C].set(wfc)   # (128, 128)
    bfc_p = jnp.zeros((1, LANE), jnp.float32).at[:, :C].set(bfc)       # (1, 128)

    return (wih0_p, b0_p, whh0_p, w1_p, b1_p, wfc_p, bfc_p)


def rnn_forward(x, params):
    """x: (seq_len, batch, input_size) float32 (batch_first=False layout).

    Returns (batch, num_classes) float32.
    """
    seq_len, batch, input_size = x.shape
    packed = pack_params(params)
    x2d = x.reshape(seq_len * batch, input_size)   # one VMEM block, one DMA

    kernel = functools.partial(rnn_kernel, seq_len=seq_len, batch=batch,
                               lanes=LANE)

    out_pad = pl.pallas_call(
        kernel,
        out_shape=jax.ShapeDtypeStruct((batch, LANE), jnp.float32),
        # No grid: single invocation; all operands are whole-array VMEM blocks.
    )(x2d, *packed)

    return out_pad[:, :NUM_CLASSES]


def init_params(key):
    """Deterministic parameter init; PyTorch LSTM gate order (i, f, g, o)."""
    H, I, C = HIDDEN_SIZE, INPUT_SIZE, NUM_CLASSES
    k = 1.0 / jnp.sqrt(H)
    keys = jax.random.split(key, 10)
    u = lambda kk, shape: jax.random.uniform(kk, shape, jnp.float32, -k, k)
    # Stored pre-transposed: (in_features, 4*hidden) so the math is x @ W.
    wih0 = u(keys[0], (I, 4 * H))
    whh0 = u(keys[1], (H, 4 * H))
    b0 = u(keys[2], (1, 4 * H)) + u(keys[3], (1, 4 * H))   # b_ih + b_hh
    wih1 = u(keys[4], (H, 4 * H))
    whh1 = u(keys[5], (H, 4 * H))
    b1 = u(keys[6], (1, 4 * H)) + u(keys[7], (1, 4 * H))
    wfc = u(keys[8], (H, C))
    bfc = u(keys[9], (1, C))
    return (wih0, whh0, b0, wih1, whh1, b1, wfc, bfc)


def rnn_reference(x, params):
    """Pure-JAX reference for the same forward pass (for a sanity check)."""
    (wih0, whh0, b0, wih1, whh1, b1, wfc, bfc) = params
    B, H = x.shape[1], HIDDEN_SIZE

    def cell(x_t, h, c, wih, whh, b):
        gates = x_t @ wih + h @ whh + b
        i = jax.nn.sigmoid(gates[:, 0 * H:1 * H])
        f = jax.nn.sigmoid(gates[:, 1 * H:2 * H])
        g = jnp.tanh(gates[:, 2 * H:3 * H])
        o = jax.nn.sigmoid(gates[:, 3 * H:4 * H])
        c = f * c + i * g
        return o * jnp.tanh(c), c

    def step(carry, x_t):
        h1, c1, h2, c2 = carry
        h1, c1 = cell(x_t, h1, c1, wih0, whh0, b0)
        h2, c2 = cell(h1, h2, c2, wih1, whh1, b1)
        return (h1, c1, h2, c2), None

    z = jnp.zeros((B, H), jnp.float32)
    (h1, c1, h2, c2), _ = jax.lax.scan(step, (z, z, z, z), x)
    return h2 @ wfc + bfc


if __name__ == "__main__":
    key = jax.random.PRNGKey(0)
    k_x, k_p = jax.random.split(key)

    # x: (seq_len, batch, input_size)  -- batch_first=False layout
    x = jax.random.normal(k_x, (SEQ_LEN, BATCH, INPUT_SIZE), jnp.float32)
    params = init_params(k_p)

    out = rnn_forward(x, params)
    out = jax.block_until_ready(out)

    ref = rnn_reference(x, params)
    assert out.shape == (BATCH, NUM_CLASSES)
    assert jnp.allclose(out, ref, atol=1e-4, rtol=1e-4)

    print("KERNEL_OK")
</pallas_src>

<mosaic_0001>
module attributes {stable_mosaic.version = 11 : i64} {
  func.func @rnn_kernel(%arg0: memref<64x28xf32, #tpu.memory_space<vmem>>, %arg1: memref<28x512xf32, #tpu.memory_space<vmem>>, %arg2: memref<1x512xf32, #tpu.memory_space<vmem>>, %arg3: memref<128x512xf32, #tpu.memory_space<vmem>>, %arg4: memref<256x512xf32, #tpu.memory_space<vmem>>, %arg5: memref<1x512xf32, #tpu.memory_space<vmem>>, %arg6: memref<128x128xf32, #tpu.memory_space<vmem>>, %arg7: memref<1x128xf32, #tpu.memory_space<vmem>>, %arg8: memref<8x128xf32, #tpu.memory_space<vmem>>) attributes {dimension_semantics = [], scalar_prefetch = 0 : i64, scratch_operands = 0 : i64, tpu.core_type = #tpu.core_type<tc>} {
    %c0 = arith.constant 0 : index
    %c0_0 = arith.constant 0 : index
    %0 = vector.load %arg0[%c0, %c0_0] : memref<64x28xf32, #tpu.memory_space<vmem>>, vector<64x28xf32>
    %c0_1 = arith.constant 0 : index
    %c0_2 = arith.constant 0 : index
    %1 = vector.load %arg1[%c0_1, %c0_2] : memref<28x512xf32, #tpu.memory_space<vmem>>, vector<28x512xf32>
    %cst = arith.constant dense<0.000000e+00> : vector<64x512xf32>
    %2 = tpu.matmul %0, %1, %cst {dimension_numbers = #tpu.dot_dimension_numbers<[1], [0], [0], [1], [0, 0, 1, 1], [], []>} : vector<64x28xf32>, vector<28x512xf32>, vector<64x512xf32> -> vector<64x512xf32>
    %c0_3 = arith.constant 0 : index
    %c0_4 = arith.constant 0 : index
    %3 = vector.load %arg2[%c0_3, %c0_4] : memref<1x512xf32, #tpu.memory_space<vmem>>, vector<1x512xf32>
    %4 = vector.broadcast %3 : vector<1x512xf32> to vector<64x512xf32>
    %5 = arith.addf %2, %4 : vector<64x512xf32>
    %c0_5 = arith.constant 0 : index
    %c0_6 = arith.constant 0 : index
    %6 = vector.load %arg5[%c0_5, %c0_6] : memref<1x512xf32, #tpu.memory_space<vmem>>, vector<1x512xf32>
    %7 = vector.shape_cast %6 : vector<1x512xf32> to vector<1x512xf32>
    %8 = vector.broadcast %7 : vector<1x512xf32> to vector<8x512xf32>
    %cst_7 = arith.constant 0.000000e+00 : f32
    %9 = vector.broadcast %cst_7 : f32 to vector<8x128xf32>
    %10 = vector.extract_strided_slice %5 {offsets = [0, 0], sizes = [8, 512], strides = [1, 1]} : vector<64x512xf32> to vector<8x512xf32>
    %c0_8 = arith.constant 0 : index
    %c0_9 = arith.constant 0 : index
    %11 = vector.load %arg3[%c0_8, %c0_9] : memref<128x512xf32, #tpu.memory_space<vmem>>, vector<128x512xf32>
    %cst_10 = arith.constant dense<0.000000e+00> : vector<8x512xf32>
    %12 = tpu.matmul %9, %11, %cst_10 {dimension_numbers = #tpu.dot_dimension_numbers<[1], [0], [0], [1], [0, 0, 1, 1], [], []>} : vector<8x128xf32>, vector<128x512xf32>, vector<8x512xf32> -> vector<8x512xf32>
    %13 = arith.addf %10, %12 : vector<8x512xf32>
    %14 = vector.extract_strided_slice %13 {offsets = [0, 0], sizes = [8, 128], strides = [1, 1]} : vector<8x512xf32> to vector<8x128xf32>
    %15 = arith.negf %14 : vector<8x128xf32>
    %16 = math.exp %15 : vector<8x128xf32>
    %cst_11 = arith.constant 1.000000e+00 : f32
    %17 = vector.broadcast %cst_11 : f32 to vector<8x128xf32>
    %18 = arith.addf %17, %16 : vector<8x128xf32>
    %19 = arith.divf %17, %18 : vector<8x128xf32>
    %20 = vector.extract_strided_slice %13 {offsets = [0, 128], sizes = [8, 128], strides = [1, 1]} : vector<8x512xf32> to vector<8x128xf32>
    %21 = arith.negf %20 : vector<8x128xf32>
    %22 = math.exp %21 : vector<8x128xf32>
    %cst_12 = arith.constant 1.000000e+00 : f32
    %23 = vector.broadcast %cst_12 : f32 to vector<8x128xf32>
    %24 = arith.addf %23, %22 : vector<8x128xf32>
    %25 = arith.divf %23, %24 : vector<8x128xf32>
    %26 = vector.extract_strided_slice %13 {offsets = [0, 256], sizes = [8, 128], strides = [1, 1]} : vector<8x512xf32> to vector<8x128xf32>
    %27 = math.tanh %26 : vector<8x128xf32>
    %28 = vector.extract_strided_slice %13 {offsets = [0, 384], sizes = [8, 128], strides = [1, 1]} : vector<8x512xf32> to vector<8x128xf32>
    %29 = arith.negf %28 : vector<8x128xf32>
    %30 = math.exp %29 : vector<8x128xf32>
    %cst_13 = arith.constant 1.000000e+00 : f32
    %31 = vector.broadcast %cst_13 : f32 to vector<8x128xf32>
    %32 = arith.addf %31, %30 : vector<8x128xf32>
    %33 = arith.divf %31, %32 : vector<8x128xf32>
    %34 = arith.mulf %25, %9 : vector<8x128xf32>
    %35 = arith.mulf %19, %27 : vector<8x128xf32>
    %36 = arith.addf %34, %35 : vector<8x128xf32>
    %37 = math.tanh %36 : vector<8x128xf32>
    %38 = arith.mulf %33, %37 : vector<8x128xf32>
    %39 = tpu.concatenate %38, %9 in 1 : vector<8x128xf32>, vector<8x128xf32> -> vector<8x256xf32>
    %c0_14 = arith.constant 0 : index
    %c0_15 = arith.constant 0 : index
    %40 = vector.load %arg4[%c0_14, %c0_15] : memref<256x512xf32, #tpu.memory_space<vmem>>, vector<256x512xf32>
    %cst_16 = arith.constant dense<0.000000e+00> : vector<8x512xf32>
    %41 = tpu.matmul %39, %40, %cst_16 {dimension_numbers = #tpu.dot_dimension_numbers<[1], [0], [0], [1], [0, 0, 1, 1], [], []>} : vector<8x256xf32>, vector<256x512xf32>, vector<8x512xf32> -> vector<8x512xf32>
    %42 = arith.addf %41, %8 : vector<8x512xf32>
    %43 = vector.extract_strided_slice %42 {offsets = [0, 0], sizes = [8, 128], strides = [1, 1]} : vector<8x512xf32> to vector<8x128xf32>
    %44 = arith.negf %43 : vector<8x128xf32>
    %45 = math.exp %44 : vector<8x128xf32>
    %cst_17 = arith.constant 1.000000e+00 : f32
    %46 = vector.broadcast %cst_17 : f32 to vector<8x128xf32>
    %47 = arith.addf %46, %45 : vector<8x128xf32>
    %48 = arith.divf %46, %47 : vector<8x128xf32>
    %49 = vector.extract_strided_slice %42 {offsets = [0, 128], sizes = [8, 128], strides = [1, 1]} : vector<8x512xf32> to vector<8x128xf32>
    %50 = arith.negf %49 : vector<8x128xf32>
    %51 = math.exp %50 : vector<8x128xf32>
    %cst_18 = arith.constant 1.000000e+00 : f32
    %52 = vector.broadcast %cst_18 : f32 to vector<8x128xf32>
    %53 = arith.addf %52, %51 : vector<8x128xf32>
    %54 = arith.divf %52, %53 : vector<8x128xf32>
    %55 = vector.extract_strided_slice %42 {offsets = [0, 256], sizes = [8, 128], strides = [1, 1]} : vector<8x512xf32> to vector<8x128xf32>
    %56 = math.tanh %55 : vector<8x128xf32>
    %57 = vector.extract_strided_slice %42 {offsets = [0, 384], sizes = [8, 128], strides = [1, 1]} : vector<8x512xf32> to vector<8x128xf32>
    %58 = arith.negf %57 : vector<8x128xf32>
    %59 = math.exp %58 : vector<8x128xf32>
    %cst_19 = arith.constant 1.000000e+00 : f32
    %60 = vector.broadcast %cst_19 : f32 to vector<8x128xf32>
    %61 = arith.addf %60, %59 : vector<8x128xf32>
    %62 = arith.divf %60, %61 : vector<8x128xf32>
    %63 = arith.mulf %54, %9 : vector<8x128xf32>
    %64 = arith.mulf %48, %56 : vector<8x128xf32>
    %65 = arith.addf %63, %64 : vector<8x128xf32>
    %66 = math.tanh %65 : vector<8x128xf32>
    %67 = arith.mulf %62, %66 : vector<8x128xf32>
    %68 = vector.extract_strided_slice %5 {offsets = [8, 0], sizes = [8, 512], strides = [1, 1]} : vector<64x512xf32> to vector<8x512xf32>
    %c0_20 = arith.constant 0 : index
    %c0_21 = arith.constant 0 : index
    %69 = vector.load %arg3[%c0_20, %c0_21] : memref<128x512xf32, #tpu.memory_space<vmem>>, vector<128x512xf32>
    %cst_22 = arith.constant dense<0.000000e+00> : vector<8x512xf32>
    %70 = tpu.matmul %38, %69, %cst_22 {dimension_numbers = #tpu.dot_dimension_numbers<[1], [0], [0], [1], [0, 0, 1, 1], [], []>} : vector<8x128xf32>, vector<128x512xf32>, vector<8x512xf32> -> vector<8x512xf32>
    %71 = arith.addf %68, %70 : vector<8x512xf32>
    %72 = vector.extract_strided_slice %71 {offsets = [0, 0], sizes = [8, 128], strides = [1, 1]} : vector<8x512xf32> to vector<8x128xf32>
    %73 = arith.negf %72 : vector<8x128xf32>
    %74 = math.exp %73 : vector<8x128xf32>
    %cst_23 = arith.constant 1.000000e+00 : f32
    %75 = vector.broadcast %cst_23 : f32 to vector<8x128xf32>
    %76 = arith.addf %75, %74 : vector<8x128xf32>
    %77 = arith.divf %75, %76 : vector<8x128xf32>
    %78 = vector.extract_strided_slice %71 {offsets = [0, 128], sizes = [8, 128], strides = [1, 1]} : vector<8x512xf32> to vector<8x128xf32>
    %79 = arith.negf %78 : vector<8x128xf32>
    %80 = math.exp %79 : vector<8x128xf32>
    %cst_24 = arith.constant 1.000000e+00 : f32
    %81 = vector.broadcast %cst_24 : f32 to vector<8x128xf32>
    %82 = arith.addf %81, %80 : vector<8x128xf32>
    %83 = arith.divf %81, %82 : vector<8x128xf32>
    %84 = vector.extract_strided_slice %71 {offsets = [0, 256], sizes = [8, 128], strides = [1, 1]} : vector<8x512xf32> to vector<8x128xf32>
    %85 = math.tanh %84 : vector<8x128xf32>
    %86 = vector.extract_strided_slice %71 {offsets = [0, 384], sizes = [8, 128], strides = [1, 1]} : vector<8x512xf32> to vector<8x128xf32>
    %87 = arith.negf %86 : vector<8x128xf32>
    %88 = math.exp %87 : vector<8x128xf32>
    %cst_25 = arith.constant 1.000000e+00 : f32
    %89 = vector.broadcast %cst_25 : f32 to vector<8x128xf32>
    %90 = arith.addf %89, %88 : vector<8x128xf32>
    %91 = arith.divf %89, %90 : vector<8x128xf32>
    %92 = arith.mulf %83, %36 : vector<8x128xf32>
    %93 = arith.mulf %77, %85 : vector<8x128xf32>
    %94 = arith.addf %92, %93 : vector<8x128xf32>
    %95 = math.tanh %94 : vector<8x128xf32>
    %96 = arith.mulf %91, %95 : vector<8x128xf32>
    %97 = tpu.concatenate %96, %67 in 1 : vector<8x128xf32>, vector<8x128xf32> -> vector<8x256xf32>
    %c0_26 = arith.constant 0 : index
    %c0_27 = arith.constant 0 : index
    %98 = vector.load %arg4[%c0_26, %c0_27] : memref<256x512xf32, #tpu.memory_space<vmem>>, vector<256x512xf32>
    %cst_28 = arith.constant dense<0.000000e+00> : vector<8x512xf32>
    %99 = tpu.matmul %97, %98, %cst_28 {dimension_numbers = #tpu.dot_dimension_numbers<[1], [0], [0], [1], [0, 0, 1, 1], [], []>} : vector<8x256xf32>, vector<256x512xf32>, vector<8x512xf32> -> vector<8x512xf32>
    %100 = arith.addf %99, %8 : vector<8x512xf32>
    %101 = vector.extract_strided_slice %100 {offsets = [0, 0], sizes = [8, 128], strides = [1, 1]} : vector<8x512xf32> to vector<8x128xf32>
    %102 = arith.negf %101 : vector<8x128xf32>
    %103 = math.exp %102 : vector<8x128xf32>
    %cst_29 = arith.constant 1.000000e+00 : f32
    %104 = vector.broadcast %cst_29 : f32 to vector<8x128xf32>
    %105 = arith.addf %104, %103 : vector<8x128xf32>
    %106 = arith.divf %104, %105 : vector<8x128xf32>
    %107 = vector.extract_strided_slice %100 {offsets = [0, 128], sizes = [8, 128], strides = [1, 1]} : vector<8x512xf32> to vector<8x128xf32>
    %108 = arith.negf %107 : vector<8x128xf32>
    %109 = math.exp %108 : vector<8x128xf32>
    %cst_30 = arith.constant 1.000000e+00 : f32
    %110 = vector.broadcast %cst_30 : f32 to vector<8x128xf32>
    %111 = arith.addf %110, %109 : vector<8x128xf32>
    %112 = arith.divf %110, %111 : vector<8x128xf32>
    %113 = vector.extract_strided_slice %100 {offsets = [0, 256], sizes = [8, 128], strides = [1, 1]} : vector<8x512xf32> to vector<8x128xf32>
    %114 = math.tanh %113 : vector<8x128xf32>
    %115 = vector.extract_strided_slice %100 {offsets = [0, 384], sizes = [8, 128], strides = [1, 1]} : vector<8x512xf32> to vector<8x128xf32>
    %116 = arith.negf %115 : vector<8x128xf32>
    %117 = math.exp %116 : vector<8x128xf32>
    %cst_31 = arith.constant 1.000000e+00 : f32
    %118 = vector.broadcast %cst_31 : f32 to vector<8x128xf32>
    %119 = arith.addf %118, %117 : vector<8x128xf32>
    %120 = arith.divf %118, %119 : vector<8x128xf32>
    %121 = arith.mulf %112, %65 : vector<8x128xf32>
    %122 = arith.mulf %106, %114 : vector<8x128xf32>
    %123 = arith.addf %121, %122 : vector<8x128xf32>
    %124 = math.tanh %123 : vector<8x128xf32>
    %125 = arith.mulf %120, %124 : vector<8x128xf32>
    %126 = vector.extract_strided_slice %5 {offsets = [16, 0], sizes = [8, 512], strides = [1, 1]} : vector<64x512xf32> to vector<8x512xf32>
    %c0_32 = arith.constant 0 : index
    %c0_33 = arith.constant 0 : index
    %127 = vector.load %arg3[%c0_32, %c0_33] : memref<128x512xf32, #tpu.memory_space<vmem>>, vector<128x512xf32>
    %cst_34 = arith.constant dense<0.000000e+00> : vector<8x512xf32>
    %128 = tpu.matmul %96, %127, %cst_34 {dimension_numbers = #tpu.dot_dimension_numbers<[1], [0], [0], [1], [0, 0, 1, 1], [], []>} : vector<8x128xf32>, vector<128x512xf32>, vector<8x512xf32> -> vector<8x512xf32>
    %129 = arith.addf %126, %128 : vector<8x512xf32>
    %130 = vector.extract_strided_slice %129 {offsets = [0, 0], sizes = [8, 128], strides = [1, 1]} : vector<8x512xf32> to vector<8x128xf32>
    %131 = arith.negf %130 : vector<8x128xf32>
    %132 = math.exp %131 : vector<8x128xf32>
    %cst_35 = arith.constant 1.000000e+00 : f32
    %133 = vector.broadcast %cst_35 : f32 to vector<8x128xf32>
    %134 = arith.addf %133, %132 : vector<8x128xf32>
    %135 = arith.divf %133, %134 : vector<8x128xf32>
    %136 = vector.extract_strided_slice %129 {offsets = [0, 128], sizes = [8, 128], strides = [1, 1]} : vector<8x512xf32> to vector<8x128xf32>
    %137 = arith.negf %136 : vector<8x128xf32>
    %138 = math.exp %137 : vector<8x128xf32>
    %cst_36 = arith.constant 1.000000e+00 : f32
    %139 = vector.broadcast %cst_36 : f32 to vector<8x128xf32>
    %140 = arith.addf %139, %138 : vector<8x128xf32>
    %141 = arith.divf %139, %140 : vector<8x128xf32>
    %142 = vector.extract_strided_slice %129 {offsets = [0, 256], sizes = [8, 128], strides = [1, 1]} : vector<8x512xf32> to vector<8x128xf32>
    %143 = math.tanh %142 : vector<8x128xf32>
    %144 = vector.extract_strided_slice %129 {offsets = [0, 384], sizes = [8, 128], strides = [1, 1]} : vector<8x512xf32> to vector<8x128xf32>
    %145 = arith.negf %144 : vector<8x128xf32>
    %146 = math.exp %145 : vector<8x128xf32>
    %cst_37 = arith.constant 1.000000e+00 : f32
    %147 = vector.broadcast %cst_37 : f32 to vector<8x128xf32>
    %148 = arith.addf %147, %146 : vector<8x128xf32>
    %149 = arith.divf %147, %148 : vector<8x128xf32>
    %150 = arith.mulf %141, %94 : vector<8x128xf32>
    %151 = arith.mulf %135, %143 : vector<8x128xf32>
    %152 = arith.addf %150, %151 : vector<8x128xf32>
    %153 = math.tanh %152 : vector<8x128xf32>
    %154 = arith.mulf %149, %153 : vector<8x128xf32>
    %155 = tpu.concatenate %154, %125 in 1 : vector<8x128xf32>, vector<8x128xf32> -> vector<8x256xf32>
    %c0_38 = arith.constant 0 : index
    %c0_39 = arith.constant 0 : index
    %156 = vector.load %arg4[%c0_38, %c0_39] : memref<256x512xf32, #tpu.memory_space<vmem>>, vector<256x512xf32>
    %cst_40 = arith.constant dense<0.000000e+00> : vector<8x512xf32>
    %157 = tpu.matmul %155, %156, %cst_40 {dimension_numbers = #tpu.dot_dimension_numbers<[1], [0], [0], [1], [0, 0, 1, 1], [], []>} : vector<8x256xf32>, vector<256x512xf32>, vector<8x512xf32> -> vector<8x512xf32>
    %158 = arith.addf %157, %8 : vector<8x512xf32>
    %159 = vector.extract_strided_slice %158 {offsets = [0, 0], sizes = [8, 128], strides = [1, 1]} : vector<8x512xf32> to vector<8x128xf32>
    %160 = arith.negf %159 : vector<8x128xf32>
    %161 = math.exp %160 : vector<8x128xf32>
    %cst_41 = arith.constant 1.000000e+00 : f32
    %162 = vector.broadcast %cst_41 : f32 to vector<8x128xf32>
    %163 = arith.addf %162, %161 : vector<8x128xf32>
    %164 = arith.divf %162, %163 : vector<8x128xf32>
    %165 = vector.extract_strided_slice %158 {offsets = [0, 128], sizes = [8, 128], strides = [1, 1]} : vector<8x512xf32> to vector<8x128xf32>
    %166 = arith.negf %165 : vector<8x128xf32>
    %167 = math.exp %166 : vector<8x128xf32>
    %cst_42 = arith.constant 1.000000e+00 : f32
    %168 = vector.broadcast %cst_42 : f32 to vector<8x128xf32>
    %169 = arith.addf %168, %167 : vector<8x128xf32>
    %170 = arith.divf %168, %169 : vector<8x128xf32>
    %171 = vector.extract_strided_slice %158 {offsets = [0, 256], sizes = [8, 128], strides = [1, 1]} : vector<8x512xf32> to vector<8x128xf32>
    %172 = math.tanh %171 : vector<8x128xf32>
    %173 = vector.extract_strided_slice %158 {offsets = [0, 384], sizes = [8, 128], strides = [1, 1]} : vector<8x512xf32> to vector<8x128xf32>
    %174 = arith.negf %173 : vector<8x128xf32>
    %175 = math.exp %174 : vector<8x128xf32>
    %cst_43 = arith.constant 1.000000e+00 : f32
    %176 = vector.broadcast %cst_43 : f32 to vector<8x128xf32>
    %177 = arith.addf %176, %175 : vector<8x128xf32>
    %178 = arith.divf %176, %177 : vector<8x128xf32>
    %179 = arith.mulf %170, %123 : vector<8x128xf32>
    %180 = arith.mulf %164, %172 : vector<8x128xf32>
    %181 = arith.addf %179, %180 : vector<8x128xf32>
    %182 = math.tanh %181 : vector<8x128xf32>
    %183 = arith.mulf %178, %182 : vector<8x128xf32>
    %184 = vector.extract_strided_slice %5 {offsets = [24, 0], sizes = [8, 512], strides = [1, 1]} : vector<64x512xf32> to vector<8x512xf32>
    %c0_44 = arith.constant 0 : index
    %c0_45 = arith.constant 0 : index
    %185 = vector.load %arg3[%c0_44, %c0_45] : memref<128x512xf32, #tpu.memory_space<vmem>>, vector<128x512xf32>
    %cst_46 = arith.constant dense<0.000000e+00> : vector<8x512xf32>
    %186 = tpu.matmul %154, %185, %cst_46 {dimension_numbers = #tpu.dot_dimension_numbers<[1], [0], [0], [1], [0, 0, 1, 1], [], []>} : vector<8x128xf32>, vector<128x512xf32>, vector<8x512xf32> -> vector<8x512xf32>
    %187 = arith.addf %184, %186 : vector<8x512xf32>
    %188 = vector.extract_strided_slice %187 {offsets = [0, 0], sizes = [8, 128], strides = [1, 1]} : vector<8x512xf32> to vector<8x128xf32>
    %189 = arith.negf %188 : vector<8x128xf32>
    %190 = math.exp %189 : vector<8x128xf32>
    %cst_47 = arith.constant 1.000000e+00 : f32
    %191 = vector.broadcast %cst_47 : f32 to vector<8x128xf32>
    %192 = arith.addf %191, %190 : vector<8x128xf32>
    %193 = arith.divf %191, %192 : vector<8x128xf32>
    %194 = vector.extract_strided_slice %187 {offsets = [0, 128], sizes = [8, 128], strides = [1, 1]} : vector<8x512xf32> to vector<8x128xf32>
    %195 = arith.negf %194 : vector<8x128xf32>
    %196 = math.exp %195 : vector<8x128xf32>
    %cst_48 = arith.constant 1.000000e+00 : f32
    %197 = vector.broadcast %cst_48 : f32 to vector<8x128xf32>
    %198 = arith.addf %197, %196 : vector<8x128xf32>
    %199 = arith.divf %197, %198 : vector<8x128xf32>
    %200 = vector.extract_strided_slice %187 {offsets = [0, 256], sizes = [8, 128], strides = [1, 1]} : vector<8x512xf32> to vector<8x128xf32>
    %201 = math.tanh %200 : vector<8x128xf32>
    %202 = vector.extract_strided_slice %187 {offsets = [0, 384], sizes = [8, 128], strides = [1, 1]} : vector<8x512xf32> to vector<8x128xf32>
    %203 = arith.negf %202 : vector<8x128xf32>
    %204 = math.exp %203 : vector<8x128xf32>
    %cst_49 = arith.constant 1.000000e+00 : f32
    %205 = vector.broadcast %cst_49 : f32 to vector<8x128xf32>
    %206 = arith.addf %205, %204 : vector<8x128xf32>
    %207 = arith.divf %205, %206 : vector<8x128xf32>
    %208 = arith.mulf %199, %152 : vector<8x128xf32>
    %209 = arith.mulf %193, %201 : vector<8x128xf32>
    %210 = arith.addf %208, %209 : vector<8x128xf32>
    %211 = math.tanh %210 : vector<8x128xf32>
    %212 = arith.mulf %207, %211 : vector<8x128xf32>
    %213 = tpu.concatenate %212, %183 in 1 : vector<8x128xf32>, vector<8x128xf32> -> vector<8x256xf32>
    %c0_50 = arith.constant 0 : index
    %c0_51 = arith.constant 0 : index
    %214 = vector.load %arg4[%c0_50, %c0_51] : memref<256x512xf32, #tpu.memory_space<vmem>>, vector<256x512xf32>
    %cst_52 = arith.constant dense<0.000000e+00> : vector<8x512xf32>
    %215 = tpu.matmul %213, %214, %cst_52 {dimension_numbers = #tpu.dot_dimension_numbers<[1], [0], [0], [1], [0, 0, 1, 1], [], []>} : vector<8x256xf32>, vector<256x512xf32>, vector<8x512xf32> -> vector<8x512xf32>
    %216 = arith.addf %215, %8 : vector<8x512xf32>
    %217 = vector.extract_strided_slice %216 {offsets = [0, 0], sizes = [8, 128], strides = [1, 1]} : vector<8x512xf32> to vector<8x128xf32>
    %218 = arith.negf %217 : vector<8x128xf32>
    %219 = math.exp %218 : vector<8x128xf32>
    %cst_53 = arith.constant 1.000000e+00 : f32
    %220 = vector.broadcast %cst_53 : f32 to vector<8x128xf32>
    %221 = arith.addf %220, %219 : vector<8x128xf32>
    %222 = arith.divf %220, %221 : vector<8x128xf32>
    %223 = vector.extract_strided_slice %216 {offsets = [0, 128], sizes = [8, 128], strides = [1, 1]} : vector<8x512xf32> to vector<8x128xf32>
    %224 = arith.negf %223 : vector<8x128xf32>
    %225 = math.exp %224 : vector<8x128xf32>
    %cst_54 = arith.constant 1.000000e+00 : f32
    %226 = vector.broadcast %cst_54 : f32 to vector<8x128xf32>
    %227 = arith.addf %226, %225 : vector<8x128xf32>
    %228 = arith.divf %226, %227 : vector<8x128xf32>
    %229 = vector.extract_strided_slice %216 {offsets = [0, 256], sizes = [8, 128], strides = [1, 1]} : vector<8x512xf32> to vector<8x128xf32>
    %230 = math.tanh %229 : vector<8x128xf32>
    %231 = vector.extract_strided_slice %216 {offsets = [0, 384], sizes = [8, 128], strides = [1, 1]} : vector<8x512xf32> to vector<8x128xf32>
    %232 = arith.negf %231 : vector<8x128xf32>
    %233 = math.exp %232 : vector<8x128xf32>
    %cst_55 = arith.constant 1.000000e+00 : f32
    %234 = vector.broadcast %cst_55 : f32 to vector<8x128xf32>
    %235 = arith.addf %234, %233 : vector<8x128xf32>
    %236 = arith.divf %234, %235 : vector<8x128xf32>
    %237 = arith.mulf %228, %181 : vector<8x128xf32>
    %238 = arith.mulf %222, %230 : vector<8x128xf32>
    %239 = arith.addf %237, %238 : vector<8x128xf32>
    %240 = math.tanh %239 : vector<8x128xf32>
    %241 = arith.mulf %236, %240 : vector<8x128xf32>
    %242 = vector.extract_strided_slice %5 {offsets = [32, 0], sizes = [8, 512], strides = [1, 1]} : vector<64x512xf32> to vector<8x512xf32>
    %c0_56 = arith.constant 0 : index
    %c0_57 = arith.constant 0 : index
    %243 = vector.load %arg3[%c0_56, %c0_57] : memref<128x512xf32, #tpu.memory_space<vmem>>, vector<128x512xf32>
    %cst_58 = arith.constant dense<0.000000e+00> : vector<8x512xf32>
    %244 = tpu.matmul %212, %243, %cst_58 {dimension_numbers = #tpu.dot_dimension_numbers<[1], [0], [0], [1], [0, 0, 1, 1], [], []>} : vector<8x128xf32>, vector<128x512xf32>, vector<8x512xf32> -> vector<8x512xf32>
    %245 = arith.addf %242, %244 : vector<8x512xf32>
    %246 = vector.extract_strided_slice %245 {offsets = [0, 0], sizes = [8, 128], strides = [1, 1]} : vector<8x512xf32> to vector<8x128xf32>
    %247 = arith.negf %246 : vector<8x128xf32>
    %248 = math.exp %247 : vector<8x128xf32>
    %cst_59 = arith.constant 1.000000e+00 : f32
    %249 = vector.broadcast %cst_59 : f32 to vector<8x128xf32>
    %250 = arith.addf %249, %248 : vector<8x128xf32>
    %251 = arith.divf %249, %250 : vector<8x128xf32>
    %252 = vector.extract_strided_slice %245 {offsets = [0, 128], sizes = [8, 128], strides = [1, 1]} : vector<8x512xf32> to vector<8x128xf32>
    %253 = arith.negf %252 : vector<8x128xf32>
    %254 = math.exp %253 : vector<8x128xf32>
    %cst_60 = arith.constant 1.000000e+00 : f32
    %255 = vector.broadcast %cst_60 : f32 to vector<8x128xf32>
    %256 = arith.addf %255, %254 : vector<8x128xf32>
    %257 = arith.divf %255, %256 : vector<8x128xf32>
    %258 = vector.extract_strided_slice %245 {offsets = [0, 256], sizes = [8, 128], strides = [1, 1]} : vector<8x512xf32> to vector<8x128xf32>
    %259 = math.tanh %258 : vector<8x128xf32>
    %260 = vector.extract_strided_slice %245 {offsets = [0, 384], sizes = [8, 128], strides = [1, 1]} : vector<8x512xf32> to vector<8x128xf32>
    %261 = arith.negf %260 : vector<8x128xf32>
    %262 = math.exp %261 : vector<8x128xf32>
    %cst_61 = arith.constant 1.000000e+00 : f32
    %263 = vector.broadcast %cst_61 : f32 to vector<8x128xf32>
    %264 = arith.addf %263, %262 : vector<8x128xf32>
    %265 = arith.divf %263, %264 : vector<8x128xf32>
    %266 = arith.mulf %257, %210 : vector<8x128xf32>
    %267 = arith.mulf %251, %259 : vector<8x128xf32>
    %268 = arith.addf %266, %267 : vector<8x128xf32>
    %269 = math.tanh %268 : vector<8x128xf32>
    %270 = arith.mulf %265, %269 : vector<8x128xf32>
    %271 = tpu.concatenate %270, %241 in 1 : vector<8x128xf32>, vector<8x128xf32> -> vector<8x256xf32>
    %c0_62 = arith.constant 0 : index
    %c0_63 = arith.constant 0 : index
    %272 = vector.load %arg4[%c0_62, %c0_63] : memref<256x512xf32, #tpu.memory_space<vmem>>, vector<256x512xf32>
    %cst_64 = arith.constant dense<0.000000e+00> : vector<8x512xf32>
    %273 = tpu.matmul %271, %272, %cst_64 {dimension_numbers = #tpu.dot_dimension_numbers<[1], [0], [0], [1], [0, 0, 1, 1], [], []>} : vector<8x256xf32>, vector<256x512xf32>, vector<8x512xf32> -> vector<8x512xf32>
    %274 = arith.addf %273, %8 : vector<8x512xf32>
    %275 = vector.extract_strided_slice %274 {offsets = [0, 0], sizes = [8, 128], strides = [1, 1]} : vector<8x512xf32> to vector<8x128xf32>
    %276 = arith.negf %275 : vector<8x128xf32>
    %277 = math.exp %276 : vector<8x128xf32>
    %cst_65 = arith.constant 1.000000e+00 : f32
    %278 = vector.broadcast %cst_65 : f32 to vector<8x128xf32>
    %279 = arith.addf %278, %277 : vector<8x128xf32>
    %280 = arith.divf %278, %279 : vector<8x128xf32>
    %281 = vector.extract_strided_slice %274 {offsets = [0, 128], sizes = [8, 128], strides = [1, 1]} : vector<8x512xf32> to vector<8x128xf32>
    %282 = arith.negf %281 : vector<8x128xf32>
    %283 = math.exp %282 : vector<8x128xf32>
    %cst_66 = arith.constant 1.000000e+00 : f32
    %284 = vector.broadcast %cst_66 : f32 to vector<8x128xf32>
    %285 = arith.addf %284, %283 : vector<8x128xf32>
    %286 = arith.divf %284, %285 : vector<8x128xf32>
    %287 = vector.extract_strided_slice %274 {offsets = [0, 256], sizes = [8, 128], strides = [1, 1]} : vector<8x512xf32> to vector<8x128xf32>
    %288 = math.tanh %287 : vector<8x128xf32>
    %289 = vector.extract_strided_slice %274 {offsets = [0, 384], sizes = [8, 128], strides = [1, 1]} : vector<8x512xf32> to vector<8x128xf32>
    %290 = arith.negf %289 : vector<8x128xf32>
    %291 = math.exp %290 : vector<8x128xf32>
    %cst_67 = arith.constant 1.000000e+00 : f32
    %292 = vector.broadcast %cst_67 : f32 to vector<8x128xf32>
    %293 = arith.addf %292, %291 : vector<8x128xf32>
    %294 = arith.divf %292, %293 : vector<8x128xf32>
    %295 = arith.mulf %286, %239 : vector<8x128xf32>
    %296 = arith.mulf %280, %288 : vector<8x128xf32>
    %297 = arith.addf %295, %296 : vector<8x128xf32>
    %298 = math.tanh %297 : vector<8x128xf32>
    %299 = arith.mulf %294, %298 : vector<8x128xf32>
    %300 = vector.extract_strided_slice %5 {offsets = [40, 0], sizes = [8, 512], strides = [1, 1]} : vector<64x512xf32> to vector<8x512xf32>
    %c0_68 = arith.constant 0 : index
    %c0_69 = arith.constant 0 : index
    %301 = vector.load %arg3[%c0_68, %c0_69] : memref<128x512xf32, #tpu.memory_space<vmem>>, vector<128x512xf32>
    %cst_70 = arith.constant dense<0.000000e+00> : vector<8x512xf32>
    %302 = tpu.matmul %270, %301, %cst_70 {dimension_numbers = #tpu.dot_dimension_numbers<[1], [0], [0], [1], [0, 0, 1, 1], [], []>} : vector<8x128xf32>, vector<128x512xf32>, vector<8x512xf32> -> vector<8x512xf32>
    %303 = arith.addf %300, %302 : vector<8x512xf32>
    %304 = vector.extract_strided_slice %303 {offsets = [0, 0], sizes = [8, 128], strides = [1, 1]} : vector<8x512xf32> to vector<8x128xf32>
    %305 = arith.negf %304 : vector<8x128xf32>
    %306 = math.exp %305 : vector<8x128xf32>
    %cst_71 = arith.constant 1.000000e+00 : f32
    %307 = vector.broadcast %cst_71 : f32 to vector<8x128xf32>
    %308 = arith.addf %307, %306 : vector<8x128xf32>
    %309 = arith.divf %307, %308 : vector<8x128xf32>
    %310 = vector.extract_strided_slice %303 {offsets = [0, 128], sizes = [8, 128], strides = [1, 1]} : vector<8x512xf32> to vector<8x128xf32>
    %311 = arith.negf %310 : vector<8x128xf32>
    %312 = math.exp %311 : vector<8x128xf32>
    %cst_72 = arith.constant 1.000000e+00 : f32
    %313 = vector.broadcast %cst_72 : f32 to vector<8x128xf32>
    %314 = arith.addf %313, %312 : vector<8x128xf32>
    %315 = arith.divf %313, %314 : vector<8x128xf32>
    %316 = vector.extract_strided_slice %303 {offsets = [0, 256], sizes = [8, 128], strides = [1, 1]} : vector<8x512xf32> to vector<8x128xf32>
    %317 = math.tanh %316 : vector<8x128xf32>
    %318 = vector.extract_strided_slice %303 {offsets = [0, 384], sizes = [8, 128], strides = [1, 1]} : vector<8x512xf32> to vector<8x128xf32>
    %319 = arith.negf %318 : vector<8x128xf32>
    %320 = math.exp %319 : vector<8x128xf32>
    %cst_73 = arith.constant 1.000000e+00 : f32
    %321 = vector.broadcast %cst_73 : f32 to vector<8x128xf32>
    %322 = arith.addf %321, %320 : vector<8x128xf32>
    %323 = arith.divf %321, %322 : vector<8x128xf32>
    %324 = arith.mulf %315, %268 : vector<8x128xf32>
    %325 = arith.mulf %309, %317 : vector<8x128xf32>
    %326 = arith.addf %324, %325 : vector<8x128xf32>
    %327 = math.tanh %326 : vector<8x128xf32>
    %328 = arith.mulf %323, %327 : vector<8x128xf32>
    %329 = tpu.concatenate %328, %299 in 1 : vector<8x128xf32>, vector<8x128xf32> -> vector<8x256xf32>
    %c0_74 = arith.constant 0 : index
    %c0_75 = arith.constant 0 : index
    %330 = vector.load %arg4[%c0_74, %c0_75] : memref<256x512xf32, #tpu.memory_space<vmem>>, vector<256x512xf32>
    %cst_76 = arith.constant dense<0.000000e+00> : vector<8x512xf32>
    %331 = tpu.matmul %329, %330, %cst_76 {dimension_numbers = #tpu.dot_dimension_numbers<[1], [0], [0], [1], [0, 0, 1, 1], [], []>} : vector<8x256xf32>, vector<256x512xf32>, vector<8x512xf32> -> vector<8x512xf32>
    %332 = arith.addf %331, %8 : vector<8x512xf32>
    %333 = vector.extract_strided_slice %332 {offsets = [0, 0], sizes = [8, 128], strides = [1, 1]} : vector<8x512xf32> to vector<8x128xf32>
    %334 = arith.negf %333 : vector<8x128xf32>
    %335 = math.exp %334 : vector<8x128xf32>
    %cst_77 = arith.constant 1.000000e+00 : f32
    %336 = vector.broadcast %cst_77 : f32 to vector<8x128xf32>
    %337 = arith.addf %336, %335 : vector<8x128xf32>
    %338 = arith.divf %336, %337 : vector<8x128xf32>
    %339 = vector.extract_strided_slice %332 {offsets = [0, 128], sizes = [8, 128], strides = [1, 1]} : vector<8x512xf32> to vector<8x128xf32>
    %340 = arith.negf %339 : vector<8x128xf32>
    %341 = math.exp %340 : vector<8x128xf32>
    %cst_78 = arith.constant 1.000000e+00 : f32
    %342 = vector.broadcast %cst_78 : f32 to vector<8x128xf32>
    %343 = arith.addf %342, %341 : vector<8x128xf32>
    %344 = arith.divf %342, %343 : vector<8x128xf32>
    %345 = vector.extract_strided_slice %332 {offsets = [0, 256], sizes = [8, 128], strides = [1, 1]} : vector<8x512xf32> to vector<8x128xf32>
    %346 = math.tanh %345 : vector<8x128xf32>
    %347 = vector.extract_strided_slice %332 {offsets = [0, 384], sizes = [8, 128], strides = [1, 1]} : vector<8x512xf32> to vector<8x128xf32>
    %348 = arith.negf %347 : vector<8x128xf32>
    %349 = math.exp %348 : vector<8x128xf32>
    %cst_79 = arith.constant 1.000000e+00 : f32
    %350 = vector.broadcast %cst_79 : f32 to vector<8x128xf32>
    %351 = arith.addf %350, %349 : vector<8x128xf32>
    %352 = arith.divf %350, %351 : vector<8x128xf32>
    %353 = arith.mulf %344, %297 : vector<8x128xf32>
    %354 = arith.mulf %338, %346 : vector<8x128xf32>
    %355 = arith.addf %353, %354 : vector<8x128xf32>
    %356 = math.tanh %355 : vector<8x128xf32>
    %357 = arith.mulf %352, %356 : vector<8x128xf32>
    %358 = vector.extract_strided_slice %5 {offsets = [48, 0], sizes = [8, 512], strides = [1, 1]} : vector<64x512xf32> to vector<8x512xf32>
    %c0_80 = arith.constant 0 : index
    %c0_81 = arith.constant 0 : index
    %359 = vector.load %arg3[%c0_80, %c0_81] : memref<128x512xf32, #tpu.memory_space<vmem>>, vector<128x512xf32>
    %cst_82 = arith.constant dense<0.000000e+00> : vector<8x512xf32>
    %360 = tpu.matmul %328, %359, %cst_82 {dimension_numbers = #tpu.dot_dimension_numbers<[1], [0], [0], [1], [0, 0, 1, 1], [], []>} : vector<8x128xf32>, vector<128x512xf32>, vector<8x512xf32> -> vector<8x512xf32>
    %361 = arith.addf %358, %360 : vector<8x512xf32>
    %362 = vector.extract_strided_slice %361 {offsets = [0, 0], sizes = [8, 128], strides = [1, 1]} : vector<8x512xf32> to vector<8x128xf32>
    %363 = arith.negf %362 : vector<8x128xf32>
    %364 = math.exp %363 : vector<8x128xf32>
    %cst_83 = arith.constant 1.000000e+00 : f32
    %365 = vector.broadcast %cst_83 : f32 to vector<8x128xf32>
    %366 = arith.addf %365, %364 : vector<8x128xf32>
    %367 = arith.divf %365, %366 : vector<8x128xf32>
    %368 = vector.extract_strided_slice %361 {offsets = [0, 128], sizes = [8, 128], strides = [1, 1]} : vector<8x512xf32> to vector<8x128xf32>
    %369 = arith.negf %368 : vector<8x128xf32>
    %370 = math.exp %369 : vector<8x128xf32>
    %cst_84 = arith.constant 1.000000e+00 : f32
    %371 = vector.broadcast %cst_84 : f32 to vector<8x128xf32>
    %372 = arith.addf %371, %370 : vector<8x128xf32>
    %373 = arith.divf %371, %372 : vector<8x128xf32>
    %374 = vector.extract_strided_slice %361 {offsets = [0, 256], sizes = [8, 128], strides = [1, 1]} : vector<8x512xf32> to vector<8x128xf32>
    %375 = math.tanh %374 : vector<8x128xf32>
    %376 = vector.extract_strided_slice %361 {offsets = [0, 384], sizes = [8, 128], strides = [1, 1]} : vector<8x512xf32> to vector<8x128xf32>
    %377 = arith.negf %376 : vector<8x128xf32>
    %378 = math.exp %377 : vector<8x128xf32>
    %cst_85 = arith.constant 1.000000e+00 : f32
    %379 = vector.broadcast %cst_85 : f32 to vector<8x128xf32>
    %380 = arith.addf %379, %378 : vector<8x128xf32>
    %381 = arith.divf %379, %380 : vector<8x128xf32>
    %382 = arith.mulf %373, %326 : vector<8x128xf32>
    %383 = arith.mulf %367, %375 : vector<8x128xf32>
    %384 = arith.addf %382, %383 : vector<8x128xf32>
    %385 = math.tanh %384 : vector<8x128xf32>
    %386 = arith.mulf %381, %385 : vector<8x128xf32>
    %387 = tpu.concatenate %386, %357 in 1 : vector<8x128xf32>, vector<8x128xf32> -> vector<8x256xf32>
    %c0_86 = arith.constant 0 : index
    %c0_87 = arith.constant 0 : index
    %388 = vector.load %arg4[%c0_86, %c0_87] : memref<256x512xf32, #tpu.memory_space<vmem>>, vector<256x512xf32>
    %cst_88 = arith.constant dense<0.000000e+00> : vector<8x512xf32>
    %389 = tpu.matmul %387, %388, %cst_88 {dimension_numbers = #tpu.dot_dimension_numbers<[1], [0], [0], [1], [0, 0, 1, 1], [], []>} : vector<8x256xf32>, vector<256x512xf32>, vector<8x512xf32> -> vector<8x512xf32>
    %390 = arith.addf %389, %8 : vector<8x512xf32>
    %391 = vector.extract_strided_slice %390 {offsets = [0, 0], sizes = [8, 128], strides = [1, 1]} : vector<8x512xf32> to vector<8x128xf32>
    %392 = arith.negf %391 : vector<8x128xf32>
    %393 = math.exp %392 : vector<8x128xf32>
    %cst_89 = arith.constant 1.000000e+00 : f32
    %394 = vector.broadcast %cst_89 : f32 to vector<8x128xf32>
    %395 = arith.addf %394, %393 : vector<8x128xf32>
    %396 = arith.divf %394, %395 : vector<8x128xf32>
    %397 = vector.extract_strided_slice %390 {offsets = [0, 128], sizes = [8, 128], strides = [1, 1]} : vector<8x512xf32> to vector<8x128xf32>
    %398 = arith.negf %397 : vector<8x128xf32>
    %399 = math.exp %398 : vector<8x128xf32>
    %cst_90 = arith.constant 1.000000e+00 : f32
    %400 = vector.broadcast %cst_90 : f32 to vector<8x128xf32>
    %401 = arith.addf %400, %399 : vector<8x128xf32>
    %402 = arith.divf %400, %401 : vector<8x128xf32>
    %403 = vector.extract_strided_slice %390 {offsets = [0, 256], sizes = [8, 128], strides = [1, 1]} : vector<8x512xf32> to vector<8x128xf32>
    %404 = math.tanh %403 : vector<8x128xf32>
    %405 = vector.extract_strided_slice %390 {offsets = [0, 384], sizes = [8, 128], strides = [1, 1]} : vector<8x512xf32> to vector<8x128xf32>
    %406 = arith.negf %405 : vector<8x128xf32>
    %407 = math.exp %406 : vector<8x128xf32>
    %cst_91 = arith.constant 1.000000e+00 : f32
    %408 = vector.broadcast %cst_91 : f32 to vector<8x128xf32>
    %409 = arith.addf %408, %407 : vector<8x128xf32>
    %410 = arith.divf %408, %409 : vector<8x128xf32>
    %411 = arith.mulf %402, %355 : vector<8x128xf32>
    %412 = arith.mulf %396, %404 : vector<8x128xf32>
    %413 = arith.addf %411, %412 : vector<8x128xf32>
    %414 = math.tanh %413 : vector<8x128xf32>
    %415 = arith.mulf %410, %414 : vector<8x128xf32>
    %416 = vector.extract_strided_slice %5 {offsets = [56, 0], sizes = [8, 512], strides = [1, 1]} : vector<64x512xf32> to vector<8x512xf32>
    %c0_92 = arith.constant 0 : index
    %c0_93 = arith.constant 0 : index
    %417 = vector.load %arg3[%c0_92, %c0_93] : memref<128x512xf32, #tpu.memory_space<vmem>>, vector<128x512xf32>
    %cst_94 = arith.constant dense<0.000000e+00> : vector<8x512xf32>
    %418 = tpu.matmul %386, %417, %cst_94 {dimension_numbers = #tpu.dot_dimension_numbers<[1], [0], [0], [1], [0, 0, 1, 1], [], []>} : vector<8x128xf32>, vector<128x512xf32>, vector<8x512xf32> -> vector<8x512xf32>
    %419 = arith.addf %416, %418 : vector<8x512xf32>
    %420 = vector.extract_strided_slice %419 {offsets = [0, 0], sizes = [8, 128], strides = [1, 1]} : vector<8x512xf32> to vector<8x128xf32>
    %421 = arith.negf %420 : vector<8x128xf32>
    %422 = math.exp %421 : vector<8x128xf32>
    %cst_95 = arith.constant 1.000000e+00 : f32
    %423 = vector.broadcast %cst_95 : f32 to vector<8x128xf32>
    %424 = arith.addf %423, %422 : vector<8x128xf32>
    %425 = arith.divf %423, %424 : vector<8x128xf32>
    %426 = vector.extract_strided_slice %419 {offsets = [0, 128], sizes = [8, 128], strides = [1, 1]} : vector<8x512xf32> to vector<8x128xf32>
    %427 = arith.negf %426 : vector<8x128xf32>
    %428 = math.exp %427 : vector<8x128xf32>
    %cst_96 = arith.constant 1.000000e+00 : f32
    %429 = vector.broadcast %cst_96 : f32 to vector<8x128xf32>
    %430 = arith.addf %429, %428 : vector<8x128xf32>
    %431 = arith.divf %429, %430 : vector<8x128xf32>
    %432 = vector.extract_strided_slice %419 {offsets = [0, 256], sizes = [8, 128], strides = [1, 1]} : vector<8x512xf32> to vector<8x128xf32>
    %433 = math.tanh %432 : vector<8x128xf32>
    %434 = vector.extract_strided_slice %419 {offsets = [0, 384], sizes = [8, 128], strides = [1, 1]} : vector<8x512xf32> to vector<8x128xf32>
    %435 = arith.negf %434 : vector<8x128xf32>
    %436 = math.exp %435 : vector<8x128xf32>
    %cst_97 = arith.constant 1.000000e+00 : f32
    %437 = vector.broadcast %cst_97 : f32 to vector<8x128xf32>
    %438 = arith.addf %437, %436 : vector<8x128xf32>
    %439 = arith.divf %437, %438 : vector<8x128xf32>
    %440 = arith.mulf %431, %384 : vector<8x128xf32>
    %441 = arith.mulf %425, %433 : vector<8x128xf32>
    %442 = arith.addf %440, %441 : vector<8x128xf32>
    %443 = math.tanh %442 : vector<8x128xf32>
    %444 = arith.mulf %439, %443 : vector<8x128xf32>
    %445 = tpu.concatenate %444, %415 in 1 : vector<8x128xf32>, vector<8x128xf32> -> vector<8x256xf32>
    %c0_98 = arith.constant 0 : index
    %c0_99 = arith.constant 0 : index
    %446 = vector.load %arg4[%c0_98, %c0_99] : memref<256x512xf32, #tpu.memory_space<vmem>>, vector<256x512xf32>
    %cst_100 = arith.constant dense<0.000000e+00> : vector<8x512xf32>
    %447 = tpu.matmul %445, %446, %cst_100 {dimension_numbers = #tpu.dot_dimension_numbers<[1], [0], [0], [1], [0, 0, 1, 1], [], []>} : vector<8x256xf32>, vector<256x512xf32>, vector<8x512xf32> -> vector<8x512xf32>
    %448 = arith.addf %447, %8 : vector<8x512xf32>
    %449 = vector.extract_strided_slice %448 {offsets = [0, 0], sizes = [8, 128], strides = [1, 1]} : vector<8x512xf32> to vector<8x128xf32>
    %450 = arith.negf %449 : vector<8x128xf32>
    %451 = math.exp %450 : vector<8x128xf32>
    %cst_101 = arith.constant 1.000000e+00 : f32
    %452 = vector.broadcast %cst_101 : f32 to vector<8x128xf32>
    %453 = arith.addf %452, %451 : vector<8x128xf32>
    %454 = arith.divf %452, %453 : vector<8x128xf32>
    %455 = vector.extract_strided_slice %448 {offsets = [0, 128], sizes = [8, 128], strides = [1, 1]} : vector<8x512xf32> to vector<8x128xf32>
    %456 = arith.negf %455 : vector<8x128xf32>
    %457 = math.exp %456 : vector<8x128xf32>
    %cst_102 = arith.constant 1.000000e+00 : f32
    %458 = vector.broadcast %cst_102 : f32 to vector<8x128xf32>
    %459 = arith.addf %458, %457 : vector<8x128xf32>
    %460 = arith.divf %458, %459 : vector<8x128xf32>
    %461 = vector.extract_strided_slice %448 {offsets = [0, 256], sizes = [8, 128], strides = [1, 1]} : vector<8x512xf32> to vector<8x128xf32>
    %462 = math.tanh %461 : vector<8x128xf32>
    %463 = vector.extract_strided_slice %448 {offsets = [0, 384], sizes = [8, 128], strides = [1, 1]} : vector<8x512xf32> to vector<8x128xf32>
    %464 = arith.negf %463 : vector<8x128xf32>
    %465 = math.exp %464 : vector<8x128xf32>
    %cst_103 = arith.constant 1.000000e+00 : f32
    %466 = vector.broadcast %cst_103 : f32 to vector<8x128xf32>
    %467 = arith.addf %466, %465 : vector<8x128xf32>
    %468 = arith.divf %466, %467 : vector<8x128xf32>
    %469 = arith.mulf %460, %413 : vector<8x128xf32>
    %470 = arith.mulf %454, %462 : vector<8x128xf32>
    %471 = arith.addf %469, %470 : vector<8x128xf32>
    %472 = math.tanh %471 : vector<8x128xf32>
    %473 = arith.mulf %468, %472 : vector<8x128xf32>
    %c0_104 = arith.constant 0 : index
    %c0_105 = arith.constant 0 : index
    %474 = vector.load %arg6[%c0_104, %c0_105] : memref<128x128xf32, #tpu.memory_space<vmem>>, vector<128x128xf32>
    %cst_106 = arith.constant dense<0.000000e+00> : vector<8x128xf32>
    %475 = tpu.matmul %473, %474, %cst_106 {dimension_numbers = #tpu.dot_dimension_numbers<[1], [0], [0], [1], [0, 0, 1, 1], [], []>} : vector<8x128xf32>, vector<128x128xf32>, vector<8x128xf32> -> vector<8x128xf32>
    %c0_107 = arith.constant 0 : index
    %c0_108 = arith.constant 0 : index
    %476 = vector.load %arg7[%c0_107, %c0_108] : memref<1x128xf32, #tpu.memory_space<vmem>>, vector<1x128xf32>
    %477 = vector.broadcast %476 : vector<1x128xf32> to vector<8x128xf32>
    %478 = arith.addf %475, %477 : vector<8x128xf32>
    %c0_109 = arith.constant 0 : index
    %c0_110 = arith.constant 0 : index
    %479 = vector.load %arg8[%c0_109, %c0_110] : memref<8x128xf32, #tpu.memory_space<vmem>>, vector<8x128xf32>
    tpu.vector_store %arg8[%c0_109, %c0_110], %478 {strides = array<i32>} : memref<8x128xf32, #tpu.memory_space<vmem>>, vector<8x128xf32>,
    return
  }
}

</mosaic_0001>

<bundles_post_ra>
// kernel: tpu_custom_call.1
= control target key start
LH: loop header
LB: loop body
LE: loop exit
PB: predicated region body
PF: predicated region fallthrough
CT: control target
= control target key end

     0   :  { %13 = vsyncpa [#allocation3], 0  ;;  %s6917_s0 = inlined_call_operand.vmem [shape: f32[64,28], index: 0, kind: input, shape index: {}]   ;;  %s6918_s1 = inlined_call_operand.hbm [shape: f32[28,512], index: 1, kind: input, shape index: {}]   ;;  %s6919_s2 = inlined_call_operand.vmem [shape: f32[1,512], index: 2, kind: input, shape index: {}]   ;;  %s6920_s3 = inlined_call_operand.hbm [shape: f32[128,512], index: 3, kind: input, shape index: {}]   ;;  %s6921_s4 = inlined_call_operand.hbm [shape: f32[256,512], index: 4, kind: input, shape index: {}]   ;;  %s6922_s5 = inlined_call_operand.vmem [shape: f32[1,512], index: 5, kind: input, shape index: {}]   ;;  %s6923_s6 = inlined_call_operand.hbm [shape: f32[128,128], index: 6, kind: input, shape index: {}]   ;;  %s6924_s7 = inlined_call_operand.vmem [shape: f32[1,128], index: 7, kind: input, shape index: {}]   ;;  %s6925_s8 = inlined_call_operand.hbm [shape: f32[8,128], index: 8, kind: output, shape index: {}]  }
   0x1   :  { %14 = vsyncpa [#allocation6], 0 }
   0x2   :  { %15 = vsyncpa [#allocation9], 0 }
   0x3   :  { %16 = vsyncpa [#allocation4], 0  ;;  %s5560_s27 = smov [#allocation5]   ;;  %s5561_s29 = smov [#allocation2]  }
   0x4   :  { %s38_s28 = sshll.u32 %s5560_s27, 4  ;;  %s24_s30 = sshll.u32 %s5561_s29, 4  ;;  %s39_s28 = int_to_ptr.vmem [resolvable:$true] %s38_s28  ;;  %s5618_s30 = int_to_ptr.vmem [resolvable:$true] %s24_s30 }
   0x5   :  { %s5442_s11 = scalar_lea.hbm %s6920_s3, 8192 }
   0x6   :  { %p5443_p0 = scmp.ne.s32.totalorder %s6920_s3, %s5442_s11  ;;  %p5446_p1 = scmp.lt.u32.totalorder %s5442_s11, %s6920_s3 }
   0x8   :  { %p5448_p2 = pnand %p5446_p1, %p5443_p0 }
   0xa   :  { %5451 = shalt.err (!%p5448_p2)
}
   0xb   :  { %s5452_s16 = scalar_lea.vmem %s39_s28, 8192  ;;  %p5457_p4 = scmp.lt.s32.totalorder %s39_s28, %s39_s28 }
   0xc   :  { %p5453_p3 = scmp.ne.s32.totalorder %s39_s28, %s5452_s16  ;;  %p5458_p5 = scmp.lt.s32.totalorder %s5452_s16, %s5452_s16 }
   0xe   :  { %p5459_p6 = por %p5458_p5, %p5457_p4 }
  0x10   :  { %p5460_p7 = pnand %p5459_p6, %p5453_p3 }
  0x12   :  { %5463 = shalt.err (!%p5460_p7)
}
  0x13   :  { %s5562_s17 = smov 512   ;;  %s5563_s18 = smov 32  }
  0x14   :  { %44 = dma.hbm_to_vmem [thread:$0]  %s6920_s3, 8192, %s39_s28, [#allocation6], %s5562_s17, %s5562_s17, %s5563_s18  }
  0x15   :  { %s5464_s23 = scalar_lea.hbm %s6918_s1, 2048 }
  0x16   :  { %p5465_p8 = scmp.ne.s32.totalorder %s6918_s1, %s5464_s23  ;;  %p5468_p9 = scmp.lt.u32.totalorder %s5464_s23, %s6918_s1 }
  0x18   :  { %p5470_p10 = pnand %p5468_p9, %p5465_p8 }
  0x1a   :  { %5473 = shalt.err (!%p5470_p10)
}
  0x1b   :  { %s5474_s29 = scalar_lea.vmem %s5618_s30, 2048  ;;  %p5479_p12 = scmp.lt.s32.totalorder %s5618_s30, %s5618_s30 }
  0x1c   :  { %p5475_p11 = scmp.ne.s32.totalorder %s5618_s30, %s5474_s29  ;;  %p5480_p13 = scmp.lt.s32.totalorder %s5474_s29, %s5474_s29 }
  0x1e   :  { %p5481_p0 = por %p5480_p13, %p5479_p12 }
  0x20   :  { %p5482_p1 = pnand %p5481_p0, %p5475_p11 }
  0x22   :  { %5485 = shalt.err (!%p5482_p1)
}
  0x23   :  { %30 = dma.hbm_to_vmem [thread:$0]  %s6918_s1, 2048, %s5618_s30, [#allocation3], %s5562_s17, %s5562_s17, %s5563_s18  }
  0x24   :  { %s5564_s9 = smov [#allocation7]   ;;  %s5565_s11 = smov [#allocation8]  }
  0x25   :  { %s50_s10 = sshll.u32 %s5564_s9, 4  ;;  %s64_s12 = sshll.u32 %s5565_s11, 4  ;;  %s51_s10 = int_to_ptr.vmem [resolvable:$true] %s50_s10  ;;  %s5655_s12 = int_to_ptr.vmem [resolvable:$true] %s64_s12 }
  0x26   :  { %s5486_s15 = scalar_lea.hbm %s6921_s4, 16384 }
  0x27   :  { %p5487_p2 = scmp.ne.s32.totalorder %s6921_s4, %s5486_s15  ;;  %p5490_p3 = scmp.lt.u32.totalorder %s5486_s15, %s6921_s4 }
  0x29   :  { %p5492_p4 = pnand %p5490_p3, %p5487_p2 }
  0x2b   :  { %5495 = shalt.err (!%p5492_p4)
}
  0x2c   :  { %s5496_s1 = scalar_lea.vmem %s51_s10, 16384  ;;  %p5501_p6 = scmp.lt.s32.totalorder %s51_s10, %s51_s10 }
  0x2d   :  { %p5497_p5 = scmp.ne.s32.totalorder %s51_s10, %s5496_s1  ;;  %p5502_p7 = scmp.lt.s32.totalorder %s5496_s1, %s5496_s1 }
  0x2f   :  { %p5503_p8 = por %p5502_p7, %p5501_p6 }
  0x31   :  { %p5504_p9 = pnand %p5503_p8, %p5497_p5 }
  0x33   :  { %5507 = shalt.err (!%p5504_p9)
}
  0x34   :  { %56 = dma.hbm_to_vmem [thread:$0]  %s6921_s4, 16384, %s51_s10, [#allocation6], %s5562_s17, %s5562_s17, %s5563_s18  }
  0x35   :  { %s5508_s25 = scalar_lea.hbm %s6923_s6, 2048 }
  0x36   :  { %p5509_p10 = scmp.ne.s32.totalorder %s6923_s6, %s5508_s25  ;;  %p5512_p11 = scmp.lt.u32.totalorder %s5508_s25, %s6923_s6 }
  0x38   :  { %p5514_p12 = pnand %p5512_p11, %p5509_p10 }
  0x3a   :  { %5517 = shalt.err (!%p5514_p12)
}
  0x3b   :  { %s5518_s28 = scalar_lea.vmem %s5655_s12, 2048  ;;  %p5523_p0 = scmp.lt.s32.totalorder %s5655_s12, %s5655_s12 }
  0x3c   :  { %p5519_p13 = scmp.ne.s32.totalorder %s5655_s12, %s5518_s28  ;;  %p5524_p1 = scmp.lt.s32.totalorder %s5518_s28, %s5518_s28 }
  0x3e   :  { %p5525_p2 = por %p5524_p1, %p5523_p0 }
  0x40   :  { %p5526_p3 = pnand %p5525_p2, %p5519_p13 }
  0x42   :  { %5529 = shalt.err (!%p5526_p3)
}
  0x43   :  { %s5566_s4 = smov 128   ;;  %s5567_s17 = smov 8  }
  0x44   :  { %70 = dma.hbm_to_vmem [thread:$0]  %s6923_s6, 2048, %s5655_s12, [#allocation9], %s5566_s4, %s5566_s4, %s5567_s17  }
  0x45   :  { %5552 = dma.done.wait [#allocation3], 2048  }
  0x46   :  { %5553 = vsyncadd [#allocation3], 4294965248 }
  0x47   :  { %5554 = dma.done.wait [#allocation6], 24576  }
  0x48   :  { %5555 = vsyncadd [#allocation6], 4294942720 }
  0x49   :  { %5556 = dma.done.wait [#allocation9], 2048  }
  0x4a   :  { %5557 = vsyncadd [#allocation9], 4294965248  ;;  %v6926_v0 = vmov 0.0   ;;  %vm156_vm0 = vcmask 1043456   ;;  %vm5569_vm1 = vmmov 1   ;;  %v94_v2 = vld [vmem:[#allocation2 + $0x8] sm:$0xff] }
  0x4b   :  { %233 = vmatprep.mubr.f32.mxu0 %v6926_v0  ;;  %346 = vmatprep.mubr.f32.mxu1 %v6926_v0  ;;  %vm5691_vm2 = vmpackc.low %vm156_vm0, %vm5569_vm1  ;;  %v98_v3 = vld [vmem:[#allocation2 + $0x28] sm:$0xff]  ;;  %v96_v4 = vld [vmem:[#allocation2 + $0x18] sm:$0xff]  ;;  %vm131_vm3 = vcmask 228352   ;;  %vm5571_vm4 = vmmov 0   ;;  %s5572_s29 = smov [#allocation10]  }
  0x4c   :  { %v3529_v5 = vpack.c.bf16 %v98_v3, %v94_v2  ;;  %v100_v6 = vld [vmem:[#allocation2 + $0x38] sm:$0xff]  ;;  %v93_v7 = vld [vmem:[#allocation2] sm:$0xff]  ;;  %v95_v11 = vld [vmem:[#allocation2 + $0x10] sm:$0xff]  ;;  %s3397_s3 = sshll.u32 %s5572_s29, 4  ;;  %s3398_s3 = int_to_ptr.vmem [resolvable:$true] %s3397_s3 }
  0x4d   :  { %v97_v8 = vld [vmem:[#allocation2 + $0x20] sm:$0xff]  ;;  %v3539_v9 = vpack.c.bf16 %v100_v6, %v96_v4  ;;  %v99_v12 = vld [vmem:[#allocation2 + $0x30] sm:$0xff]  ;;  %v102_v13 = vld [vmem:[#allocation2 + $0x48] sm:$0xff]  ;;  %s5530_s28 = scalar_lea.vmem %s3398_s3, 128  ;;  %p5535_p5 = scmp.lt.s32.totalorder %s3398_s3, %s3398_s3 }
  0x4e   :  { %v3531_v10 = vpack.c.bf16 %v97_v8, %v93_v7  ;;  %3530 = vmatprep.subr.bf16.mxu0 %v3529_v5  ;;  %v3541_v14 = vpack.c.bf16 %v99_v12, %v95_v11  ;;  %v106_v15 = vld [vmem:[#allocation2 + $0x68] sm:$0xf]  ;;  %v104_v16 = vld [vmem:[#allocation2 + $0x58] sm:$0xff]  ;;  %v101_v20 = vld [vmem:[#allocation2 + $0x40] sm:$0xff]  ;;  %p5531_p4 = scmp.ne.s32.totalorder %s3398_s3, %s5530_s28  ;;  %p5536_p6 = scmp.lt.s32.totalorder %s5530_s28, %s5530_s28 }
  0x4f   :  { %v108_v17 = vld [vmem:[#allocation2 + $0x78] sm:$0xf]  ;;  %3540 = vmatprep.subr.bf16.mxu1 %v3539_v9  ;;  %v3533_v18 = vpack.c.bf16 %v106_v15, %v102_v13  ;;  %v105_v21 = vld [vmem:[#allocation2 + $0x60] sm:$0xf]  ;;  %v103_v22 = vld [vmem:[#allocation2 + $0x50] sm:$0xff] }
  0x50   :  { %3532 = vmatpush1.bf16.msra.mxu0 %v3531_v10  ;;  %v3543_v19 = vpack.c.bf16 %v108_v17, %v104_v16  ;;  %3542 = vmatpush1.bf16.msra.mxu1 %v3541_v14  ;;  %v3536_v23 = vpack.c.bf16 %v105_v21, %v101_v20  ;;  %v107_v24 = vld [vmem:[#allocation2 + $0x70] sm:$0xf]  ;;  %v418_v25 = vld [vmem:[#allocation5 + $0x8] sm:$0xff]  ;;  %v420_v28 = vld [vmem:[#allocation5 + $0x18] sm:$0xff]  ;;  %p5537_p7 = por %p5536_p6, %p5535_p5 }
  0x51   :  { %3535 = vmatprep.subr.msk.bf16.mxu0 %vm5691_vm2, %v3533_v18  ;;  %v3546_v26 = vpack.c.bf16 %v107_v24, %v103_v22  ;;  %v422_v27 = vld [vmem:[#allocation5 + $0x28] sm:$0xff]  ;;  %v424_v29 = vld [vmem:[#allocation5 + $0x38] sm:$0xff]  ;;  %v417_v32 = vld [vmem:[#allocation5] sm:$0xff] }
  0x52   :  { %3545 = vmatprep.subr.msk.bf16.mxu1 %vm5691_vm2, %v3543_v19  ;;  %v5699_v30 = vpack.c.bf16 %v422_v27, %v418_v25  ;;  %v5701_v31 = vpack.c.bf16 %v424_v29, %v420_v28  ;;  %v421_v33 = vld [vmem:[#allocation5 + $0x20] sm:$0xff]  ;;  %v419_v34 = vld [vmem:[#allocation5 + $0x10] sm:$0xff]  ;;  %v426_v38 = vld [vmem:[#allocation5 + $0x48] sm:$0xff]  ;;  %p5538_p8 = pnand %p5537_p7, %p5531_p4 }
  0x53   :  { %v85_v35 = vld [vmem:[%s6917_s0] sm:$0xff]  ;;  %v5708_v36 = vpack.c.bf16 %v421_v33, %v417_v32  ;;  %v423_v37 = vld [vmem:[#allocation5 + $0x30] sm:$0xff]  ;;  %v430_v40 = vld [vmem:[#allocation5 + $0x68] sm:$0xff] }
  0x54   :  { %7062 = vst [vmem:[#allocation15_spill] sm:$0xff] %v5699_v30  ;;  %7063 = vst [vmem:[#allocation16_spill] sm:$0xff] %v5701_v31  ;;  %3538 = vmatpush1.bf16.msk.msra.mxu0 %vm5691_vm2, %v3536_v23  ;;  %3548 = vmatpush1.bf16.msk.msra.mxu1 %vm5691_vm2, %v3546_v26  ;;  %v5713_v39 = vpack.c.bf16 %v423_v37, %v419_v34  ;;  %v428_v41 = vld [vmem:[#allocation5 + $0x58] sm:$0xff]  ;;  %v5716_v43 = vpack.c.bf16 %v430_v40, %v426_v38  ;;  %v425_v44 = vld [vmem:[#allocation5 + $0x40] sm:$0xff] }
  0x55   :  { %3550 = vmatprep.subr.bf16.mxu0 %v5699_v30  ;;  %v432_v42 = vld [vmem:[#allocation5 + $0x78] sm:$0xff]  ;;  %3582 = vmatprep.subr.bf16.mxu1 %v5701_v31  ;;  %v429_v45 = vld [vmem:[#allocation5 + $0x60] sm:$0xff]  ;;  %v427_v46 = vld [vmem:[#allocation5 + $0x50] sm:$0xff] }
  0x56   :  { %v86_v47 = vld [vmem:[%s6917_s0 + $0x8] sm:$0xff]  ;;  %v5722_v48 = vpack.c.bf16 %v432_v42, %v428_v41  ;;  %v431_v49 = vld [vmem:[#allocation5 + $0x70] sm:$0xff]  ;;  %v5726_v51 = vpack.c.bf16 %v429_v45, %v425_v44  ;;  %v436_v53 = vld [vmem:[#allocation5 + $0x98] sm:$0xff] }
  0x57   :  { %3410 = vmatmul.mubr.msk.f32.vlgmr.msra.gmra.mrb[0].mxu0 %vm131_vm3, %v85_v35  ;;  %v434_v50 = vld [vmem:[#allocation5 + $0x88] sm:$0xff]  ;;  %3420 = vmatmul.mubr.msk.f32.vlgmr.msra.gmra.mrb[0].mxu1 %vm131_vm3, %v85_v35  ;;  %v440_v54 = vld [vmem:[#allocation5 + $0xb8] sm:$0xff]  ;;  %v5730_v55 = vpack.c.bf16 %v431_v49, %v427_v46  ;;  %v433_v56 = vld [vmem:[#allocation5 + $0x80] sm:$0xff] }
  0x58   :  { %3552 = vmatpush1.bf16.msra.mxu0 %v5708_v36  ;;  %v438_v52 = vld [vmem:[#allocation5 + $0xa8] sm:$0xff]  ;;  %3584 = vmatpush1.bf16.msra.mxu1 %v5713_v39  ;;  %v437_v57 = vld [vmem:[#allocation5 + $0xa0] sm:$0xff]  ;;  %v435_v59 = vld [vmem:[#allocation5 + $0x90] sm:$0xff]  ;;  %v5738_v61 = vpack.c.bf16 %v440_v54, %v436_v53 }
  0x59   :  { %239 = vmatprep.mubr.f32.mxu0 %v6926_v0  ;;  %352 = vmatprep.mubr.f32.mxu1 %v6926_v0  ;;  %v5734_v58 = vpack.c.bf16 %v438_v52, %v434_v50  ;;  %v439_v60 = vld [vmem:[#allocation5 + $0xb0] sm:$0xff]  ;;  %v442_v62 = vld [vmem:[#allocation5 + $0xc8] sm:$0xff]  ;;  %v5745_v2 = vpack.c.bf16 %v437_v57, %v433_v56  ;;  %v444_v3 = vld [vmem:[#allocation5 + $0xd8] sm:$0xff] }
  0x5a   :  { %3554 = vmatprep.subr.bf16.mxu0 %v5716_v43  ;;  %3586 = vmatprep.subr.bf16.mxu1 %v5722_v48  ;;  %v446_v63 = vld [vmem:[#allocation5 + $0xe8] sm:$0xff]  ;;  %v87_v1 = vld [vmem:[%s6917_s0 + $0x10] sm:$0xff]  ;;  %v448_v4 = vld [vmem:[#allocation5 + $0xf8] sm:$0xff]  ;;  %v5749_v5 = vpack.c.bf16 %v439_v60, %v435_v59 }
  0x5b   :  { %3411 = vmatmul.mubr.msk.f32.gmra.mrb[2].mxu0 %vm131_vm3, %v86_v47  ;;  %3421 = vmatmul.mubr.msk.f32.gmra.mrb[2].mxu1 %vm131_vm3, %v86_v47  ;;  %v441_v6 = vld [vmem:[#allocation5 + $0xc0] sm:$0xff]  ;;  %v5753_v8 = vpack.c.bf16 %v446_v63, %v442_v62  ;;  %v443_v9 = vld [vmem:[#allocation5 + $0xd0] sm:$0xff]  ;;  %v5757_v11 = vpack.c.bf16 %v448_v4, %v444_v3  ;;  %v450_v12 = vld [vmem:[#allocation5 + $0x108] sm:$0xff] }
  0x5c   :  { %3556 = vmatpush1.bf16.msra.mxu0 %v5726_v51  ;;  %3588 = vmatpush1.bf16.msra.mxu1 %v5730_v55  ;;  %v445_v7 = vld [vmem:[#allocation5 + $0xe0] sm:$0xff]  ;;  %v447_v10 = vld [vmem:[#allocation5 + $0xf0] sm:$0xff]  ;;  %v454_v13 = vld [vmem:[#allocation5 + $0x128] sm:$0xff] }
  0x5d   :  { %245 = vmatprep.mubr.f32.mxu0 %v6926_v0  ;;  %358 = vmatprep.mubr.f32.mxu1 %v6926_v0  ;;  %v88_v14 = vld [vmem:[%s6917_s0 + $0x18] sm:$0xff]  ;;  %v5764_v15 = vpack.c.bf16 %v445_v7, %v441_v6  ;;  %v5768_v18 = vpack.c.bf16 %v447_v10, %v443_v9  ;;  %v449_v19 = vld [vmem:[#allocation5 + $0x100] sm:$0xff]  ;;  %v5772_v21 = vpack.c.bf16 %v454_v13, %v450_v12  ;;  %v451_v22 = vld [vmem:[#allocation5 + $0x110] sm:$0xff] }
  0x5e   :  { %3558 = vmatprep.subr.bf16.mxu0 %v5734_v58  ;;  %3590 = vmatprep.subr.bf16.mxu1 %v5738_v61  ;;  %v452_v16 = vld [vmem:[#allocation5 + $0x118] sm:$0xff]  ;;  %v453_v20 = vld [vmem:[#allocation5 + $0x120] sm:$0xff]  ;;  %v455_v23 = vld [vmem:[#allocation5 + $0x130] sm:$0xff] }
  0x5f   :  { %3412 = vmatmul.mubr.msk.f32.gmra.mrb[4].mxu0 %vm131_vm3, %v87_v1  ;;  %3422 = vmatmul.mubr.msk.f32.gmra.mrb[4].mxu1 %vm131_vm3, %v87_v1  ;;  %v456_v17 = vld [vmem:[#allocation5 + $0x138] sm:$0xff]  ;;  %v458_v25 = vld [vmem:[#allocation5 + $0x148] sm:$0xff]  ;;  %v89_v27 = vld [vmem:[%s6917_s0 + $0x20] sm:$0xff]  ;;  %v5783_v28 = vpack.c.bf16 %v453_v20, %v449_v19  ;;  %v5787_v33 = vpack.c.bf16 %v455_v23, %v451_v22 }
  0x60   :  { %3560 = vmatpush1.bf16.msra.mxu0 %v5745_v2  ;;  %3592 = vmatpush1.bf16.msra.mxu1 %v5749_v5  ;;  %v5776_v24 = vpack.c.bf16 %v456_v17, %v452_v16  ;;  %v462_v26 = vld [vmem:[#allocation5 + $0x168] sm:$0xff]  ;;  %v460_v29 = vld [vmem:[#allocation5 + $0x158] sm:$0xff]  ;;  %v457_v34 = vld [vmem:[#allocation5 + $0x140] sm:$0xff] }
  0x61   :  { %251 = vmatprep.mubr.f32.mxu0 %v6926_v0  ;;  %364 = vmatprep.mubr.f32.mxu1 %v6926_v0  ;;  %v464_v32 = vld [vmem:[#allocation5 + $0x178] sm:$0xff]  ;;  %v461_v35 = vld [vmem:[#allocation5 + $0x160] sm:$0xff]  ;;  %v5791_v37 = vpack.c.bf16 %v462_v26, %v458_v25  ;;  %v459_v38 = vld [vmem:[#allocation5 + $0x150] sm:$0xff] }
  0x62   :  { %3562 = vmatprep.subr.bf16.mxu0 %v5753_v8  ;;  %3594 = vmatprep.subr.bf16.mxu1 %v5757_v11  ;;  %v463_v40 = vld [vmem:[#allocation5 + $0x170] sm:$0xff]  ;;  %v5795_v41 = vpack.c.bf16 %v464_v32, %v460_v29  ;;  %v466_v42 = vld [vmem:[#allocation5 + $0x188] sm:$0xff]  ;;  %v5802_v46 = vpack.c.bf16 %v461_v35, %v457_v34  ;;  %v468_v47 = vld [vmem:[#allocation5 + $0x198] sm:$0xff] }
  0x63   :  { %3413 = vmatmul.mubr.msk.f32.gmra.mrb[6].mxu0 %vm131_vm3, %v88_v14  ;;  %3423 = vmatmul.mubr.msk.f32.gmra.mrb[6].mxu1 %vm131_vm3, %v88_v14  ;;  %v470_v44 = vld [vmem:[#allocation5 + $0x1a8] sm:$0xff]  ;;  %v472_v49 = vld [vmem:[#allocation5 + $0x1b8] sm:$0xff]  ;;  %v5806_v50 = vpack.c.bf16 %v463_v40, %v459_v38  ;;  %v465_v52 = vld [vmem:[#allocation5 + $0x180] sm:$0xff] }
  0x64   :  { %3564 = vmatpush1.bf16.msra.mxu0 %v5764_v15  ;;  %3596 = vmatpush1.bf16.msra.mxu1 %v5768_v18  ;;  %v90_v45 = vld [vmem:[%s6917_s0 + $0x28] sm:$0xff]  ;;  %v469_v53 = vld [vmem:[#allocation5 + $0x1a0] sm:$0xff]  ;;  %v5810_v54 = vpack.c.bf16 %v470_v44, %v466_v42  ;;  %v467_v56 = vld [vmem:[#allocation5 + $0x190] sm:$0xff]  ;;  %v5814_v59 = vpack.c.bf16 %v472_v49, %v468_v47 }
  0x65   :  { %257 = vmatprep.mubr.f32.mxu0 %v6926_v0  ;;  %370 = vmatprep.mubr.f32.mxu1 %v6926_v0  ;;  %v471_v57 = vld [vmem:[#allocation5 + $0x1b0] sm:$0xff]  ;;  %v474_v60 = vld [vmem:[#allocation5 + $0x1c8] sm:$0xff]  ;;  %v5821_v1 = vpack.c.bf16 %v469_v53, %v465_v52  ;;  %v476_v3 = vld [vmem:[#allocation5 + $0x1d8] sm:$0xff] }
  0x66   :  { %3566 = vmatprep.subr.bf16.mxu0 %v5772_v21  ;;  %3598 = vmatprep.subr.bf16.mxu1 %v5776_v24  ;;  %v478_v62 = vld [vmem:[#allocation5 + $0x1e8] sm:$0xff]  ;;  %v91_v63 = vld [vmem:[%s6917_s0 + $0x30] sm:$0xff]  ;;  %v480_v4 = vld [vmem:[#allocation5 + $0x1f8] sm:$0xff]  ;;  %v5825_v6 = vpack.c.bf16 %v471_v57, %v467_v56 }
  0x67   :  { %3414 = vmatmul.mubr.msk.f32.gmra.mrb[8].mxu0 %vm131_vm3, %v89_v27  ;;  %3424 = vmatmul.mubr.msk.f32.gmra.mrb[8].mxu1 %vm131_vm3, %v89_v27  ;;  %v473_v7 = vld [vmem:[#allocation5 + $0x1c0] sm:$0xff]  ;;  %v5829_v10 = vpack.c.bf16 %v478_v62, %v474_v60  ;;  %v475_v12 = vld [vmem:[#allocation5 + $0x1d0] sm:$0xff]  ;;  %v5833_v14 = vpack.c.bf16 %v480_v4, %v476_v3  ;;  %v652_v16 = vld [vmem:[#allocation7 + $0x8] sm:$0xff] }
  0x68   :  { %3568 = vmatpush1.bf16.msra.mxu0 %v5783_v28  ;;  %3600 = vmatpush1.bf16.msra.mxu1 %v5787_v33  ;;  %v477_v9 = vld [vmem:[#allocation5 + $0x1e0] sm:$0xff]  ;;  %v479_v13 = vld [vmem:[#allocation5 + $0x1f0] sm:$0xff]  ;;  %v656_v17 = vld [vmem:[#allocation7 + $0x28] sm:$0xff] }
  0x69   :  { %263 = vmatprep.mubr.f32.mxu0 %v6926_v0  ;;  %376 = vmatprep.mubr.f32.mxu1 %v6926_v0  ;;  %v92_v19 = vld [vmem:[%s6917_s0 + $0x38] sm:$0xff]  ;;  %v5840_v20 = vpack.c.bf16 %v477_v9, %v473_v7  ;;  %v5844_v25 = vpack.c.bf16 %v479_v13, %v475_v12  ;;  %v651_v26 = vld [vmem:[#allocation7] sm:$0xff]  ;;  %v653_v29 = vld [vmem:[#allocation7 + $0x10] sm:$0xff]  ;;  %v5848_v32 = vpack.c.bf16 %v656_v17, %v652_v16 }
  0x6a   :  { %3570 = vmatprep.subr.bf16.mxu0 %v5791_v37  ;;  %3602 = vmatprep.subr.bf16.mxu1 %v5795_v41  ;;  %v654_v22 = vld [vmem:[#allocation7 + $0x18] sm:$0xff]  ;;  %v655_v27 = vld [vmem:[#allocation7 + $0x20] sm:$0xff]  ;;  %v657_v34 = vld [vmem:[#allocation7 + $0x30] sm:$0xff] }
  0x6b   :  { %3415 = vmatmul.mubr.msk.f32.gmra.mrb[10].mxu0 %vm131_vm3, %v90_v45  ;;  %3425 = vmatmul.mubr.msk.f32.gmra.mrb[10].mxu1 %vm131_vm3, %v90_v45  ;;  %v658_v23 = vld [vmem:[#allocation7 + $0x38] sm:$0xff]  ;;  %v660_v35 = vld [vmem:[#allocation7 + $0x48] sm:$0xff]  ;;  %v5856_v45 = vpack.c.bf16 %v655_v27, %v651_v26  ;;  %v5860_v47 = vpack.c.bf16 %v657_v34, %v653_v29  ;;  %v659_v52 = vld [vmem:[#allocation7 + $0x40] sm:$0xff] }
  0x6c   :  { %3572 = vmatpush1.bf16.msra.mxu0 %v5802_v46  ;;  %3604 = vmatpush1.bf16.msra.mxu1 %v5806_v50  ;;  %v664_v38 = vld [vmem:[#allocation7 + $0x68] sm:$0xff]  ;;  %v5852_v40 = vpack.c.bf16 %v658_v23, %v654_v22  ;;  %v662_v42 = vld [vmem:[#allocation7 + $0x58] sm:$0xff]  ;;  %v663_v53 = vld [vmem:[#allocation7 + $0x60] sm:$0xff] }
  0x6d   :  { %269 = vmatprep.mubr.f32.mxu0 %v6926_v0  ;;  %382 = vmatprep.mubr.f32.mxu1 %v6926_v0  ;;  %v666_v44 = vld [vmem:[#allocation7 + $0x78] sm:$0xff]  ;;  %v5862_v49 = vpack.c.bf16 %v664_v38, %v660_v35  ;;  %v661_v56 = vld [vmem:[#allocation7 + $0x50] sm:$0xff]  ;;  %v668_v62 = vld [vmem:[#allocation7 + $0x88] sm:$0xff]  ;;  %v5872_v7 = vpack.c.bf16 %v663_v53, %v659_v52 }
  0x6e   :  { %3574 = vmatprep.subr.bf16.mxu0 %v5810_v54  ;;  %3606 = vmatprep.subr.bf16.mxu1 %v5814_v59  ;;  %v5866_v57 = vpack.c.bf16 %v666_v44, %v662_v42  ;;  %v665_v60 = vld [vmem:[#allocation7 + $0x70] sm:$0xff]  ;;  %v670_v3 = vld [vmem:[#allocation7 + $0x98] sm:$0xff]  ;;  %v667_v13 = vld [vmem:[#allocation7 + $0x80] sm:$0xff] }
  0x6f   :  { %3416 = vmatmul.mubr.msk.f32.gmra.mrb[12].mxu0 %vm131_vm3, %v91_v63  ;;  %3426 = vmatmul.mubr.msk.f32.gmra.mrb[12].mxu1 %vm131_vm3, %v91_v63  ;;  %v672_v63 = vld [vmem:[#allocation7 + $0xa8] sm:$0xff]  ;;  %v674_v4 = vld [vmem:[#allocation7 + $0xb8] sm:$0xff]  ;;  %v5876_v9 = vpack.c.bf16 %v665_v60, %v661_v56  ;;  %v671_v16 = vld [vmem:[#allocation7 + $0xa0] sm:$0xff] }
  0x70   :  { %3576 = vmatpush1.bf16.msra.mxu0 %v5821_v1  ;;  %3608 = vmatpush1.bf16.msra.mxu1 %v5825_v6  ;;  %v5878_v12 = vpack.c.bf16 %v672_v63, %v668_v62  ;;  %v669_v17 = vld [vmem:[#allocation7 + $0x90] sm:$0xff]  ;;  %v676_v23 = vld [vmem:[#allocation7 + $0xc8] sm:$0xff]  ;;  %v678_v27 = vld [vmem:[#allocation7 + $0xd8] sm:$0xff]  ;;  %v5886_v34 = vpack.c.bf16 %v671_v16, %v667_v13 }
  0x71   :  { %275 = vmatprep.mubr.f32.mxu0 %v6926_v0  ;;  %388 = vmatprep.mubr.f32.mxu1 %v6926_v0  ;;  %v673_v22 = vld [vmem:[#allocation7 + $0xb0] sm:$0xff]  ;;  %v680_v26 = vld [vmem:[#allocation7 + $0xe8] sm:$0xff]  ;;  %v682_v29 = vld [vmem:[#allocation7 + $0xf8] sm:$0xff] }
  0x72   :  { %3578 = vmatprep.subr.bf16.mxu0 %v5829_v10  ;;  %3610 = vmatprep.subr.bf16.mxu1 %v5833_v14  ;;  %7064 = vst [vmem:[#allocation17_spill] sm:$0xff] %v5886_v34  ;;  %v5890_v35 = vpack.c.bf16 %v673_v22, %v669_v17  ;;  %v5892_v38 = vpack.c.bf16 %v680_v26, %v676_v23  ;;  %v675_v42 = vld [vmem:[#allocation7 + $0xc0] sm:$0xff]  ;;  %v677_v52 = vld [vmem:[#allocation7 + $0xd0] sm:$0xff]  ;;  %v684_v60 = vld [vmem:[#allocation7 + $0x108] sm:$0xff] }
  0x73   :  { %3417 = vmatmul.mubr.msk.f32.gmra.mrb[14].mxu0 %vm131_vm3, %v92_v19  ;;  %3427 = vmatmul.mubr.msk.f32.gmra.mrb[14].mxu1 %vm131_vm3, %v92_v19  ;;  %v5881_v19 = vpack.c.bf16 %v674_v4, %v670_v3  ;;  %v679_v44 = vld [vmem:[#allocation7 + $0xe0] sm:$0xff]  ;;  %v5895_v53 = vpack.c.bf16 %v682_v29, %v678_v27  ;;  %v681_v56 = vld [vmem:[#allocation7 + $0xf0] sm:$0xff]  ;;  %v688_v62 = vld [vmem:[#allocation7 + $0x128] sm:$0xff] }
  0x74   :  { %3580 = vmatpush1.bf16.msra.mxu0 %v5840_v20  ;;  %3612 = vmatpush1.bf16.msra.mxu1 %v5844_v25  ;;  %7065 = vst [vmem:[#allocation18_spill] sm:$0xff] %v5890_v35  ;;  %7066 = vst [vmem:[#allocation19_spill] sm:$0xff] %v5892_v38  ;;  %v686_v63 = vld [vmem:[#allocation7 + $0x118] sm:$0xff]  ;;  %v5898_v4 = vpack.c.bf16 %v679_v44, %v675_v42  ;;  %v5902_v13 = vpack.c.bf16 %v681_v56, %v677_v52  ;;  %v683_v17 = vld [vmem:[#allocation7 + $0x100] sm:$0xff] }
  0x75   :  { %545 = vmatprep.mubr.f32.mxu0 %v6926_v0  ;;  %616 = vmatprep.mubr.f32.mxu1 %v6926_v0  ;;  %7067 = vst [vmem:[#allocation20_spill] sm:$0xff] %v5895_v53  ;;  %v690_v3 = vld [vmem:[#allocation7 + $0x138] sm:$0xff]  ;;  %v5904_v16 = vpack.c.bf16 %v688_v62, %v684_v60  ;;  %v687_v22 = vld [vmem:[#allocation7 + $0x120] sm:$0xff]  ;;  %v685_v26 = vld [vmem:[#allocation7 + $0x110] sm:$0xff] }
  0x76   :  { %3614 = vmatprep.subr.bf16.mxu0 %v5848_v32  ;;  %3678 = vmatprep.subr.bf16.mxu1 %v5852_v40  ;;  %7068 = vst [vmem:[#allocation21_spill] sm:$0xff] %v5898_v4  ;;  %7069 = vst [vmem:[#allocation22_spill] sm:$0xff] %v5902_v13  ;;  %v5907_v23 = vpack.c.bf16 %v690_v3, %v686_v63  ;;  %v689_v27 = vld [vmem:[#allocation7 + $0x130] sm:$0xff]  ;;  %v5910_v29 = vpack.c.bf16 %v687_v22, %v683_v17  ;;  %v692_v44 = vld [vmem:[#allocation7 + $0x148] sm:$0xff] }
  0x77   :  { %546 = vmatmul.mubr.f32.vlgmr.msra.gmra.mrb[0].mxu0 %v6926_v0  ;;  %617 = vmatmul.mubr.f32.vlgmr.msra.gmra.mrb[0].mxu1 %v6926_v0  ;;  %7070 = vst [vmem:[#allocation23_spill] sm:$0xff] %v5904_v16  ;;  %v5914_v42 = vpack.c.bf16 %v689_v27, %v685_v26  ;;  %v696_v52 = vld [vmem:[#allocation7 + $0x168] sm:$0xff]  ;;  %v694_v56 = vld [vmem:[#allocation7 + $0x158] sm:$0xff]  ;;  %v691_v63 = vld [vmem:[#allocation7 + $0x140] sm:$0xff] }
  0x78   :  { %3616 = vmatpush1.bf16.msra.mxu0 %v5856_v45  ;;  %3680 = vmatpush1.bf16.msra.mxu1 %v5860_v47  ;;  %7071 = vst [vmem:[#allocation24_spill] sm:$0xff] %v5907_v23  ;;  %7072 = vst [vmem:[#allocation25_spill] sm:$0xff] %v5910_v29  ;;  %v5919_v60 = vpack.c.bf16 %v696_v52, %v692_v44  ;;  %v698_v62 = vld [vmem:[#allocation7 + $0x178] sm:$0xff]  ;;  %v695_v3 = vld [vmem:[#allocation7 + $0x160] sm:$0xff] }
  0x79   :  { %3618 = vmatprep.subr.bf16.mxu0 %v5862_v49  ;;  %3682 = vmatprep.subr.bf16.mxu1 %v5866_v57  ;;  %7073 = vst [vmem:[#allocation26_spill] sm:$0xff] %v5914_v42  ;;  %v5921_v17 = vpack.c.bf16 %v698_v62, %v694_v56  ;;  %v5923_v22 = vpack.c.bf16 %v695_v3, %v691_v63  ;;  %v693_v26 = vld [vmem:[#allocation7 + $0x150] sm:$0xff]  ;;  %v704_v44 = vld [vmem:[#allocation7 + $0x1a8] sm:$0xff]  ;;  %v702_v52 = vld [vmem:[#allocation7 + $0x198] sm:$0xff] }
  0x7a   :  { %843 = vmatprep.mubr.f32.mxu0 %v6926_v0  ;;  %914 = vmatprep.mubr.f32.mxu1 %v6926_v0  ;;  %7074 = vst [vmem:[#allocation27_spill] sm:$0xff] %v5919_v60  ;;  %v697_v27 = vld [vmem:[#allocation7 + $0x170] sm:$0xff]  ;;  %v706_v56 = vld [vmem:[#allocation7 + $0x1b8] sm:$0xff]  ;;  %v699_v62 = vld [vmem:[#allocation7 + $0x180] sm:$0xff] }
  0x7b   :  { %7075 = vst [vmem:[#allocation28_spill] sm:$0xff] %v5921_v17  ;;  %7076 = vst [vmem:[#allocation29_spill] sm:$0xff] %v5923_v22  ;;  %v5926_v0 = vpack.c.bf16 %v697_v27, %v693_v26  ;;  %v703_v63 = vld [vmem:[#allocation7 + $0x1a0] sm:$0xff]  ;;  %v5933_v3 = vpack.c.bf16 %v706_v56, %v702_v52  ;;  %v701_v26 = vld [vmem:[#allocation7 + $0x190] sm:$0xff] }
  0x7c   :  { %3620 = vmatpush1.bf16.msra.mxu0 %v5872_v7  ;;  %3684 = vmatpush1.bf16.msra.mxu1 %v5876_v9  ;;  %v705_v27 = vld [vmem:[#allocation7 + $0x1b0] sm:$0xff]  ;;  %v714_v52 = vld [vmem:[#allocation7 + $0x1f8] sm:$0xff]  ;;  %v707_v56 = vld [vmem:[#allocation7 + $0x1c0] sm:$0xff] }
  0x7d   :  { %3622 = vmatprep.subr.bf16.mxu0 %v5878_v12  ;;  %3686 = vmatprep.subr.bf16.mxu1 %v5881_v19  ;;  %7077 = vst [vmem:[#allocation30_spill] sm:$0xff] %v5926_v0  ;;  %7079 = vst [vmem:[#allocation32_spill] sm:$0xff] %v5933_v3 }
  0x80   :  { %3624 = vmatpush1.bf16.msra.mxu0 %v5886_v34  ;;  %3688 = vmatpush1.bf16.msra.mxu1 %v5890_v35 }
  0x81   :  { %3626 = vmatprep.subr.bf16.mxu0 %v5892_v38  ;;  %3690 = vmatprep.subr.bf16.mxu1 %v5895_v53 }
  0x84   :  { %3628 = vmatpush1.bf16.msra.mxu0 %v5898_v4  ;;  %3692 = vmatpush1.bf16.msra.mxu1 %v5902_v13  ;;  %v770_v13 = vld [vmem:[#allocation7 + $0x3b8] sm:$0xff] }
  0x85   :  { %3630 = vmatprep.subr.bf16.mxu0 %v5904_v16  ;;  %3694 = vmatprep.subr.bf16.mxu1 %v5907_v23  ;;  %v5935_v23 = vpack.c.bf16 %v703_v63, %v699_v62  ;;  %v711_v62 = vld [vmem:[#allocation7 + $0x1e0] sm:$0xff]  ;;  %v766_v16 = vld [vmem:[#allocation7 + $0x398] sm:$0xff] }
  0x87   :  { %7080 = vst [vmem:[#allocation33_spill] sm:$0xff] %v5935_v23 }
  0x88   :  { %3632 = vmatpush1.bf16.msra.mxu0 %v5910_v29  ;;  %3696 = vmatpush1.bf16.msra.mxu1 %v5914_v42  ;;  %v700_v42 = vld [vmem:[#allocation7 + $0x188] sm:$0xff] }
  0x89   :  { %3634 = vmatprep.subr.bf16.mxu0 %v5919_v60  ;;  %3698 = vmatprep.subr.bf16.mxu1 %v5921_v17  ;;  %v5931_v29 = vpack.c.bf16 %v704_v44, %v700_v42  ;;  %v5938_v17 = vpack.c.bf16 %v705_v27, %v701_v26  ;;  %v712_v42 = vld [vmem:[#allocation7 + $0x1e8] sm:$0xff]  ;;  %v710_v44 = vld [vmem:[#allocation7 + $0x1d8] sm:$0xff]  ;;  %v5947_v60 = vpack.c.bf16 %v711_v62, %v707_v56  ;;  %v709_v26 = vld [vmem:[#allocation7 + $0x1d0] sm:$0xff] }
  0x8a   :  { %v5945_v63 = vpack.c.bf16 %v714_v52, %v710_v44  ;;  %v713_v27 = vld [vmem:[#allocation7 + $0x1f0] sm:$0xff]  ;;  %v722_v44 = vld [vmem:[#allocation7 + $0x238] sm:$0xff]  ;;  %v715_v52 = vld [vmem:[#allocation7 + $0x200] sm:$0xff] }
  0x8b   :  { %7078 = vst [vmem:[#allocation31_spill] sm:$0xff] %v5931_v29  ;;  %7081 = vst [vmem:[#allocation34_spill] sm:$0xff] %v5938_v17  ;;  %v719_v56 = vld [vmem:[#allocation7 + $0x220] sm:$0xff] }
  0x8c   :  { %3636 = vmatpush1.bf16.msra.mxu0 %v5923_v22  ;;  %3700 = vmatpush1.bf16.msra.mxu1 %v5926_v0  ;;  %v708_v0 = vld [vmem:[#allocation7 + $0x1c8] sm:$0xff]  ;;  %7083 = vst [vmem:[#allocation36_spill] sm:$0xff] %v5945_v63  ;;  %7084 = vst [vmem:[#allocation37_spill] sm:$0xff] %v5947_v60 }
  0x8d   :  { %3638 = vmatprep.subr.bf16.mxu0 %v5931_v29  ;;  %3702 = vmatprep.subr.bf16.mxu1 %v5933_v3  ;;  %v5943_v22 = vpack.c.bf16 %v712_v42, %v708_v0  ;;  %v5950_v3 = vpack.c.bf16 %v713_v27, %v709_v26  ;;  %v720_v0 = vld [vmem:[#allocation7 + $0x228] sm:$0xff]  ;;  %v718_v42 = vld [vmem:[#allocation7 + $0x218] sm:$0xff]  ;;  %v5959_v29 = vpack.c.bf16 %v719_v56, %v715_v52  ;;  %v717_v26 = vld [vmem:[#allocation7 + $0x210] sm:$0xff] }
  0x8e   :  { %v5957_v62 = vpack.c.bf16 %v722_v44, %v718_v42  ;;  %v721_v27 = vld [vmem:[#allocation7 + $0x230] sm:$0xff]  ;;  %v730_v42 = vld [vmem:[#allocation7 + $0x278] sm:$0xff]  ;;  %v723_v44 = vld [vmem:[#allocation7 + $0x240] sm:$0xff] }
  0x8f   :  { %7082 = vst [vmem:[#allocation35_spill] sm:$0xff] %v5943_v22  ;;  %7085 = vst [vmem:[#allocation38_spill] sm:$0xff] %v5950_v3  ;;  %v727_v52 = vld [vmem:[#allocation7 + $0x260] sm:$0xff] }
  0x90   :  { %3640 = vmatpush1.bf16.msra.mxu0 %v5935_v23  ;;  %3704 = vmatpush1.bf16.msra.mxu1 %v5938_v17  ;;  %v716_v17 = vld [vmem:[#allocation7 + $0x208] sm:$0xff]  ;;  %7087 = vst [vmem:[#allocation40_spill] sm:$0xff] %v5957_v62  ;;  %7088 = vst [vmem:[#allocation41_spill] sm:$0xff] %v5959_v29 }
  0x91   :  { %3642 = vmatprep.subr.bf16.mxu0 %v5943_v22  ;;  %3706 = vmatprep.subr.bf16.mxu1 %v5945_v63  ;;  %v5955_v23 = vpack.c.bf16 %v720_v0, %v716_v17  ;;  %v5962_v63 = vpack.c.bf16 %v721_v27, %v717_v26  ;;  %v728_v17 = vld [vmem:[#allocation7 + $0x268] sm:$0xff]  ;;  %v726_v0 = vld [vmem:[#allocation7 + $0x258] sm:$0xff]  ;;  %v5971_v22 = vpack.c.bf16 %v727_v52, %v723_v44  ;;  %v725_v26 = vld [vmem:[#allocation7 + $0x250] sm:$0xff] }
  0x92   :  { %v5969_v56 = vpack.c.bf16 %v730_v42, %v726_v0  ;;  %v729_v27 = vld [vmem:[#allocation7 + $0x270] sm:$0xff]  ;;  %v738_v0 = vld [vmem:[#allocation7 + $0x2b8] sm:$0xff]  ;;  %v731_v42 = vld [vmem:[#allocation7 + $0x280] sm:$0xff] }
  0x93   :  { %7086 = vst [vmem:[#allocation39_spill] sm:$0xff] %v5955_v23  ;;  %7089 = vst [vmem:[#allocation42_spill] sm:$0xff] %v5962_v63  ;;  %v735_v44 = vld [vmem:[#allocation7 + $0x2a0] sm:$0xff] }
  0x94   :  { %3644 = vmatpush1.bf16.msra.mxu0 %v5947_v60  ;;  %3708 = vmatpush1.bf16.msra.mxu1 %v5950_v3  ;;  %v724_v3 = vld [vmem:[#allocation7 + $0x248] sm:$0xff]  ;;  %7091 = vst [vmem:[#allocation44_spill] sm:$0xff] %v5969_v56  ;;  %7092 = vst [vmem:[#allocation45_spill] sm:$0xff] %v5971_v22 }
  0x95   :  { %3646 = vmatprep.subr.bf16.mxu0 %v5955_v23  ;;  %3710 = vmatprep.subr.bf16.mxu1 %v5957_v62  ;;  %v5967_v60 = vpack.c.bf16 %v728_v17, %v724_v3  ;;  %v5974_v62 = vpack.c.bf16 %v729_v27, %v725_v26  ;;  %v736_v3 = vld [vmem:[#allocation7 + $0x2a8] sm:$0xff]  ;;  %v734_v17 = vld [vmem:[#allocation7 + $0x298] sm:$0xff]  ;;  %v5983_v23 = vpack.c.bf16 %v735_v44, %v731_v42  ;;  %v733_v26 = vld [vmem:[#allocation7 + $0x290] sm:$0xff] }
  0x96   :  { %v5981_v52 = vpack.c.bf16 %v738_v0, %v734_v17  ;;  %v737_v27 = vld [vmem:[#allocation7 + $0x2b0] sm:$0xff]  ;;  %v746_v17 = vld [vmem:[#allocation7 + $0x2f8] sm:$0xff]  ;;  %v739_v0 = vld [vmem:[#allocation7 + $0x2c0] sm:$0xff] }
  0x97   :  { %7090 = vst [vmem:[#allocation43_spill] sm:$0xff] %v5967_v60  ;;  %7093 = vst [vmem:[#allocation46_spill] sm:$0xff] %v5974_v62  ;;  %v743_v42 = vld [vmem:[#allocation7 + $0x2e0] sm:$0xff] }
  0x98   :  { %3648 = vmatpush1.bf16.msra.mxu0 %v5959_v29  ;;  %3712 = vmatpush1.bf16.msra.mxu1 %v5962_v63  ;;  %v732_v63 = vld [vmem:[#allocation7 + $0x288] sm:$0xff]  ;;  %7095 = vst [vmem:[#allocation48_spill] sm:$0xff] %v5981_v52  ;;  %7096 = vst [vmem:[#allocation49_spill] sm:$0xff] %v5983_v23 }
  0x99   :  { %3650 = vmatprep.subr.bf16.mxu0 %v5967_v60  ;;  %3714 = vmatprep.subr.bf16.mxu1 %v5969_v56  ;;  %v5979_v29 = vpack.c.bf16 %v736_v3, %v732_v63  ;;  %v5986_v56 = vpack.c.bf16 %v737_v27, %v733_v26  ;;  %v744_v63 = vld [vmem:[#allocation7 + $0x2e8] sm:$0xff]  ;;  %v742_v3 = vld [vmem:[#allocation7 + $0x2d8] sm:$0xff]  ;;  %v5995_v60 = vpack.c.bf16 %v743_v42, %v739_v0  ;;  %v741_v26 = vld [vmem:[#allocation7 + $0x2d0] sm:$0xff] }
  0x9a   :  { %v5993_v44 = vpack.c.bf16 %v746_v17, %v742_v3  ;;  %v745_v27 = vld [vmem:[#allocation7 + $0x2f0] sm:$0xff]  ;;  %v754_v3 = vld [vmem:[#allocation7 + $0x338] sm:$0xff]  ;;  %v747_v17 = vld [vmem:[#allocation7 + $0x300] sm:$0xff] }
  0x9b   :  { %7094 = vst [vmem:[#allocation47_spill] sm:$0xff] %v5979_v29  ;;  %7097 = vst [vmem:[#allocation50_spill] sm:$0xff] %v5986_v56  ;;  %v751_v0 = vld [vmem:[#allocation7 + $0x320] sm:$0xff] }
  0x9c   :  { %3652 = vmatpush1.bf16.msra.mxu0 %v5971_v22  ;;  %3716 = vmatpush1.bf16.msra.mxu1 %v5974_v62  ;;  %v740_v62 = vld [vmem:[#allocation7 + $0x2c8] sm:$0xff]  ;;  %7099 = vst [vmem:[#allocation52_spill] sm:$0xff] %v5993_v44  ;;  %7100 = vst [vmem:[#allocation53_spill] sm:$0xff] %v5995_v60 }
  0x9d   :  { %3654 = vmatprep.subr.bf16.mxu0 %v5979_v29  ;;  %3718 = vmatprep.subr.bf16.mxu1 %v5981_v52  ;;  %v5991_v22 = vpack.c.bf16 %v744_v63, %v740_v62  ;;  %v5998_v52 = vpack.c.bf16 %v745_v27, %v741_v26  ;;  %v752_v62 = vld [vmem:[#allocation7 + $0x328] sm:$0xff]  ;;  %v750_v63 = vld [vmem:[#allocation7 + $0x318] sm:$0xff]  ;;  %v6007_v29 = vpack.c.bf16 %v751_v0, %v747_v17  ;;  %v749_v26 = vld [vmem:[#allocation7 + $0x310] sm:$0xff] }
  0x9e   :  { %v6005_v42 = vpack.c.bf16 %v754_v3, %v750_v63  ;;  %v753_v27 = vld [vmem:[#allocation7 + $0x330] sm:$0xff]  ;;  %v762_v63 = vld [vmem:[#allocation7 + $0x378] sm:$0xff]  ;;  %v755_v3 = vld [vmem:[#allocation7 + $0x340] sm:$0xff] }
  0x9f   :  { %7098 = vst [vmem:[#allocation51_spill] sm:$0xff] %v5991_v22  ;;  %7101 = vst [vmem:[#allocation54_spill] sm:$0xff] %v5998_v52  ;;  %v759_v17 = vld [vmem:[#allocation7 + $0x360] sm:$0xff] }
  0xa0   :  { %3656 = vmatpush1.bf16.msra.mxu0 %v5983_v23  ;;  %3720 = vmatpush1.bf16.msra.mxu1 %v5986_v56  ;;  %v748_v56 = vld [vmem:[#allocation7 + $0x308] sm:$0xff]  ;;  %7103 = vst [vmem:[#allocation56_spill] sm:$0xff] %v6005_v42  ;;  %7104 = vst [vmem:[#allocation57_spill] sm:$0xff] %v6007_v29 }
  0xa1   :  { %3658 = vmatprep.subr.bf16.mxu0 %v5991_v22  ;;  %3722 = vmatprep.subr.bf16.mxu1 %v5993_v44  ;;  %v6003_v23 = vpack.c.bf16 %v752_v62, %v748_v56  ;;  %v6010_v44 = vpack.c.bf16 %v753_v27, %v749_v26  ;;  %v760_v56 = vld [vmem:[#allocation7 + $0x368] sm:$0xff]  ;;  %v758_v62 = vld [vmem:[#allocation7 + $0x358] sm:$0xff]  ;;  %v6019_v22 = vpack.c.bf16 %v759_v17, %v755_v3  ;;  %v757_v26 = vld [vmem:[#allocation7 + $0x350] sm:$0xff] }
  0xa2   :  { %v6017_v0 = vpack.c.bf16 %v762_v63, %v758_v62  ;;  %v761_v27 = vld [vmem:[#allocation7 + $0x370] sm:$0xff]  ;;  %v763_v62 = vld [vmem:[#allocation7 + $0x380] sm:$0xff] }
  0xa3   :  { %7102 = vst [vmem:[#allocation55_spill] sm:$0xff] %v6003_v23  ;;  %7105 = vst [vmem:[#allocation58_spill] sm:$0xff] %v6010_v44  ;;  %v767_v63 = vld [vmem:[#allocation7 + $0x3a0] sm:$0xff]  ;;  %v765_v3 = vld [vmem:[#allocation7 + $0x390] sm:$0xff] }
  0xa4   :  { %3660 = vmatpush1.bf16.msra.mxu0 %v5995_v60  ;;  %3724 = vmatpush1.bf16.msra.mxu1 %v5998_v52  ;;  %v756_v52 = vld [vmem:[#allocation7 + $0x348] sm:$0xff]  ;;  %7107 = vst [vmem:[#allocation60_spill] sm:$0xff] %v6017_v0  ;;  %7108 = vst [vmem:[#allocation61_spill] sm:$0xff] %v6019_v22  ;;  %v6031_v17 = vpack.c.bf16 %v767_v63, %v763_v62  ;;  %v777_v62 = vld [vmem:[#allocation7 + $0x3f0] sm:$0xff] }
  0xa5   :  { %3662 = vmatprep.subr.bf16.mxu0 %v6003_v23  ;;  %3726 = vmatprep.subr.bf16.mxu1 %v6005_v42  ;;  %v6015_v60 = vpack.c.bf16 %v760_v56, %v756_v52  ;;  %v764_v23 = vld [vmem:[#allocation7 + $0x388] sm:$0xff]  ;;  %v6028_v56 = vpack.c.bf16 %v770_v13, %v766_v16  ;;  %v774_v13 = vld [vmem:[#allocation7 + $0x3d8] sm:$0xff] }
  0xa6   :  { %v768_v42 = vld [vmem:[#allocation7 + $0x3a8] sm:$0xff]  ;;  %7112 = vst [vmem:[#allocation65_spill] sm:$0xff] %v6031_v17  ;;  %v778_v16 = vld [vmem:[#allocation7 + $0x3f8] sm:$0xff] }
  0xa7   :  { %7106 = vst [vmem:[#allocation59_spill] sm:$0xff] %v6015_v60  ;;  %v6026_v52 = vpack.c.bf16 %v768_v42, %v764_v23  ;;  %7111 = vst [vmem:[#allocation64_spill] sm:$0xff] %v6028_v56  ;;  %v771_v42 = vld [vmem:[#allocation7 + $0x3c0] sm:$0xff] }
  0xa8   :  { %3664 = vmatpush1.bf16.msra.mxu0 %v6007_v29  ;;  %3728 = vmatpush1.bf16.msra.mxu1 %v6010_v44  ;;  %v6022_v29 = vpack.c.bf16 %v761_v27, %v757_v26  ;;  %v769_v26 = vld [vmem:[#allocation7 + $0x3b0] sm:$0xff]  ;;  %v772_v27 = vld [vmem:[#allocation7 + $0x3c8] sm:$0xff]  ;;  %v775_v44 = vld [vmem:[#allocation7 + $0x3e0] sm:$0xff] }
  0xa9   :  { %3666 = vmatprep.subr.bf16.mxu0 %v6015_v60  ;;  %3730 = vmatprep.subr.bf16.mxu1 %v6017_v0  ;;  %7110 = vst [vmem:[#allocation63_spill] sm:$0xff] %v6026_v52  ;;  %v776_v60 = vld [vmem:[#allocation7 + $0x3e8] sm:$0xff]  ;;  %v6035_v0 = vpack.c.bf16 %v769_v26, %v765_v3  ;;  %v6042_v63 = vpack.c.bf16 %v775_v44, %v771_v42 }
  0xaa   :  { %7109 = vst [vmem:[#allocation62_spill] sm:$0xff] %v6022_v29  ;;  %v6037_v23 = vpack.c.bf16 %v776_v60, %v772_v27  ;;  %v111_v60 = vlaneseq }
  0xab   :  { %7113 = vst [vmem:[#allocation66_spill] sm:$0xff] %v6035_v0  ;;  %7116 = vst [vmem:[#allocation69_spill] sm:$0xff] %v6042_v63 }
  0xac   :  { %3668 = vmatpush1.bf16.msra.mxu0 %v6019_v22  ;;  %3732 = vmatpush1.bf16.msra.mxu1 %v6022_v29  ;;  %7114 = vst [vmem:[#allocation67_spill] sm:$0xff] %v6037_v23  ;;  %v6039_v22 = vpack.c.bf16 %v778_v16, %v774_v13  ;;  %v773_v29 = vld [vmem:[#allocation7 + $0x3d0] sm:$0xff]  ;;  %v6053_v26 = vshrl.u32 %v111_v60, 7 }
  0xad   :  { %3670 = vmatprep.subr.bf16.mxu0 %v6026_v52  ;;  %3734 = vmatprep.subr.bf16.mxu1 %v6028_v56  ;;  %v6046_v3 = vpack.c.bf16 %v777_v62, %v773_v29  ;;  %v109_v29 = vld [vmem:[%s6919_s2] sm:$0xf] }
  0xae   :  { %7115 = vst [vmem:[#allocation68_spill] sm:$0xff] %v6039_v22  ;;  %7118 = vst [vmem:[#allocation71_spill] sm:$0xff] %v6053_v26  ;;  %v7022_v44 = vsub.s32 0, %v6053_v26  ;;  %v7023_v27 = vsub.s32 1, %v6053_v26  ;;  %v7030_v62 = vsub.s32 3, %v6053_v26 }
  0xaf   :  { %7117 = vst [vmem:[#allocation70_spill] sm:$0xff] %v6046_v3 }
  0xb0   :  { %3672 = vmatpush1.bf16.msra.mxu0 %v6031_v17  ;;  %3736 = vmatpush1.bf16.msra.mxu1 %v6035_v0  ;;  %v6062_v13 = vrot.slane %v109_v29, %v7022_v44  ;;  %v6066_v16 = vrot.slane %v109_v29, %v7023_v27  ;;  %v6073_v44 = vrot.slane %v109_v29, %v7030_v62  ;;  %v7039_v27 = vsub.s32 2, %v6053_v26 }
  0xb1   :  { %3674 = vmatprep.subr.bf16.mxu0 %v6037_v23  ;;  %3738 = vmatprep.subr.bf16.mxu1 %v6039_v22 }
  0xb2   :  { %7119 = vst [vmem:[#allocation72_spill] sm:$0xff] %v6062_v13  ;;  %7120 = vst [vmem:[#allocation73_spill] sm:$0xff] %v6066_v16 }
  0xb3   :  { %7121 = vst [vmem:[#allocation74_spill] sm:$0xff] %v6073_v44 }
  0xb4   :  { %3676 = vmatpush1.bf16.msra.mxu0 %v6042_v63  ;;  %3740 = vmatpush1.bf16.msra.mxu1 %v6046_v3 }
  0xb5   :  { %3742 = vmatprep.subr.bf16.mxu0 %v5699_v30  ;;  %3774 = vmatprep.subr.bf16.mxu1 %v5701_v31 }
 0x14a   :  { %v547_v42 = vpop.f32.mrb[0].mxu0  ;;  %v618_v31 = vpop.f32.mrb[0].mxu1 }
 0x14b   :  { %v5109_v60 = vadd.f32 %v547_v42, %v6062_v13  ;;  %v549_v30 = vpop.f32.mrb[1].mxu0  ;;  %v620_v63 = vpop.f32.mrb[1].mxu1  ;;  %v6079_v42 = vrot.slane %v109_v29, %v7039_v27  ;;  %v7137_v27 = vld [vmem:[#allocation36_spill] sm:$0xff] }
 0x14c   :  { %v5110_v3 = vadd.f32 %v549_v30, %v6066_v16  ;;  %v5126_v0 = vadd.f32 %v620_v63, %v6073_v44 }
 0x14d   :  { %v3428_v22 = vmul.f32 -1.442695, %v5109_v60  ;;  %v5125_v30 = vadd.f32 %v618_v31, %v6079_v42 }
 0x14e   :  { %v3429_v23 = vmul.f32 -1.442695, %v5110_v3  ;;  %v3430_v13 = vmul.f32 -1.442695, %v5126_v0 }
 0x14f   :  { %5186 = vpow2.f32 %v3428_v22 }
 0x150   :  { %5188 = vpow2.f32 %v3429_v23 }
 0x151   :  { %5190 = vpow2.f32 %v3430_v13  ;;  %v7126_v13 = vld [vmem:[#allocation25_spill] sm:$0xff] }
 0x152   :  { %5192 = vtanh.f32 %v5125_v30  ;;  %v7128_v30 = vld [vmem:[#allocation27_spill] sm:$0xff] }
 0x159   :  { %v5187_v16 = vpop.eup %5186 }
 0x15a   :  { %v5189_v60 = vpop.eup %5188  ;;  %v630_v3 = vadd.f32 1.0, %v5187_v16 }
 0x15b   :  { %v636_v62 = vadd.f32 1.0, %v5189_v60  ;;  %v5191_v22 = vpop.eup %5190  ;;  %v7129_v60 = vld [vmem:[#allocation28_spill] sm:$0xff] }
 0x15c   :  { %5194 = vrcp.f32 %v630_v3  ;;  %v5193_v17 = vpop.eup %5192  ;;  %v643_v44 = vadd.f32 1.0, %v5191_v22  ;;  %v7130_v3 = vld [vmem:[#allocation29_spill] sm:$0xff]  ;;  %v7131_v22 = vld [vmem:[#allocation30_spill] sm:$0xff] }
 0x15d   :  { %5196 = vrcp.f32 %v636_v62  ;;  %v7127_v62 = vld [vmem:[#allocation26_spill] sm:$0xff] }
 0x15e   :  { %5198 = vrcp.f32 %v643_v44  ;;  %v7125_v44 = vld [vmem:[#allocation24_spill] sm:$0xff] }
 0x166   :  { %v5195_v23 = vpop.eup %5194 }
 0x167   :  { %v5197_v56 = vpop.eup %5196  ;;  %v647_v63 = vmul.f32 %v5195_v23, %v5193_v17  ;;  %v7122_v17 = vmov 0.0   ;;  %v7132_v23 = vld [vmem:[#allocation31_spill] sm:$0xff] }
 0x168   :  { %v646_v26 = vmul.f32 0.0, %v5197_v56  ;;  %v5199_v31 = vpop.eup %5198  ;;  %v7123_v56 = vld [vmem:[#allocation22_spill] sm:$0xff] }
 0x16a   :  { %v6082_v29 = vadd.f32 %v647_v63, %v646_v26  ;;  %v7124_v26 = vld [vmem:[#allocation23_spill] sm:$0xff]  ;;  %v7133_v63 = vld [vmem:[#allocation32_spill] sm:$0xff] }
 0x16c   :  { %5200 = vtanh.f32 %v6082_v29 }
 0x176   :  { %v5201_v0 = vpop.eup %5200 }
 0x177   :  { %v650_v16 = vmul.f32 %v5201_v0, %v5199_v31  ;;  %v7134_v31 = vld [vmem:[#allocation33_spill] sm:$0xff]  ;;  %v7135_v0 = vld [vmem:[#allocation34_spill] sm:$0xff] }
 0x179   :  { %844 = vmatmul.mubr.f32.vlgmr.msra.gmra.mrb[16].mxu0 %v650_v16  ;;  %915 = vmatmul.mubr.f32.vlgmr.msra.gmra.mrb[16].mxu1 %v650_v16 }
 0x17a   :  { %3744 = vmatpush1.bf16.msra.mxu0 %v5708_v36  ;;  %3776 = vmatpush1.bf16.msra.mxu1 %v5713_v39 }
 0x17b   :  { %3746 = vmatprep.subr.bf16.mxu0 %v5716_v43  ;;  %3778 = vmatprep.subr.bf16.mxu1 %v5722_v48 }
 0x17c   :  { %1009 = vmatprep.mubr.f32.mxu0 %v7122_v17  ;;  %1080 = vmatprep.mubr.f32.mxu1 %v7122_v17 }
 0x17e   :  { %3748 = vmatpush1.bf16.msra.mxu0 %v5726_v51  ;;  %3780 = vmatpush1.bf16.msra.mxu1 %v5730_v55 }
 0x17f   :  { %3750 = vmatprep.subr.bf16.mxu0 %v5734_v58  ;;  %3782 = vmatprep.subr.bf16.mxu1 %v5738_v61 }
 0x182   :  { %3752 = vmatpush1.bf16.msra.mxu0 %v5745_v2  ;;  %3784 = vmatpush1.bf16.msra.mxu1 %v5749_v5 }
 0x183   :  { %3754 = vmatprep.subr.bf16.mxu0 %v5753_v8  ;;  %3786 = vmatprep.subr.bf16.mxu1 %v5757_v11 }
 0x186   :  { %3756 = vmatpush1.bf16.msra.mxu0 %v5764_v15  ;;  %3788 = vmatpush1.bf16.msra.mxu1 %v5768_v18 }
 0x187   :  { %3758 = vmatprep.subr.bf16.mxu0 %v5772_v21  ;;  %3790 = vmatprep.subr.bf16.mxu1 %v5776_v24 }
 0x18a   :  { %3760 = vmatpush1.bf16.msra.mxu0 %v5783_v28  ;;  %3792 = vmatpush1.bf16.msra.mxu1 %v5787_v33 }
 0x18b   :  { %3762 = vmatprep.subr.bf16.mxu0 %v5791_v37  ;;  %3794 = vmatprep.subr.bf16.mxu1 %v5795_v41 }
 0x18e   :  { %3764 = vmatpush1.bf16.msra.mxu0 %v5802_v46  ;;  %3796 = vmatpush1.bf16.msra.mxu1 %v5806_v50 }
 0x18f   :  { %3766 = vmatprep.subr.bf16.mxu0 %v5810_v54  ;;  %3798 = vmatprep.subr.bf16.mxu1 %v5814_v59 }
 0x192   :  { %3768 = vmatpush1.bf16.msra.mxu0 %v5821_v1  ;;  %3800 = vmatpush1.bf16.msra.mxu1 %v5825_v6 }
 0x193   :  { %3770 = vmatprep.subr.bf16.mxu0 %v5829_v10  ;;  %3802 = vmatprep.subr.bf16.mxu1 %v5833_v14 }
 0x196   :  { %3772 = vmatpush1.bf16.msra.mxu0 %v5840_v20  ;;  %3804 = vmatpush1.bf16.msra.mxu1 %v5844_v25 }
 0x197   :  { %3806 = vmatprep.subr.bf16.mxu0 %v5848_v32  ;;  %3870 = vmatprep.subr.bf16.mxu1 %v5852_v40 }
 0x199   :  { %1010 = vmatmul.mubr.f32.vlgmr.msra.gmra.mrb[2].mxu0 %v650_v16  ;;  %1081 = vmatmul.mubr.f32.vlgmr.msra.gmra.mrb[2].mxu1 %v650_v16  ;;  %v7136_v16 = vld [vmem:[#allocation35_spill] sm:$0xff] }
 0x19a   :  { %3808 = vmatpush1.bf16.msra.mxu0 %v5856_v45  ;;  %3872 = vmatpush1.bf16.msra.mxu1 %v5860_v47 }
 0x19b   :  { %3810 = vmatprep.subr.bf16.mxu0 %v5862_v49  ;;  %3874 = vmatprep.subr.bf16.mxu1 %v5866_v57 }
 0x19e   :  { %3812 = vmatpush1.bf16.msra.mxu0 %v5872_v7  ;;  %3876 = vmatpush1.bf16.msra.mxu1 %v5876_v9 }
 0x19f   :  { %3814 = vmatprep.subr.bf16.mxu0 %v5878_v12  ;;  %3878 = vmatprep.subr.bf16.mxu1 %v5881_v19 }
 0x1a2   :  { %3816 = vmatpush1.bf16.msra.mxu0 %v5886_v34  ;;  %3880 = vmatpush1.bf16.msra.mxu1 %v5890_v35 }
 0x1a3   :  { %3818 = vmatprep.subr.bf16.mxu0 %v5892_v38  ;;  %3882 = vmatprep.subr.bf16.mxu1 %v5895_v53 }
 0x1a6   :  { %3820 = vmatpush1.bf16.msra.mxu0 %v5898_v4  ;;  %3884 = vmatpush1.bf16.msra.mxu1 %v7123_v56 }
 0x1a7   :  { %3822 = vmatprep.subr.bf16.mxu0 %v7124_v26  ;;  %3886 = vmatprep.subr.bf16.mxu1 %v7125_v44 }
 0x1aa   :  { %3824 = vmatpush1.bf16.msra.mxu0 %v7126_v13  ;;  %3888 = vmatpush1.bf16.msra.mxu1 %v7127_v62  ;;  %v7138_v62 = vld [vmem:[#allocation37_spill] sm:$0xff] }
 0x1ab   :  { %3826 = vmatprep.subr.bf16.mxu0 %v7128_v30  ;;  %3890 = vmatprep.subr.bf16.mxu1 %v7129_v60  ;;  %v7139_v30 = vld [vmem:[#allocation38_spill] sm:$0xff]  ;;  %v7140_v60 = vld [vmem:[#allocation39_spill] sm:$0xff] }
 0x1ae   :  { %3828 = vmatpush1.bf16.msra.mxu0 %v7130_v3  ;;  %3892 = vmatpush1.bf16.msra.mxu1 %v7131_v22  ;;  %v7141_v3 = vld [vmem:[#allocation40_spill] sm:$0xff]  ;;  %v7142_v22 = vld [vmem:[#allocation41_spill] sm:$0xff] }
 0x1af   :  { %3830 = vmatprep.subr.bf16.mxu0 %v7132_v23  ;;  %3894 = vmatprep.subr.bf16.mxu1 %v7133_v63  ;;  %v7143_v23 = vld [vmem:[#allocation42_spill] sm:$0xff]  ;;  %v7144_v63 = vld [vmem:[#allocation43_spill] sm:$0xff] }
 0x1b2   :  { %3832 = vmatpush1.bf16.msra.mxu0 %v7134_v31  ;;  %3896 = vmatpush1.bf16.msra.mxu1 %v7135_v0  ;;  %v7145_v31 = vld [vmem:[#allocation44_spill] sm:$0xff]  ;;  %v7146_v0 = vld [vmem:[#allocation45_spill] sm:$0xff] }
 0x1b3   :  { %3834 = vmatprep.subr.bf16.mxu0 %v7136_v16  ;;  %3898 = vmatprep.subr.bf16.mxu1 %v7137_v27  ;;  %v7147_v16 = vld [vmem:[#allocation46_spill] sm:$0xff]  ;;  %v7148_v27 = vld [vmem:[#allocation47_spill] sm:$0xff] }
 0x1b6   :  { %3836 = vmatpush1.bf16.msra.mxu0 %v7138_v62  ;;  %3900 = vmatpush1.bf16.msra.mxu1 %v7139_v30  ;;  %v7149_v62 = vld [vmem:[#allocation48_spill] sm:$0xff]  ;;  %v7150_v30 = vld [vmem:[#allocation49_spill] sm:$0xff] }
 0x1b7   :  { %3838 = vmatprep.subr.bf16.mxu0 %v7140_v60  ;;  %3902 = vmatprep.subr.bf16.mxu1 %v7141_v3  ;;  %v7151_v60 = vld [vmem:[#allocation50_spill] sm:$0xff]  ;;  %v7152_v3 = vld [vmem:[#allocation51_spill] sm:$0xff] }
 0x1ba   :  { %3840 = vmatpush1.bf16.msra.mxu0 %v7142_v22  ;;  %3904 = vmatpush1.bf16.msra.mxu1 %v7143_v23  ;;  %v7153_v22 = vld [vmem:[#allocation52_spill] sm:$0xff]  ;;  %v7154_v23 = vld [vmem:[#allocation53_spill] sm:$0xff] }
 0x1bb   :  { %3842 = vmatprep.subr.bf16.mxu0 %v7144_v63  ;;  %3906 = vmatprep.subr.bf16.mxu1 %v7145_v31  ;;  %v7155_v63 = vld [vmem:[#allocation54_spill] sm:$0xff]  ;;  %v7156_v31 = vld [vmem:[#allocation55_spill] sm:$0xff] }
 0x1be   :  { %3844 = vmatpush1.bf16.msra.mxu0 %v7146_v0  ;;  %3908 = vmatpush1.bf16.msra.mxu1 %v7147_v16  ;;  %v7157_v0 = vld [vmem:[#allocation56_spill] sm:$0xff]  ;;  %v7158_v16 = vld [vmem:[#allocation57_spill] sm:$0xff] }
 0x1bf   :  { %3846 = vmatprep.subr.bf16.mxu0 %v7148_v27  ;;  %3910 = vmatprep.subr.bf16.mxu1 %v7149_v62  ;;  %v7159_v27 = vld [vmem:[#allocation58_spill] sm:$0xff]  ;;  %v7160_v62 = vld [vmem:[#allocation59_spill] sm:$0xff] }
 0x1c2   :  { %3848 = vmatpush1.bf16.msra.mxu0 %v7150_v30  ;;  %3912 = vmatpush1.bf16.msra.mxu1 %v7151_v60  ;;  %v7161_v30 = vld [vmem:[#allocation60_spill] sm:$0xff]  ;;  %v7162_v60 = vld [vmem:[#allocation61_spill] sm:$0xff] }
 0x1c3   :  { %3850 = vmatprep.subr.bf16.mxu0 %v7152_v3  ;;  %3914 = vmatprep.subr.bf16.mxu1 %v7153_v22  ;;  %v7163_v3 = vld [vmem:[#allocation62_spill] sm:$0xff] }
 0x1c6   :  { %3852 = vmatpush1.bf16.msra.mxu0 %v7154_v23  ;;  %3916 = vmatpush1.bf16.msra.mxu1 %v7155_v63  ;;  %v7164_v23 = vld [vmem:[#allocation64_spill] sm:$0xff]  ;;  %v7165_v63 = vld [vmem:[#allocation65_spill] sm:$0xff] }
 0x1c7   :  { %3854 = vmatprep.subr.bf16.mxu0 %v7156_v31  ;;  %3918 = vmatprep.subr.bf16.mxu1 %v7157_v0  ;;  %v7166_v31 = vld [vmem:[#allocation66_spill] sm:$0xff]  ;;  %v7167_v0 = vld [vmem:[#allocation67_spill] sm:$0xff] }
 0x1ca   :  { %3856 = vmatpush1.bf16.msra.mxu0 %v7158_v16  ;;  %3920 = vmatpush1.bf16.msra.mxu1 %v7159_v27  ;;  %v7168_v16 = vld [vmem:[#allocation68_spill] sm:$0xff]  ;;  %v7169_v27 = vld [vmem:[#allocation69_spill] sm:$0xff] }
 0x1cb   :  { %3858 = vmatprep.subr.bf16.mxu0 %v7160_v62  ;;  %3922 = vmatprep.subr.bf16.mxu1 %v7161_v30  ;;  %v7170_v62 = vld [vmem:[#allocation70_spill] sm:$0xff]  ;;  %v7171_v30 = vld [vmem:[#allocation15_spill] sm:$0xff] }
 0x1ce   :  { %3860 = vmatpush1.bf16.msra.mxu0 %v7162_v60  ;;  %3924 = vmatpush1.bf16.msra.mxu1 %v7163_v3  ;;  %v7172_v60 = vld [vmem:[#allocation16_spill] sm:$0xff] }
 0x1cf   :  { %3862 = vmatprep.subr.bf16.mxu0 %v6026_v52  ;;  %3926 = vmatprep.subr.bf16.mxu1 %v7164_v23  ;;  %v395_v23 = vld [vmem:[%s6922_s5] sm:$0xf]  ;;  %v7173_v52 = vld [vmem:[#allocation71_spill] sm:$0xff] }
 0x1d0   :  { %v7178_v26 = vsub.s32 3, %v7173_v52 }
 0x1d2   :  { %3864 = vmatpush1.bf16.msra.mxu0 %v7165_v63  ;;  %3928 = vmatpush1.bf16.msra.mxu1 %v7166_v31  ;;  %v7174_v63 = vsub.s32 0, %v7173_v52  ;;  %v6198_v56 = vrot.slane %v395_v23, %v7178_v26 }
 0x1d3   :  { %3866 = vmatprep.subr.bf16.mxu0 %v7167_v0  ;;  %3930 = vmatprep.subr.bf16.mxu1 %v7168_v16  ;;  %v7176_v0 = vsub.s32 1, %v7173_v52 }
 0x1d4   :  { %v6188_v3 = vrot.slane %v395_v23, %v7174_v63  ;;  %7179 = vst [vmem:[#allocation76_spill] sm:$0xff] %v6198_v56 }
 0x1d5   :  { %v6192_v31 = vrot.slane %v395_v23, %v7176_v0  ;;  %v7180_v0 = vsub.s32 2, %v7173_v52 }
 0x1d6   :  { %3868 = vmatpush1.bf16.msra.mxu0 %v7169_v27  ;;  %3932 = vmatpush1.bf16.msra.mxu1 %v7170_v62  ;;  %7175 = vst [vmem:[#allocation71_spill] sm:$0xff] %v6188_v3 }
 0x1d7   :  { %3934 = vmatprep.subr.bf16.mxu0 %v7171_v30  ;;  %3966 = vmatprep.subr.bf16.mxu1 %v7172_v60  ;;  %7177 = vst [vmem:[#allocation75_spill] sm:$0xff] %v6192_v31  ;;  %v6203_v4 = vrot.slane %v395_v23, %v7180_v0 }
 0x1d9   :  { %7181 = vst [vmem:[#allocation77_spill] sm:$0xff] %v6203_v4 }
 0x24c   :  { %v845_v16 = vpop.f32.mrb[16].mxu0  ;;  %v916_v27 = vpop.f32.mrb[16].mxu1 }
 0x24d   :  { %v846_v62 = vadd.f32 %v845_v16, %v6188_v3  ;;  %v847_v22 = vpop.f32.mrb[17].mxu0  ;;  %v918_v30 = vpop.f32.mrb[17].mxu1  ;;  %v917_v16 = vadd.f32 %v916_v27, %v6203_v4  ;;  %v7182_v27 = vld [vmem:[#allocation72_spill] sm:$0xff] }
 0x24e   :  { %v848_v60 = vadd.f32 %v847_v22, %v6192_v31  ;;  %v919_v63 = vadd.f32 %v918_v30, %v6198_v56 }
 0x24f   :  { %v3431_v13 = vmul.f32 -1.442695, %v846_v62 }
 0x250   :  { %v3432_v44 = vmul.f32 -1.442695, %v848_v60  ;;  %v3433_v53 = vmul.f32 -1.442695, %v919_v63 }
 0x251   :  { %5202 = vpow2.f32 %v3431_v13 }
 0x252   :  { %5204 = vpow2.f32 %v3432_v44 }
 0x253   :  { %5206 = vpow2.f32 %v3433_v53 }
 0x254   :  { %5208 = vtanh.f32 %v917_v16 }
 0x25b   :  { %v5203_v3 = vpop.eup %5202 }
 0x25c   :  { %v5205_v38 = vpop.eup %5204  ;;  %v924_v22 = vadd.f32 1.0, %v5203_v3 }
 0x25d   :  { %v930_v62 = vadd.f32 1.0, %v5205_v38  ;;  %v5207_v26 = vpop.eup %5206  ;;  %v7183_v38 = vld [vmem:[#allocation73_spill] sm:$0xff] }
 0x25e   :  { %5210 = vrcp.f32 %v924_v22  ;;  %v5209_v13 = vpop.eup %5208  ;;  %v937_v56 = vadd.f32 1.0, %v5207_v26 }
 0x25f   :  { %5212 = vrcp.f32 %v930_v62 }
 0x260   :  { %5214 = vrcp.f32 %v937_v56 }
 0x268   :  { %v5211_v44 = vpop.eup %5210 }
 0x269   :  { %v5213_v60 = vpop.eup %5212  ;;  %v941_v30 = vmul.f32 %v5211_v44, %v5209_v13  ;;  %v7184_v13 = vld [vmem:[#allocation74_spill] sm:$0xff] }
 0x26a   :  { %v940_v52 = vmul.f32 0.0, %v5213_v60  ;;  %v5215_v44 = vpop.eup %5214 }
 0x26c   :  { %v6206_v23 = vadd.f32 %v941_v30, %v940_v52  ;;  %v1011_v63 = vpop.f32.mrb[2].mxu0  ;;  %v1082_v0 = vpop.f32.mrb[2].mxu1 }
 0x26d   :  { %v5111_v4 = vadd.f32 %v1011_v63, %v7182_v27  ;;  %v1013_v3 = vpop.f32.mrb[3].mxu0  ;;  %v1084_v53 = vpop.f32.mrb[3].mxu1  ;;  %v5127_v52 = vadd.f32 %v1082_v0, %v6079_v42 }
 0x26e   :  { %5216 = vtanh.f32 %v6206_v23  ;;  %v5112_v16 = vadd.f32 %v1013_v3, %v7183_v38  ;;  %v5128_v26 = vadd.f32 %v1084_v53, %v7184_v13 }
 0x26f   :  { %v3434_v22 = vmul.f32 -1.442695, %v5111_v4 }
 0x270   :  { %v3435_v62 = vmul.f32 -1.442695, %v5112_v16  ;;  %v3436_v30 = vmul.f32 -1.442695, %v5128_v26 }
 0x271   :  { %5218 = vpow2.f32 %v3434_v22 }
 0x272   :  { %5220 = vpow2.f32 %v3435_v62 }
 0x273   :  { %5222 = vpow2.f32 %v3436_v30  ;;  %v7188_v30 = vld [vmem:[#allocation22_spill] sm:$0xff] }
 0x274   :  { %5224 = vtanh.f32 %v5127_v52  ;;  %v7189_v52 = vld [vmem:[#allocation23_spill] sm:$0xff] }
 0x278   :  { %v5217_v60 = vpop.eup %5216 }
 0x279   :  { %v944_v56 = vmul.f32 %v5217_v60, %v5215_v44 }
 0x27b   :  { %v5219_v31 = vpop.eup %5218  ;;  %1179 = vmatprep.mubr.f32.mxu0 %v944_v56  ;;  %1250 = vmatprep.mubr.f32.mxu1 %v944_v56  ;;  %v7190_v56 = vld [vmem:[#allocation24_spill] sm:$0xff] }
 0x27c   :  { %v5221_v63 = vpop.eup %5220  ;;  %v1094_v27 = vadd.f32 1.0, %v5219_v31 }
 0x27d   :  { %v1100_v3 = vadd.f32 1.0, %v5221_v63  ;;  %v5223_v4 = vpop.eup %5222  ;;  %v7191_v63 = vld [vmem:[#allocation25_spill] sm:$0xff] }
 0x27e   :  { %5226 = vrcp.f32 %v1094_v27  ;;  %v5225_v16 = vpop.eup %5224  ;;  %v1107_v13 = vadd.f32 1.0, %v5223_v4  ;;  %v7186_v27 = vld [vmem:[#allocation20_spill] sm:$0xff]  ;;  %v7193_v4 = vld [vmem:[#allocation27_spill] sm:$0xff] }
 0x27f   :  { %5228 = vrcp.f32 %v1100_v3  ;;  %v7192_v3 = vld [vmem:[#allocation26_spill] sm:$0xff] }
 0x280   :  { %5230 = vrcp.f32 %v1107_v13  ;;  %v7187_v13 = vld [vmem:[#allocation21_spill] sm:$0xff] }
 0x288   :  { %v5227_v22 = vpop.eup %5226 }
 0x289   :  { %v5229_v53 = vpop.eup %5228  ;;  %v1111_v62 = vmul.f32 %v5227_v22, %v5225_v16  ;;  %v7194_v16 = vld [vmem:[#allocation28_spill] sm:$0xff]  ;;  %v7195_v22 = vld [vmem:[#allocation29_spill] sm:$0xff] }
 0x28a   :  { %v1110_v26 = vmul.f32 %v5229_v53, %v6082_v29  ;;  %v5231_v44 = vpop.eup %5230  ;;  %v7185_v29 = vld [vmem:[#allocation19_spill] sm:$0xff]  ;;  %v7196_v53 = vld [vmem:[#allocation30_spill] sm:$0xff] }
 0x28c   :  { %v6214_v0 = vadd.f32 %v1111_v62, %v1110_v26  ;;  %v7197_v62 = vld [vmem:[#allocation31_spill] sm:$0xff]  ;;  %v7198_v26 = vld [vmem:[#allocation32_spill] sm:$0xff] }
 0x28e   :  { %5232 = vtanh.f32 %v6214_v0 }
 0x298   :  { %v5233_v31 = vpop.eup %5232 }
 0x299   :  { %v1114_v60 = vmul.f32 %v5233_v31, %v5231_v44  ;;  %v7199_v44 = vld [vmem:[#allocation33_spill] sm:$0xff]  ;;  %v7200_v31 = vld [vmem:[#allocation34_spill] sm:$0xff] }
 0x29b   :  { %1180 = vmatmul.mubr.f32.vlgmr.msra.gmra.mrb[18].mxu0 %v1114_v60  ;;  %1251 = vmatmul.mubr.f32.vlgmr.msra.gmra.mrb[18].mxu1 %v1114_v60 }
 0x29c   :  { %3936 = vmatpush1.bf16.msra.mxu0 %v5708_v36  ;;  %3968 = vmatpush1.bf16.msra.mxu1 %v5713_v39 }
 0x29d   :  { %3938 = vmatprep.subr.bf16.mxu0 %v5716_v43  ;;  %3970 = vmatprep.subr.bf16.mxu1 %v5722_v48 }
 0x29e   :  { %1345 = vmatprep.mubr.f32.mxu0 %v7122_v17  ;;  %1416 = vmatprep.mubr.f32.mxu1 %v7122_v17 }
 0x2a0   :  { %3940 = vmatpush1.bf16.msra.mxu0 %v5726_v51  ;;  %3972 = vmatpush1.bf16.msra.mxu1 %v5730_v55 }
 0x2a1   :  { %3942 = vmatprep.subr.bf16.mxu0 %v5734_v58  ;;  %3974 = vmatprep.subr.bf16.mxu1 %v5738_v61 }
 0x2a4   :  { %3944 = vmatpush1.bf16.msra.mxu0 %v5745_v2  ;;  %3976 = vmatpush1.bf16.msra.mxu1 %v5749_v5 }
 0x2a5   :  { %3946 = vmatprep.subr.bf16.mxu0 %v5753_v8  ;;  %3978 = vmatprep.subr.bf16.mxu1 %v5757_v11 }
 0x2a8   :  { %3948 = vmatpush1.bf16.msra.mxu0 %v5764_v15  ;;  %3980 = vmatpush1.bf16.msra.mxu1 %v5768_v18 }
 0x2a9   :  { %3950 = vmatprep.subr.bf16.mxu0 %v5772_v21  ;;  %3982 = vmatprep.subr.bf16.mxu1 %v5776_v24 }
 0x2ac   :  { %3952 = vmatpush1.bf16.msra.mxu0 %v5783_v28  ;;  %3984 = vmatpush1.bf16.msra.mxu1 %v5787_v33 }
 0x2ad   :  { %3954 = vmatprep.subr.bf16.mxu0 %v5791_v37  ;;  %3986 = vmatprep.subr.bf16.mxu1 %v5795_v41 }
 0x2b0   :  { %3956 = vmatpush1.bf16.msra.mxu0 %v5802_v46  ;;  %3988 = vmatpush1.bf16.msra.mxu1 %v5806_v50 }
 0x2b1   :  { %3958 = vmatprep.subr.bf16.mxu0 %v5810_v54  ;;  %3990 = vmatprep.subr.bf16.mxu1 %v5814_v59 }
 0x2b4   :  { %3960 = vmatpush1.bf16.msra.mxu0 %v5821_v1  ;;  %3992 = vmatpush1.bf16.msra.mxu1 %v5825_v6 }
 0x2b5   :  { %3962 = vmatprep.subr.bf16.mxu0 %v5829_v10  ;;  %3994 = vmatprep.subr.bf16.mxu1 %v5833_v14 }
 0x2b8   :  { %3964 = vmatpush1.bf16.msra.mxu0 %v5840_v20  ;;  %3996 = vmatpush1.bf16.msra.mxu1 %v5844_v25 }
 0x2b9   :  { %3998 = vmatprep.subr.bf16.mxu0 %v5848_v32  ;;  %4062 = vmatprep.subr.bf16.mxu1 %v5852_v40 }
 0x2bb   :  { %1346 = vmatmul.mubr.f32.vlgmr.msra.gmra.mrb[4].mxu0 %v1114_v60  ;;  %1417 = vmatmul.mubr.f32.vlgmr.msra.gmra.mrb[4].mxu1 %v1114_v60  ;;  %v7201_v60 = vld [vmem:[#allocation35_spill] sm:$0xff] }
 0x2bc   :  { %4000 = vmatpush1.bf16.msra.mxu0 %v5856_v45  ;;  %4064 = vmatpush1.bf16.msra.mxu1 %v5860_v47 }
 0x2bd   :  { %4002 = vmatprep.subr.bf16.mxu0 %v5862_v49  ;;  %4066 = vmatprep.subr.bf16.mxu1 %v5866_v57 }
 0x2c0   :  { %4004 = vmatpush1.bf16.msra.mxu0 %v5872_v7  ;;  %4068 = vmatpush1.bf16.msra.mxu1 %v5876_v9 }
 0x2c1   :  { %4006 = vmatprep.subr.bf16.mxu0 %v5878_v12  ;;  %4070 = vmatprep.subr.bf16.mxu1 %v5881_v19 }
 0x2c4   :  { %4008 = vmatpush1.bf16.msra.mxu0 %v5886_v34  ;;  %4072 = vmatpush1.bf16.msra.mxu1 %v5890_v35 }
 0x2c5   :  { %4010 = vmatprep.subr.bf16.mxu0 %v7185_v29  ;;  %4074 = vmatprep.subr.bf16.mxu1 %v7186_v27 }
 0x2c8   :  { %4012 = vmatpush1.bf16.msra.mxu0 %v7187_v13  ;;  %4076 = vmatpush1.bf16.msra.mxu1 %v7188_v30  ;;  %v7240_v30 = vld [vmem:[#allocation75_spill] sm:$0xff] }
 0x2c9   :  { %4014 = vmatprep.subr.bf16.mxu0 %v7189_v52  ;;  %4078 = vmatprep.subr.bf16.mxu1 %v7190_v56  ;;  %v7239_v56 = vld [vmem:[#allocation71_spill] sm:$0xff] }
 0x2cc   :  { %4016 = vmatpush1.bf16.msra.mxu0 %v7191_v63  ;;  %4080 = vmatpush1.bf16.msra.mxu1 %v7192_v3  ;;  %v7202_v63 = vld [vmem:[#allocation36_spill] sm:$0xff]  ;;  %v7203_v3 = vld [vmem:[#allocation37_spill] sm:$0xff] }
 0x2cd   :  { %4018 = vmatprep.subr.bf16.mxu0 %v7193_v4  ;;  %4082 = vmatprep.subr.bf16.mxu1 %v7194_v16  ;;  %v7204_v4 = vld [vmem:[#allocation38_spill] sm:$0xff]  ;;  %v7205_v16 = vld [vmem:[#allocation39_spill] sm:$0xff] }
 0x2d0   :  { %4020 = vmatpush1.bf16.msra.mxu0 %v7195_v22  ;;  %4084 = vmatpush1.bf16.msra.mxu1 %v7196_v53  ;;  %v7206_v22 = vld [vmem:[#allocation40_spill] sm:$0xff]  ;;  %v7207_v53 = vld [vmem:[#allocation41_spill] sm:$0xff] }
 0x2d1   :  { %4022 = vmatprep.subr.bf16.mxu0 %v7197_v62  ;;  %4086 = vmatprep.subr.bf16.mxu1 %v7198_v26  ;;  %v7208_v62 = vld [vmem:[#allocation42_spill] sm:$0xff]  ;;  %v7209_v26 = vld [vmem:[#allocation43_spill] sm:$0xff] }
 0x2d4   :  { %4024 = vmatpush1.bf16.msra.mxu0 %v7199_v44  ;;  %4088 = vmatpush1.bf16.msra.mxu1 %v7200_v31  ;;  %v7210_v44 = vld [vmem:[#allocation44_spill] sm:$0xff]  ;;  %v7211_v31 = vld [vmem:[#allocation45_spill] sm:$0xff] }
 0x2d5   :  { %4026 = vmatprep.subr.bf16.mxu0 %v7201_v60  ;;  %4090 = vmatprep.subr.bf16.mxu1 %v7202_v63  ;;  %v7212_v60 = vld [vmem:[#allocation46_spill] sm:$0xff]  ;;  %v7213_v63 = vld [vmem:[#allocation47_spill] sm:$0xff] }
 0x2d8   :  { %4028 = vmatpush1.bf16.msra.mxu0 %v7203_v3  ;;  %4092 = vmatpush1.bf16.msra.mxu1 %v7204_v4  ;;  %v7214_v3 = vld [vmem:[#allocation48_spill] sm:$0xff]  ;;  %v7215_v4 = vld [vmem:[#allocation49_spill] sm:$0xff] }
 0x2d9   :  { %4030 = vmatprep.subr.bf16.mxu0 %v7205_v16  ;;  %4094 = vmatprep.subr.bf16.mxu1 %v7206_v22  ;;  %v7216_v16 = vld [vmem:[#allocation50_spill] sm:$0xff]  ;;  %v7217_v22 = vld [vmem:[#allocation51_spill] sm:$0xff] }
 0x2dc   :  { %4032 = vmatpush1.bf16.msra.mxu0 %v7207_v53  ;;  %4096 = vmatpush1.bf16.msra.mxu1 %v7208_v62  ;;  %v7218_v53 = vld [vmem:[#allocation52_spill] sm:$0xff]  ;;  %v7219_v62 = vld [vmem:[#allocation53_spill] sm:$0xff] }
 0x2dd   :  { %4034 = vmatprep.subr.bf16.mxu0 %v7209_v26  ;;  %4098 = vmatprep.subr.bf16.mxu1 %v7210_v44  ;;  %v7220_v26 = vld [vmem:[#allocation54_spill] sm:$0xff]  ;;  %v7221_v44 = vld [vmem:[#allocation55_spill] sm:$0xff] }
 0x2e0   :  { %4036 = vmatpush1.bf16.msra.mxu0 %v7211_v31  ;;  %4100 = vmatpush1.bf16.msra.mxu1 %v7212_v60  ;;  %v7222_v31 = vld [vmem:[#allocation56_spill] sm:$0xff]  ;;  %v7223_v60 = vld [vmem:[#allocation57_spill] sm:$0xff] }
 0x2e1   :  { %4038 = vmatprep.subr.bf16.mxu0 %v7213_v63  ;;  %4102 = vmatprep.subr.bf16.mxu1 %v7214_v3  ;;  %v7224_v63 = vld [vmem:[#allocation58_spill] sm:$0xff]  ;;  %v7225_v3 = vld [vmem:[#allocation59_spill] sm:$0xff] }
 0x2e4   :  { %4040 = vmatpush1.bf16.msra.mxu0 %v7215_v4  ;;  %4104 = vmatpush1.bf16.msra.mxu1 %v7216_v16  ;;  %v7226_v4 = vld [vmem:[#allocation60_spill] sm:$0xff]  ;;  %v7227_v16 = vld [vmem:[#allocation61_spill] sm:$0xff] }
 0x2e5   :  { %4042 = vmatprep.subr.bf16.mxu0 %v7217_v22  ;;  %4106 = vmatprep.subr.bf16.mxu1 %v7218_v53  ;;  %v7228_v22 = vld [vmem:[#allocation62_spill] sm:$0xff]  ;;  %v7229_v53 = vld [vmem:[#allocation63_spill] sm:$0xff] }
 0x2e8   :  { %4044 = vmatpush1.bf16.msra.mxu0 %v7219_v62  ;;  %4108 = vmatpush1.bf16.msra.mxu1 %v7220_v26  ;;  %v7230_v62 = vld [vmem:[#allocation64_spill] sm:$0xff]  ;;  %v7231_v26 = vld [vmem:[#allocation65_spill] sm:$0xff] }
 0x2e9   :  { %4046 = vmatprep.subr.bf16.mxu0 %v7221_v44  ;;  %4110 = vmatprep.subr.bf16.mxu1 %v7222_v31  ;;  %v7232_v44 = vld [vmem:[#allocation66_spill] sm:$0xff]  ;;  %v7233_v31 = vld [vmem:[#allocation67_spill] sm:$0xff] }
 0x2ec   :  { %4048 = vmatpush1.bf16.msra.mxu0 %v7223_v60  ;;  %4112 = vmatpush1.bf16.msra.mxu1 %v7224_v63  ;;  %v7234_v60 = vld [vmem:[#allocation68_spill] sm:$0xff]  ;;  %v7235_v63 = vld [vmem:[#allocation69_spill] sm:$0xff] }
 0x2ed   :  { %4050 = vmatprep.subr.bf16.mxu0 %v7225_v3  ;;  %4114 = vmatprep.subr.bf16.mxu1 %v7226_v4  ;;  %v7236_v3 = vld [vmem:[#allocation70_spill] sm:$0xff]  ;;  %v7237_v4 = vld [vmem:[#allocation15_spill] sm:$0xff] }
 0x2f0   :  { %4052 = vmatpush1.bf16.msra.mxu0 %v7227_v16  ;;  %4116 = vmatpush1.bf16.msra.mxu1 %v7228_v22  ;;  %v7238_v16 = vld [vmem:[#allocation16_spill] sm:$0xff] }
 0x2f1   :  { %4054 = vmatprep.subr.bf16.mxu0 %v7229_v53  ;;  %4118 = vmatprep.subr.bf16.mxu1 %v7230_v62 }
 0x2f4   :  { %4056 = vmatpush1.bf16.msra.mxu0 %v7231_v26  ;;  %4120 = vmatpush1.bf16.msra.mxu1 %v7232_v44 }
 0x2f5   :  { %4058 = vmatprep.subr.bf16.mxu0 %v7233_v31  ;;  %4122 = vmatprep.subr.bf16.mxu1 %v7234_v60  ;;  %v7241_v60 = vld [vmem:[#allocation76_spill] sm:$0xff] }
 0x2f8   :  { %4060 = vmatpush1.bf16.msra.mxu0 %v7235_v63  ;;  %4124 = vmatpush1.bf16.msra.mxu1 %v7236_v3  ;;  %v7242_v3 = vld [vmem:[#allocation77_spill] sm:$0xff] }
 0x2f9   :  { %4126 = vmatprep.subr.bf16.mxu0 %v7237_v4  ;;  %4158 = vmatprep.subr.bf16.mxu1 %v7238_v16 }
 0x36e   :  { %v1181_v22 = vpop.f32.mrb[18].mxu0  ;;  %v1252_v53 = vpop.f32.mrb[18].mxu1 }
 0x36f   :  { %v1182_v62 = vadd.f32 %v1181_v22, %v7239_v56  ;;  %v1183_v52 = vpop.f32.mrb[19].mxu0  ;;  %v1254_v26 = vpop.f32.mrb[19].mxu1  ;;  %v1253_v29 = vadd.f32 %v1252_v53, %v7242_v3  ;;  %v7243_v53 = vld [vmem:[#allocation72_spill] sm:$0xff] }
 0x370   :  { %v1184_v44 = vadd.f32 %v1183_v52, %v7240_v30  ;;  %v1255_v63 = vadd.f32 %v1254_v26, %v7241_v60 }
 0x371   :  { %v3437_v13 = vmul.f32 -1.442695, %v1182_v62 }
 0x372   :  { %v3438_v31 = vmul.f32 -1.442695, %v1184_v44  ;;  %v3439_v27 = vmul.f32 -1.442695, %v1255_v63 }
 0x373   :  { %5234 = vpow2.f32 %v3437_v13 }
 0x374   :  { %5236 = vpow2.f32 %v3438_v31 }
 0x375   :  { %5238 = vpow2.f32 %v3439_v27 }
 0x376   :  { %5240 = vtanh.f32 %v1253_v29 }
 0x37d   :  { %v5235_v4 = vpop.eup %5234 }
 0x37e   :  { %v5237_v35 = vpop.eup %5236  ;;  %v1260_v16 = vadd.f32 1.0, %v5235_v4 }
 0x37f   :  { %v1266_v34 = vadd.f32 1.0, %v5237_v35  ;;  %v5239_v22 = vpop.eup %5238 }
 0x380   :  { %5242 = vrcp.f32 %v1260_v16  ;;  %v5241_v56 = vpop.eup %5240  ;;  %v1273_v13 = vadd.f32 1.0, %v5239_v22 }
 0x381   :  { %5244 = vrcp.f32 %v1266_v34 }
 0x382   :  { %5246 = vrcp.f32 %v1273_v13 }
 0x38a   :  { %v5243_v52 = vpop.eup %5242 }
 0x38b   :  { %v5245_v62 = vpop.eup %5244  ;;  %v1277_v44 = vmul.f32 %v5243_v52, %v5241_v56  ;;  %v7244_v56 = vld [vmem:[#allocation74_spill] sm:$0xff] }
 0x38c   :  { %v1276_v31 = vmul.f32 %v5245_v62, %v6206_v23  ;;  %v5247_v23 = vpop.eup %5246 }
 0x38e   :  { %v1347_v26 = vpop.f32.mrb[4].mxu0  ;;  %v1418_v63 = vpop.f32.mrb[4].mxu1  ;;  %v6320_v60 = vadd.f32 %v1277_v44, %v1276_v31 }
 0x38f   :  { %v5113_v4 = vadd.f32 %v1347_v26, %v7243_v53  ;;  %v1349_v27 = vpop.f32.mrb[5].mxu0  ;;  %v1420_v29 = vpop.f32.mrb[5].mxu1  ;;  %v5129_v44 = vadd.f32 %v1418_v63, %v6079_v42 }
 0x390   :  { %v5114_v35 = vadd.f32 %v1349_v27, %v7183_v38  ;;  %5248 = vtanh.f32 %v6320_v60  ;;  %v5130_v22 = vadd.f32 %v1420_v29, %v7244_v56 }
 0x391   :  { %v3440_v34 = vmul.f32 -1.442695, %v5113_v4 }
 0x392   :  { %v3441_v16 = vmul.f32 -1.442695, %v5114_v35  ;;  %v3442_v62 = vmul.f32 -1.442695, %v5130_v22 }
 0x393   :  { %5250 = vpow2.f32 %v3440_v34 }
 0x394   :  { %5252 = vpow2.f32 %v3441_v16 }
 0x395   :  { %5254 = vpow2.f32 %v3442_v62 }
 0x396   :  { %5256 = vtanh.f32 %v5129_v44  ;;  %v7248_v44 = vld [vmem:[#allocation20_spill] sm:$0xff] }
 0x39a   :  { %v5249_v52 = vpop.eup %5248 }
 0x39b   :  { %v1280_v13 = vmul.f32 %v5249_v52, %v5247_v23 }
 0x39d   :  { %v5251_v31 = vpop.eup %5250  ;;  %1515 = vmatprep.mubr.f32.mxu0 %v1280_v13  ;;  %1586 = vmatprep.mubr.f32.mxu1 %v1280_v13  ;;  %v7249_v13 = vld [vmem:[#allocation21_spill] sm:$0xff] }
 0x39e   :  { %v5253_v26 = vpop.eup %5252  ;;  %v1430_v53 = vadd.f32 1.0, %v5251_v31  ;;  %v7250_v31 = vld [vmem:[#allocation22_spill] sm:$0xff] }
 0x39f   :  { %v1436_v27 = vadd.f32 1.0, %v5253_v26  ;;  %v5255_v4 = vpop.eup %5254  ;;  %v7251_v26 = vld [vmem:[#allocation23_spill] sm:$0xff] }
 0x3a0   :  { %5258 = vrcp.f32 %v1430_v53  ;;  %v5257_v35 = vpop.eup %5256  ;;  %v1443_v56 = vadd.f32 1.0, %v5255_v4  ;;  %v7246_v53 = vld [vmem:[#allocation18_spill] sm:$0xff]  ;;  %v7253_v4 = vld [vmem:[#allocation25_spill] sm:$0xff] }
 0x3a1   :  { %5260 = vrcp.f32 %v1436_v27  ;;  %v7252_v27 = vld [vmem:[#allocation24_spill] sm:$0xff] }
 0x3a2   :  { %5262 = vrcp.f32 %v1443_v56  ;;  %v7247_v56 = vld [vmem:[#allocation19_spill] sm:$0xff] }
 0x3aa   :  { %v5259_v34 = vpop.eup %5258 }
 0x3ab   :  { %v5261_v29 = vpop.eup %5260  ;;  %v1447_v16 = vmul.f32 %v5259_v34, %v5257_v35  ;;  %v7254_v35 = vld [vmem:[#allocation26_spill] sm:$0xff]  ;;  %v7255_v34 = vld [vmem:[#allocation27_spill] sm:$0xff] }
 0x3ac   :  { %v1446_v22 = vmul.f32 %v5261_v29, %v6214_v0  ;;  %v5263_v23 = vpop.eup %5262  ;;  %v7245_v0 = vld [vmem:[#allocation17_spill] sm:$0xff]  ;;  %v7256_v29 = vld [vmem:[#allocation28_spill] sm:$0xff] }
 0x3ae   :  { %v6328_v63 = vadd.f32 %v1447_v16, %v1446_v22  ;;  %v7257_v16 = vld [vmem:[#allocation29_spill] sm:$0xff]  ;;  %v7258_v22 = vld [vmem:[#allocation30_spill] sm:$0xff] }
 0x3b0   :  { %5264 = vtanh.f32 %v6328_v63 }
 0x3ba   :  { %v5265_v52 = vpop.eup %5264 }
 0x3bb   :  { %v1450_v62 = vmul.f32 %v5265_v52, %v5263_v23  ;;  %v7259_v23 = vld [vmem:[#allocation31_spill] sm:$0xff]  ;;  %v7260_v52 = vld [vmem:[#allocation32_spill] sm:$0xff] }
 0x3bd   :  { %1516 = vmatmul.mubr.f32.vlgmr.msra.gmra.mrb[20].mxu0 %v1450_v62  ;;  %1587 = vmatmul.mubr.f32.vlgmr.msra.gmra.mrb[20].mxu1 %v1450_v62 }
 0x3be   :  { %4128 = vmatpush1.bf16.msra.mxu0 %v5708_v36  ;;  %4160 = vmatpush1.bf16.msra.mxu1 %v5713_v39 }
 0x3bf   :  { %4130 = vmatprep.subr.bf16.mxu0 %v5716_v43  ;;  %4162 = vmatprep.subr.bf16.mxu1 %v5722_v48 }
 0x3c0   :  { %1681 = vmatprep.mubr.f32.mxu0 %v7122_v17  ;;  %1752 = vmatprep.mubr.f32.mxu1 %v7122_v17 }
 0x3c2   :  { %4132 = vmatpush1.bf16.msra.mxu0 %v5726_v51  ;;  %4164 = vmatpush1.bf16.msra.mxu1 %v5730_v55 }
 0x3c3   :  { %4134 = vmatprep.subr.bf16.mxu0 %v5734_v58  ;;  %4166 = vmatprep.subr.bf16.mxu1 %v5738_v61 }
 0x3c6   :  { %4136 = vmatpush1.bf16.msra.mxu0 %v5745_v2  ;;  %4168 = vmatpush1.bf16.msra.mxu1 %v5749_v5 }
 0x3c7   :  { %4138 = vmatprep.subr.bf16.mxu0 %v5753_v8  ;;  %4170 = vmatprep.subr.bf16.mxu1 %v5757_v11 }
 0x3ca   :  { %4140 = vmatpush1.bf16.msra.mxu0 %v5764_v15  ;;  %4172 = vmatpush1.bf16.msra.mxu1 %v5768_v18 }
 0x3cb   :  { %4142 = vmatprep.subr.bf16.mxu0 %v5772_v21  ;;  %4174 = vmatprep.subr.bf16.mxu1 %v5776_v24 }
 0x3ce   :  { %4144 = vmatpush1.bf16.msra.mxu0 %v5783_v28  ;;  %4176 = vmatpush1.bf16.msra.mxu1 %v5787_v33 }
 0x3cf   :  { %4146 = vmatprep.subr.bf16.mxu0 %v5791_v37  ;;  %4178 = vmatprep.subr.bf16.mxu1 %v5795_v41 }
 0x3d2   :  { %4148 = vmatpush1.bf16.msra.mxu0 %v5802_v46  ;;  %4180 = vmatpush1.bf16.msra.mxu1 %v5806_v50 }
 0x3d3   :  { %4150 = vmatprep.subr.bf16.mxu0 %v5810_v54  ;;  %4182 = vmatprep.subr.bf16.mxu1 %v5814_v59 }
 0x3d6   :  { %4152 = vmatpush1.bf16.msra.mxu0 %v5821_v1  ;;  %4184 = vmatpush1.bf16.msra.mxu1 %v5825_v6 }
 0x3d7   :  { %4154 = vmatprep.subr.bf16.mxu0 %v5829_v10  ;;  %4186 = vmatprep.subr.bf16.mxu1 %v5833_v14 }
 0x3da   :  { %4156 = vmatpush1.bf16.msra.mxu0 %v5840_v20  ;;  %4188 = vmatpush1.bf16.msra.mxu1 %v5844_v25 }
 0x3db   :  { %4190 = vmatprep.subr.bf16.mxu0 %v5848_v32  ;;  %4254 = vmatprep.subr.bf16.mxu1 %v5852_v40 }
 0x3dd   :  { %1682 = vmatmul.mubr.f32.vlgmr.msra.gmra.mrb[6].mxu0 %v1450_v62  ;;  %1753 = vmatmul.mubr.f32.vlgmr.msra.gmra.mrb[6].mxu1 %v1450_v62  ;;  %v7261_v62 = vld [vmem:[#allocation33_spill] sm:$0xff] }
 0x3de   :  { %4192 = vmatpush1.bf16.msra.mxu0 %v5856_v45  ;;  %4256 = vmatpush1.bf16.msra.mxu1 %v5860_v47 }
 0x3df   :  { %4194 = vmatprep.subr.bf16.mxu0 %v5862_v49  ;;  %4258 = vmatprep.subr.bf16.mxu1 %v5866_v57 }
 0x3e2   :  { %4196 = vmatpush1.bf16.msra.mxu0 %v5872_v7  ;;  %4260 = vmatpush1.bf16.msra.mxu1 %v5876_v9 }
 0x3e3   :  { %4198 = vmatprep.subr.bf16.mxu0 %v5878_v12  ;;  %4262 = vmatprep.subr.bf16.mxu1 %v5881_v19 }
 0x3e6   :  { %4200 = vmatpush1.bf16.msra.mxu0 %v7245_v0  ;;  %4264 = vmatpush1.bf16.msra.mxu1 %v7246_v53 }
 0x3e7   :  { %4202 = vmatprep.subr.bf16.mxu0 %v7247_v56  ;;  %4266 = vmatprep.subr.bf16.mxu1 %v7248_v44 }
 0x3ea   :  { %4204 = vmatpush1.bf16.msra.mxu0 %v7249_v13  ;;  %4268 = vmatpush1.bf16.msra.mxu1 %v7250_v31  ;;  %v7301_v31 = vld [vmem:[#allocation71_spill] sm:$0xff] }
 0x3eb   :  { %4206 = vmatprep.subr.bf16.mxu0 %v7251_v26  ;;  %4270 = vmatprep.subr.bf16.mxu1 %v7252_v27  ;;  %v7262_v26 = vld [vmem:[#allocation34_spill] sm:$0xff]  ;;  %v7263_v27 = vld [vmem:[#allocation35_spill] sm:$0xff] }
 0x3ee   :  { %4208 = vmatpush1.bf16.msra.mxu0 %v7253_v4  ;;  %4272 = vmatpush1.bf16.msra.mxu1 %v7254_v35  ;;  %v7264_v4 = vld [vmem:[#allocation36_spill] sm:$0xff]  ;;  %v7265_v35 = vld [vmem:[#allocation37_spill] sm:$0xff] }
 0x3ef   :  { %4210 = vmatprep.subr.bf16.mxu0 %v7255_v34  ;;  %4274 = vmatprep.subr.bf16.mxu1 %v7256_v29  ;;  %v7266_v34 = vld [vmem:[#allocation38_spill] sm:$0xff]  ;;  %v7267_v29 = vld [vmem:[#allocation39_spill] sm:$0xff] }
 0x3f2   :  { %4212 = vmatpush1.bf16.msra.mxu0 %v7257_v16  ;;  %4276 = vmatpush1.bf16.msra.mxu1 %v7258_v22  ;;  %v7268_v16 = vld [vmem:[#allocation40_spill] sm:$0xff]  ;;  %v7269_v22 = vld [vmem:[#allocation41_spill] sm:$0xff] }
 0x3f3   :  { %4214 = vmatprep.subr.bf16.mxu0 %v7259_v23  ;;  %4278 = vmatprep.subr.bf16.mxu1 %v7260_v52  ;;  %v7270_v23 = vld [vmem:[#allocation42_spill] sm:$0xff]  ;;  %v7271_v52 = vld [vmem:[#allocation43_spill] sm:$0xff] }
 0x3f6   :  { %4216 = vmatpush1.bf16.msra.mxu0 %v7261_v62  ;;  %4280 = vmatpush1.bf16.msra.mxu1 %v7262_v26  ;;  %v7272_v62 = vld [vmem:[#allocation44_spill] sm:$0xff]  ;;  %v7273_v26 = vld [vmem:[#allocation45_spill] sm:$0xff] }
 0x3f7   :  { %4218 = vmatprep.subr.bf16.mxu0 %v7263_v27  ;;  %4282 = vmatprep.subr.bf16.mxu1 %v7264_v4  ;;  %v7274_v27 = vld [vmem:[#allocation46_spill] sm:$0xff]  ;;  %v7275_v4 = vld [vmem:[#allocation47_spill] sm:$0xff] }
 0x3fa   :  { %4220 = vmatpush1.bf16.msra.mxu0 %v7265_v35  ;;  %4284 = vmatpush1.bf16.msra.mxu1 %v7266_v34  ;;  %v7276_v35 = vld [vmem:[#allocation48_spill] sm:$0xff]  ;;  %v7277_v34 = vld [vmem:[#allocation49_spill] sm:$0xff] }
 0x3fb   :  { %4222 = vmatprep.subr.bf16.mxu0 %v7267_v29  ;;  %4286 = vmatprep.subr.bf16.mxu1 %v7268_v16  ;;  %v7278_v29 = vld [vmem:[#allocation50_spill] sm:$0xff]  ;;  %v7279_v16 = vld [vmem:[#allocation51_spill] sm:$0xff] }
 0x3fe   :  { %4224 = vmatpush1.bf16.msra.mxu0 %v7269_v22  ;;  %4288 = vmatpush1.bf16.msra.mxu1 %v7270_v23  ;;  %v7280_v22 = vld [vmem:[#allocation52_spill] sm:$0xff]  ;;  %v7281_v23 = vld [vmem:[#allocation53_spill] sm:$0xff] }
 0x3ff   :  { %4226 = vmatprep.subr.bf16.mxu0 %v7271_v52  ;;  %4290 = vmatprep.subr.bf16.mxu1 %v7272_v62  ;;  %v7282_v52 = vld [vmem:[#allocation54_spill] sm:$0xff]  ;;  %v7283_v62 = vld [vmem:[#allocation55_spill] sm:$0xff] }
 0x402   :  { %4228 = vmatpush1.bf16.msra.mxu0 %v7273_v26  ;;  %4292 = vmatpush1.bf16.msra.mxu1 %v7274_v27  ;;  %v7284_v26 = vld [vmem:[#allocation56_spill] sm:$0xff]  ;;  %v7285_v27 = vld [vmem:[#allocation57_spill] sm:$0xff] }
 0x403   :  { %4230 = vmatprep.subr.bf16.mxu0 %v7275_v4  ;;  %4294 = vmatprep.subr.bf16.mxu1 %v7276_v35  ;;  %v7286_v4 = vld [vmem:[#allocation58_spill] sm:$0xff]  ;;  %v7287_v35 = vld [vmem:[#allocation59_spill] sm:$0xff] }
 0x406   :  { %4232 = vmatpush1.bf16.msra.mxu0 %v7277_v34  ;;  %4296 = vmatpush1.bf16.msra.mxu1 %v7278_v29  ;;  %v7288_v34 = vld [vmem:[#allocation60_spill] sm:$0xff]  ;;  %v7289_v29 = vld [vmem:[#allocation61_spill] sm:$0xff] }
 0x407   :  { %4234 = vmatprep.subr.bf16.mxu0 %v7279_v16  ;;  %4298 = vmatprep.subr.bf16.mxu1 %v7280_v22  ;;  %v7290_v16 = vld [vmem:[#allocation62_spill] sm:$0xff]  ;;  %v7291_v22 = vld [vmem:[#allocation63_spill] sm:$0xff] }
 0x40a   :  { %4236 = vmatpush1.bf16.msra.mxu0 %v7281_v23  ;;  %4300 = vmatpush1.bf16.msra.mxu1 %v7282_v52  ;;  %v7292_v23 = vld [vmem:[#allocation64_spill] sm:$0xff]  ;;  %v7293_v52 = vld [vmem:[#allocation65_spill] sm:$0xff] }
 0x40b   :  { %4238 = vmatprep.subr.bf16.mxu0 %v7283_v62  ;;  %4302 = vmatprep.subr.bf16.mxu1 %v7284_v26  ;;  %v7294_v62 = vld [vmem:[#allocation66_spill] sm:$0xff]  ;;  %v7295_v26 = vld [vmem:[#allocation67_spill] sm:$0xff] }
 0x40e   :  { %4240 = vmatpush1.bf16.msra.mxu0 %v7285_v27  ;;  %4304 = vmatpush1.bf16.msra.mxu1 %v7286_v4  ;;  %v7296_v27 = vld [vmem:[#allocation68_spill] sm:$0xff]  ;;  %v7297_v4 = vld [vmem:[#allocation69_spill] sm:$0xff] }
 0x40f   :  { %4242 = vmatprep.subr.bf16.mxu0 %v7287_v35  ;;  %4306 = vmatprep.subr.bf16.mxu1 %v7288_v34  ;;  %v7298_v35 = vld [vmem:[#allocation70_spill] sm:$0xff]  ;;  %v7299_v34 = vld [vmem:[#allocation15_spill] sm:$0xff] }
 0x412   :  { %4244 = vmatpush1.bf16.msra.mxu0 %v7289_v29  ;;  %4308 = vmatpush1.bf16.msra.mxu1 %v7290_v16  ;;  %v7300_v29 = vld [vmem:[#allocation16_spill] sm:$0xff] }
 0x413   :  { %4246 = vmatprep.subr.bf16.mxu0 %v7291_v22  ;;  %4310 = vmatprep.subr.bf16.mxu1 %v7292_v23 }
 0x416   :  { %4248 = vmatpush1.bf16.msra.mxu0 %v7293_v52  ;;  %4312 = vmatpush1.bf16.msra.mxu1 %v7294_v62 }
 0x417   :  { %4250 = vmatprep.subr.bf16.mxu0 %v7295_v26  ;;  %4314 = vmatprep.subr.bf16.mxu1 %v7296_v27  ;;  %v7302_v27 = vld [vmem:[#allocation76_spill] sm:$0xff] }
 0x41a   :  { %4252 = vmatpush1.bf16.msra.mxu0 %v7297_v4  ;;  %4316 = vmatpush1.bf16.msra.mxu1 %v7298_v35 }
 0x41b   :  { %4318 = vmatprep.subr.bf16.mxu0 %v7299_v34  ;;  %4350 = vmatprep.subr.bf16.mxu1 %v7300_v29 }
 0x490   :  { %v1517_v16 = vpop.f32.mrb[20].mxu0  ;;  %v1588_v22 = vpop.f32.mrb[20].mxu1 }
 0x491   :  { %v1518_v23 = vadd.f32 %v1517_v16, %v7301_v31  ;;  %v1519_v13 = vpop.f32.mrb[21].mxu0  ;;  %v1590_v52 = vpop.f32.mrb[21].mxu1  ;;  %v1589_v35 = vadd.f32 %v1588_v22, %v7242_v3  ;;  %v7303_v22 = vld [vmem:[#allocation72_spill] sm:$0xff] }
 0x492   :  { %v1520_v62 = vadd.f32 %v1519_v13, %v7240_v30  ;;  %v1591_v4 = vadd.f32 %v1590_v52, %v7302_v27 }
 0x493   :  { %v3443_v44 = vmul.f32 -1.442695, %v1518_v23 }
 0x494   :  { %v3444_v26 = vmul.f32 -1.442695, %v1520_v62  ;;  %v3445_v56 = vmul.f32 -1.442695, %v1591_v4 }
 0x495   :  { %5266 = vpow2.f32 %v3443_v44 }
 0x496   :  { %5268 = vpow2.f32 %v3444_v26 }
 0x497   :  { %5270 = vpow2.f32 %v3445_v56 }
 0x498   :  { %5272 = vtanh.f32 %v1589_v35 }
 0x49f   :  { %v5267_v34 = vpop.eup %5266 }
 0x4a0   :  { %v5269_v53 = vpop.eup %5268  ;;  %v1596_v29 = vadd.f32 1.0, %v5267_v34 }
 0x4a1   :  { %v1602_v0 = vadd.f32 1.0, %v5269_v53  ;;  %v5271_v16 = vpop.eup %5270 }
 0x4a2   :  { %5274 = vrcp.f32 %v1596_v29  ;;  %v5273_v31 = vpop.eup %5272  ;;  %v1609_v44 = vadd.f32 1.0, %v5271_v16 }
 0x4a3   :  { %5276 = vrcp.f32 %v1602_v0 }
 0x4a4   :  { %5278 = vrcp.f32 %v1609_v44 }
 0x4ac   :  { %v5275_v13 = vpop.eup %5274 }
 0x4ad   :  { %v5277_v23 = vpop.eup %5276  ;;  %v1613_v62 = vmul.f32 %v5275_v13, %v5273_v31  ;;  %v7304_v31 = vld [vmem:[#allocation74_spill] sm:$0xff] }
 0x4ae   :  { %v1612_v26 = vmul.f32 %v5277_v23, %v6320_v60  ;;  %v5279_v60 = vpop.eup %5278 }
 0x4b0   :  { %v1683_v52 = vpop.f32.mrb[6].mxu0  ;;  %v1754_v4 = vpop.f32.mrb[6].mxu1  ;;  %v6434_v27 = vadd.f32 %v1613_v62, %v1612_v26 }
 0x4b1   :  { %v5115_v34 = vadd.f32 %v1683_v52, %v7303_v22  ;;  %v1685_v56 = vpop.f32.mrb[7].mxu0  ;;  %v1756_v35 = vpop.f32.mrb[7].mxu1  ;;  %v5131_v62 = vadd.f32 %v1754_v4, %v6079_v42 }
 0x4b2   :  { %v5116_v53 = vadd.f32 %v1685_v56, %v7183_v38  ;;  %5280 = vtanh.f32 %v6434_v27  ;;  %v5132_v16 = vadd.f32 %v1756_v35, %v7304_v31 }
 0x4b3   :  { %v3446_v0 = vmul.f32 -1.442695, %v5115_v34 }
 0x4b4   :  { %v3447_v29 = vmul.f32 -1.442695, %v5116_v53  ;;  %v3448_v23 = vmul.f32 -1.442695, %v5132_v16 }
 0x4b5   :  { %5282 = vpow2.f32 %v3446_v0 }
 0x4b6   :  { %5284 = vpow2.f32 %v3447_v29 }
 0x4b7   :  { %5286 = vpow2.f32 %v3448_v23 }
 0x4b8   :  { %5288 = vtanh.f32 %v5131_v62  ;;  %v7308_v62 = vld [vmem:[#allocation20_spill] sm:$0xff] }
 0x4bc   :  { %v5281_v13 = vpop.eup %5280 }
 0x4bd   :  { %v1616_v44 = vmul.f32 %v5281_v13, %v5279_v60 }
 0x4bf   :  { %v5283_v26 = vpop.eup %5282  ;;  %1851 = vmatprep.mubr.f32.mxu0 %v1616_v44  ;;  %1922 = vmatprep.mubr.f32.mxu1 %v1616_v44  ;;  %v7309_v44 = vld [vmem:[#allocation21_spill] sm:$0xff] }
 0x4c0   :  { %v5285_v52 = vpop.eup %5284  ;;  %v1766_v22 = vadd.f32 1.0, %v5283_v26  ;;  %v7310_v26 = vld [vmem:[#allocation22_spill] sm:$0xff] }
 0x4c1   :  { %v1772_v56 = vadd.f32 1.0, %v5285_v52  ;;  %v5287_v34 = vpop.eup %5286  ;;  %v7311_v52 = vld [vmem:[#allocation23_spill] sm:$0xff] }
 0x4c2   :  { %5290 = vrcp.f32 %v1766_v22  ;;  %v5289_v53 = vpop.eup %5288  ;;  %v1779_v31 = vadd.f32 1.0, %v5287_v34  ;;  %v7306_v22 = vld [vmem:[#allocation18_spill] sm:$0xff]  ;;  %v7313_v34 = vld [vmem:[#allocation25_spill] sm:$0xff] }
 0x4c3   :  { %5292 = vrcp.f32 %v1772_v56  ;;  %v7312_v56 = vld [vmem:[#allocation24_spill] sm:$0xff] }
 0x4c4   :  { %5294 = vrcp.f32 %v1779_v31  ;;  %v7307_v31 = vld [vmem:[#allocation19_spill] sm:$0xff] }
 0x4cc   :  { %v5291_v0 = vpop.eup %5290 }
 0x4cd   :  { %v5293_v35 = vpop.eup %5292  ;;  %v1783_v29 = vmul.f32 %v5291_v0, %v5289_v53  ;;  %v7314_v53 = vld [vmem:[#allocation26_spill] sm:$0xff]  ;;  %v7315_v0 = vld [vmem:[#allocation27_spill] sm:$0xff] }
 0x4ce   :  { %v1782_v16 = vmul.f32 %v5293_v35, %v6328_v63  ;;  %v5295_v60 = vpop.eup %5294  ;;  %v7305_v63 = vld [vmem:[#allocation17_spill] sm:$0xff]  ;;  %v7316_v35 = vld [vmem:[#allocation28_spill] sm:$0xff] }
 0x4d0   :  { %v6442_v4 = vadd.f32 %v1783_v29, %v1782_v16  ;;  %v7317_v29 = vld [vmem:[#allocation29_spill] sm:$0xff]  ;;  %v7318_v16 = vld [vmem:[#allocation30_spill] sm:$0xff] }
 0x4d2   :  { %5296 = vtanh.f32 %v6442_v4 }
 0x4dc   :  { %v5297_v13 = vpop.eup %5296 }
 0x4dd   :  { %v1786_v23 = vmul.f32 %v5297_v13, %v5295_v60  ;;  %v7319_v60 = vld [vmem:[#allocation31_spill] sm:$0xff]  ;;  %v7320_v13 = vld [vmem:[#allocation32_spill] sm:$0xff] }
 0x4df   :  { %1852 = vmatmul.mubr.f32.vlgmr.msra.gmra.mrb[22].mxu0 %v1786_v23  ;;  %1923 = vmatmul.mubr.f32.vlgmr.msra.gmra.mrb[22].mxu1 %v1786_v23 }
 0x4e0   :  { %4320 = vmatpush1.bf16.msra.mxu0 %v5708_v36  ;;  %4352 = vmatpush1.bf16.msra.mxu1 %v5713_v39 }
 0x4e1   :  { %4322 = vmatprep.subr.bf16.mxu0 %v5716_v43  ;;  %4354 = vmatprep.subr.bf16.mxu1 %v5722_v48 }
 0x4e2   :  { %2017 = vmatprep.mubr.f32.mxu0 %v7122_v17  ;;  %2088 = vmatprep.mubr.f32.mxu1 %v7122_v17 }
 0x4e4   :  { %4324 = vmatpush1.bf16.msra.mxu0 %v5726_v51  ;;  %4356 = vmatpush1.bf16.msra.mxu1 %v5730_v55 }
 0x4e5   :  { %4326 = vmatprep.subr.bf16.mxu0 %v5734_v58  ;;  %4358 = vmatprep.subr.bf16.mxu1 %v5738_v61 }
 0x4e8   :  { %4328 = vmatpush1.bf16.msra.mxu0 %v5745_v2  ;;  %4360 = vmatpush1.bf16.msra.mxu1 %v5749_v5 }
 0x4e9   :  { %4330 = vmatprep.subr.bf16.mxu0 %v5753_v8  ;;  %4362 = vmatprep.subr.bf16.mxu1 %v5757_v11 }
 0x4ec   :  { %4332 = vmatpush1.bf16.msra.mxu0 %v5764_v15  ;;  %4364 = vmatpush1.bf16.msra.mxu1 %v5768_v18 }
 0x4ed   :  { %4334 = vmatprep.subr.bf16.mxu0 %v5772_v21  ;;  %4366 = vmatprep.subr.bf16.mxu1 %v5776_v24 }
 0x4f0   :  { %4336 = vmatpush1.bf16.msra.mxu0 %v5783_v28  ;;  %4368 = vmatpush1.bf16.msra.mxu1 %v5787_v33 }
 0x4f1   :  { %4338 = vmatprep.subr.bf16.mxu0 %v5791_v37  ;;  %4370 = vmatprep.subr.bf16.mxu1 %v5795_v41 }
 0x4f4   :  { %4340 = vmatpush1.bf16.msra.mxu0 %v5802_v46  ;;  %4372 = vmatpush1.bf16.msra.mxu1 %v5806_v50 }
 0x4f5   :  { %4342 = vmatprep.subr.bf16.mxu0 %v5810_v54  ;;  %4374 = vmatprep.subr.bf16.mxu1 %v5814_v59 }
 0x4f8   :  { %4344 = vmatpush1.bf16.msra.mxu0 %v5821_v1  ;;  %4376 = vmatpush1.bf16.msra.mxu1 %v5825_v6 }
 0x4f9   :  { %4346 = vmatprep.subr.bf16.mxu0 %v5829_v10  ;;  %4378 = vmatprep.subr.bf16.mxu1 %v5833_v14 }
 0x4fc   :  { %4348 = vmatpush1.bf16.msra.mxu0 %v5840_v20  ;;  %4380 = vmatpush1.bf16.msra.mxu1 %v5844_v25 }
 0x4fd   :  { %4382 = vmatprep.subr.bf16.mxu0 %v5848_v32  ;;  %4446 = vmatprep.subr.bf16.mxu1 %v5852_v40 }
 0x4ff   :  { %2018 = vmatmul.mubr.f32.vlgmr.msra.gmra.mrb[8].mxu0 %v1786_v23  ;;  %2089 = vmatmul.mubr.f32.vlgmr.msra.gmra.mrb[8].mxu1 %v1786_v23  ;;  %v7321_v23 = vld [vmem:[#allocation33_spill] sm:$0xff] }
 0x500   :  { %4384 = vmatpush1.bf16.msra.mxu0 %v5856_v45  ;;  %4448 = vmatpush1.bf16.msra.mxu1 %v5860_v47 }
 0x501   :  { %4386 = vmatprep.subr.bf16.mxu0 %v5862_v49  ;;  %4450 = vmatprep.subr.bf16.mxu1 %v5866_v57 }
 0x504   :  { %4388 = vmatpush1.bf16.msra.mxu0 %v5872_v7  ;;  %4452 = vmatpush1.bf16.msra.mxu1 %v5876_v9 }
 0x505   :  { %4390 = vmatprep.subr.bf16.mxu0 %v5878_v12  ;;  %4454 = vmatprep.subr.bf16.mxu1 %v5881_v19 }
 0x508   :  { %4392 = vmatpush1.bf16.msra.mxu0 %v7305_v63  ;;  %4456 = vmatpush1.bf16.msra.mxu1 %v7306_v22 }
 0x509   :  { %4394 = vmatprep.subr.bf16.mxu0 %v7307_v31  ;;  %4458 = vmatprep.subr.bf16.mxu1 %v7308_v62 }
 0x50c   :  { %4396 = vmatpush1.bf16.msra.mxu0 %v7309_v44  ;;  %4460 = vmatpush1.bf16.msra.mxu1 %v7310_v26  ;;  %v7361_v26 = vld [vmem:[#allocation71_spill] sm:$0xff] }
 0x50d   :  { %4398 = vmatprep.subr.bf16.mxu0 %v7311_v52  ;;  %4462 = vmatprep.subr.bf16.mxu1 %v7312_v56  ;;  %v7322_v52 = vld [vmem:[#allocation34_spill] sm:$0xff]  ;;  %v7323_v56 = vld [vmem:[#allocation35_spill] sm:$0xff] }
 0x510   :  { %4400 = vmatpush1.bf16.msra.mxu0 %v7313_v34  ;;  %4464 = vmatpush1.bf16.msra.mxu1 %v7314_v53  ;;  %v7324_v34 = vld [vmem:[#allocation36_spill] sm:$0xff]  ;;  %v7325_v53 = vld [vmem:[#allocation37_spill] sm:$0xff] }
 0x511   :  { %4402 = vmatprep.subr.bf16.mxu0 %v7315_v0  ;;  %4466 = vmatprep.subr.bf16.mxu1 %v7316_v35  ;;  %v7326_v0 = vld [vmem:[#allocation38_spill] sm:$0xff]  ;;  %v7327_v35 = vld [vmem:[#allocation39_spill] sm:$0xff] }
 0x514   :  { %4404 = vmatpush1.bf16.msra.mxu0 %v7317_v29  ;;  %4468 = vmatpush1.bf16.msra.mxu1 %v7318_v16  ;;  %v7328_v29 = vld [vmem:[#allocation40_spill] sm:$0xff]  ;;  %v7329_v16 = vld [vmem:[#allocation41_spill] sm:$0xff] }
 0x515   :  { %4406 = vmatprep.subr.bf16.mxu0 %v7319_v60  ;;  %4470 = vmatprep.subr.bf16.mxu1 %v7320_v13  ;;  %v7330_v60 = vld [vmem:[#allocation42_spill] sm:$0xff]  ;;  %v7331_v13 = vld [vmem:[#allocation43_spill] sm:$0xff] }
 0x518   :  { %4408 = vmatpush1.bf16.msra.mxu0 %v7321_v23  ;;  %4472 = vmatpush1.bf16.msra.mxu1 %v7322_v52  ;;  %v7332_v23 = vld [vmem:[#allocation44_spill] sm:$0xff]  ;;  %v7333_v52 = vld [vmem:[#allocation45_spill] sm:$0xff] }
 0x519   :  { %4410 = vmatprep.subr.bf16.mxu0 %v7323_v56  ;;  %4474 = vmatprep.subr.bf16.mxu1 %v7324_v34  ;;  %v7334_v56 = vld [vmem:[#allocation46_spill] sm:$0xff]  ;;  %v7335_v34 = vld [vmem:[#allocation47_spill] sm:$0xff] }
 0x51c   :  { %4412 = vmatpush1.bf16.msra.mxu0 %v7325_v53  ;;  %4476 = vmatpush1.bf16.msra.mxu1 %v7326_v0  ;;  %v7336_v53 = vld [vmem:[#allocation48_spill] sm:$0xff]  ;;  %v7337_v0 = vld [vmem:[#allocation49_spill] sm:$0xff] }
 0x51d   :  { %4414 = vmatprep.subr.bf16.mxu0 %v7327_v35  ;;  %4478 = vmatprep.subr.bf16.mxu1 %v7328_v29  ;;  %v7338_v35 = vld [vmem:[#allocation50_spill] sm:$0xff]  ;;  %v7339_v29 = vld [vmem:[#allocation51_spill] sm:$0xff] }
 0x520   :  { %4416 = vmatpush1.bf16.msra.mxu0 %v7329_v16  ;;  %4480 = vmatpush1.bf16.msra.mxu1 %v7330_v60  ;;  %v7340_v16 = vld [vmem:[#allocation52_spill] sm:$0xff]  ;;  %v7341_v60 = vld [vmem:[#allocation53_spill] sm:$0xff] }
 0x521   :  { %4418 = vmatprep.subr.bf16.mxu0 %v7331_v13  ;;  %4482 = vmatprep.subr.bf16.mxu1 %v7332_v23  ;;  %v7342_v13 = vld [vmem:[#allocation54_spill] sm:$0xff]  ;;  %v7343_v23 = vld [vmem:[#allocation55_spill] sm:$0xff] }
 0x524   :  { %4420 = vmatpush1.bf16.msra.mxu0 %v7333_v52  ;;  %4484 = vmatpush1.bf16.msra.mxu1 %v7334_v56  ;;  %v7344_v52 = vld [vmem:[#allocation56_spill] sm:$0xff]  ;;  %v7345_v56 = vld [vmem:[#allocation57_spill] sm:$0xff] }
 0x525   :  { %4422 = vmatprep.subr.bf16.mxu0 %v7335_v34  ;;  %4486 = vmatprep.subr.bf16.mxu1 %v7336_v53  ;;  %v7346_v34 = vld [vmem:[#allocation58_spill] sm:$0xff]  ;;  %v7347_v53 = vld [vmem:[#allocation59_spill] sm:$0xff] }
 0x528   :  { %4424 = vmatpush1.bf16.msra.mxu0 %v7337_v0  ;;  %4488 = vmatpush1.bf16.msra.mxu1 %v7338_v35  ;;  %v7348_v0 = vld [vmem:[#allocation60_spill] sm:$0xff]  ;;  %v7349_v35 = vld [vmem:[#allocation61_spill] sm:$0xff] }
 0x529   :  { %4426 = vmatprep.subr.bf16.mxu0 %v7339_v29  ;;  %4490 = vmatprep.subr.bf16.mxu1 %v7340_v16  ;;  %v7350_v29 = vld [vmem:[#allocation62_spill] sm:$0xff]  ;;  %v7351_v16 = vld [vmem:[#allocation63_spill] sm:$0xff] }
 0x52c   :  { %4428 = vmatpush1.bf16.msra.mxu0 %v7341_v60  ;;  %4492 = vmatpush1.bf16.msra.mxu1 %v7342_v13  ;;  %v7352_v60 = vld [vmem:[#allocation64_spill] sm:$0xff]  ;;  %v7353_v13 = vld [vmem:[#allocation65_spill] sm:$0xff] }
 0x52d   :  { %4430 = vmatprep.subr.bf16.mxu0 %v7343_v23  ;;  %4494 = vmatprep.subr.bf16.mxu1 %v7344_v52  ;;  %v7354_v23 = vld [vmem:[#allocation66_spill] sm:$0xff]  ;;  %v7355_v52 = vld [vmem:[#allocation67_spill] sm:$0xff] }
 0x530   :  { %4432 = vmatpush1.bf16.msra.mxu0 %v7345_v56  ;;  %4496 = vmatpush1.bf16.msra.mxu1 %v7346_v34  ;;  %v7356_v56 = vld [vmem:[#allocation68_spill] sm:$0xff]  ;;  %v7357_v34 = vld [vmem:[#allocation69_spill] sm:$0xff] }
 0x531   :  { %4434 = vmatprep.subr.bf16.mxu0 %v7347_v53  ;;  %4498 = vmatprep.subr.bf16.mxu1 %v7348_v0  ;;  %v7358_v53 = vld [vmem:[#allocation70_spill] sm:$0xff]  ;;  %v7359_v0 = vld [vmem:[#allocation15_spill] sm:$0xff] }
 0x534   :  { %4436 = vmatpush1.bf16.msra.mxu0 %v7349_v35  ;;  %4500 = vmatpush1.bf16.msra.mxu1 %v7350_v29  ;;  %v7360_v35 = vld [vmem:[#allocation16_spill] sm:$0xff] }
 0x535   :  { %4438 = vmatprep.subr.bf16.mxu0 %v7351_v16  ;;  %4502 = vmatprep.subr.bf16.mxu1 %v7352_v60 }
 0x538   :  { %4440 = vmatpush1.bf16.msra.mxu0 %v7353_v13  ;;  %4504 = vmatpush1.bf16.msra.mxu1 %v7354_v23 }
 0x539   :  { %4442 = vmatprep.subr.bf16.mxu0 %v7355_v52  ;;  %4506 = vmatprep.subr.bf16.mxu1 %v7356_v56  ;;  %v7362_v56 = vld [vmem:[#allocation76_spill] sm:$0xff] }
 0x53c   :  { %4444 = vmatpush1.bf16.msra.mxu0 %v7357_v34  ;;  %4508 = vmatpush1.bf16.msra.mxu1 %v7358_v53 }
 0x53d   :  { %4510 = vmatprep.subr.bf16.mxu0 %v7359_v0  ;;  %4542 = vmatprep.subr.bf16.mxu1 %v7360_v35 }
 0x5b2   :  { %v1853_v29 = vpop.f32.mrb[22].mxu0  ;;  %v1924_v16 = vpop.f32.mrb[22].mxu1 }
 0x5b3   :  { %v1854_v60 = vadd.f32 %v1853_v29, %v7361_v26  ;;  %v1855_v44 = vpop.f32.mrb[23].mxu0  ;;  %v1926_v13 = vpop.f32.mrb[23].mxu1  ;;  %v1925_v53 = vadd.f32 %v1924_v16, %v7242_v3  ;;  %v7363_v16 = vld [vmem:[#allocation72_spill] sm:$0xff] }
 0x5b4   :  { %v1856_v23 = vadd.f32 %v1855_v44, %v7240_v30  ;;  %v1927_v34 = vadd.f32 %v1926_v13, %v7362_v56 }
 0x5b5   :  { %v3449_v62 = vmul.f32 -1.442695, %v1854_v60 }
 0x5b6   :  { %v3450_v52 = vmul.f32 -1.442695, %v1856_v23  ;;  %v3451_v31 = vmul.f32 -1.442695, %v1927_v34 }
 0x5b7   :  { %5298 = vpow2.f32 %v3449_v62 }
 0x5b8   :  { %5300 = vpow2.f32 %v3450_v52 }
 0x5b9   :  { %5302 = vpow2.f32 %v3451_v31 }
 0x5ba   :  { %5304 = vtanh.f32 %v1925_v53 }
 0x5c1   :  { %v5299_v0 = vpop.eup %5298 }
 0x5c2   :  { %v5301_v22 = vpop.eup %5300  ;;  %v1932_v35 = vadd.f32 1.0, %v5299_v0 }
 0x5c3   :  { %v1938_v63 = vadd.f32 1.0, %v5301_v22  ;;  %v5303_v29 = vpop.eup %5302 }
 0x5c4   :  { %5306 = vrcp.f32 %v1932_v35  ;;  %v5305_v26 = vpop.eup %5304  ;;  %v1945_v62 = vadd.f32 1.0, %v5303_v29 }
 0x5c5   :  { %5308 = vrcp.f32 %v1938_v63 }
 0x5c6   :  { %5310 = vrcp.f32 %v1945_v62 }
 0x5ce   :  { %v5307_v44 = vpop.eup %5306 }
 0x5cf   :  { %v5309_v60 = vpop.eup %5308  ;;  %v1949_v23 = vmul.f32 %v5307_v44, %v5305_v26  ;;  %v7364_v26 = vld [vmem:[#allocation74_spill] sm:$0xff] }
 0x5d0   :  { %v1948_v52 = vmul.f32 %v5309_v60, %v6434_v27  ;;  %v5311_v27 = vpop.eup %5310 }
 0x5d2   :  { %v2019_v13 = vpop.f32.mrb[8].mxu0  ;;  %v2090_v34 = vpop.f32.mrb[8].mxu1  ;;  %v6548_v56 = vadd.f32 %v1949_v23, %v1948_v52 }
 0x5d3   :  { %v5117_v0 = vadd.f32 %v2019_v13, %v7363_v16  ;;  %v2021_v31 = vpop.f32.mrb[9].mxu0  ;;  %v2092_v53 = vpop.f32.mrb[9].mxu1  ;;  %v5133_v23 = vadd.f32 %v2090_v34, %v6079_v42 }
 0x5d4   :  { %v5118_v22 = vadd.f32 %v2021_v31, %v7183_v38  ;;  %5312 = vtanh.f32 %v6548_v56  ;;  %v5134_v29 = vadd.f32 %v2092_v53, %v7364_v26 }
 0x5d5   :  { %v3452_v63 = vmul.f32 -1.442695, %v5117_v0 }
 0x5d6   :  { %v3453_v35 = vmul.f32 -1.442695, %v5118_v22  ;;  %v3454_v60 = vmul.f32 -1.442695, %v5134_v29 }
 0x5d7   :  { %5314 = vpow2.f32 %v3452_v63 }
 0x5d8   :  { %5316 = vpow2.f32 %v3453_v35 }
 0x5d9   :  { %5318 = vpow2.f32 %v3454_v60 }
 0x5da   :  { %5320 = vtanh.f32 %v5133_v23  ;;  %v7368_v23 = vld [vmem:[#allocation20_spill] sm:$0xff] }
 0x5de   :  { %v5313_v44 = vpop.eup %5312 }
 0x5df   :  { %v1952_v62 = vmul.f32 %v5313_v44, %v5311_v27 }
 0x5e1   :  { %v5315_v52 = vpop.eup %5314  ;;  %2187 = vmatprep.mubr.f32.mxu0 %v1952_v62  ;;  %2258 = vmatprep.mubr.f32.mxu1 %v1952_v62  ;;  %v7369_v62 = vld [vmem:[#allocation21_spill] sm:$0xff] }
 0x5e2   :  { %v5317_v13 = vpop.eup %5316  ;;  %v2102_v16 = vadd.f32 1.0, %v5315_v52  ;;  %v7370_v52 = vld [vmem:[#allocation22_spill] sm:$0xff] }
 0x5e3   :  { %v2108_v31 = vadd.f32 1.0, %v5317_v13  ;;  %v5319_v0 = vpop.eup %5318  ;;  %v7371_v13 = vld [vmem:[#allocation23_spill] sm:$0xff] }
 0x5e4   :  { %5322 = vrcp.f32 %v2102_v16  ;;  %v5321_v22 = vpop.eup %5320  ;;  %v2115_v26 = vadd.f32 1.0, %v5319_v0  ;;  %v7366_v16 = vld [vmem:[#allocation18_spill] sm:$0xff]  ;;  %v7373_v0 = vld [vmem:[#allocation25_spill] sm:$0xff] }
 0x5e5   :  { %5324 = vrcp.f32 %v2108_v31  ;;  %v7372_v31 = vld [vmem:[#allocation24_spill] sm:$0xff] }
 0x5e6   :  { %5326 = vrcp.f32 %v2115_v26  ;;  %v7367_v26 = vld [vmem:[#allocation19_spill] sm:$0xff] }
 0x5ee   :  { %v5323_v63 = vpop.eup %5322 }
 0x5ef   :  { %v5325_v53 = vpop.eup %5324  ;;  %v2119_v35 = vmul.f32 %v5323_v63, %v5321_v22  ;;  %v7374_v22 = vld [vmem:[#allocation26_spill] sm:$0xff]  ;;  %v7375_v63 = vld [vmem:[#allocation27_spill] sm:$0xff] }
 0x5f0   :  { %v2118_v29 = vmul.f32 %v5325_v53, %v6442_v4  ;;  %v5327_v27 = vpop.eup %5326  ;;  %v7365_v4 = vld [vmem:[#allocation17_spill] sm:$0xff]  ;;  %v7376_v53 = vld [vmem:[#allocation28_spill] sm:$0xff] }
 0x5f2   :  { %v6556_v34 = vadd.f32 %v2119_v35, %v2118_v29  ;;  %v7377_v35 = vld [vmem:[#allocation29_spill] sm:$0xff]  ;;  %v7378_v29 = vld [vmem:[#allocation30_spill] sm:$0xff] }
 0x5f4   :  { %5328 = vtanh.f32 %v6556_v34 }
 0x5fe   :  { %v5329_v44 = vpop.eup %5328 }
 0x5ff   :  { %v2122_v60 = vmul.f32 %v5329_v44, %v5327_v27  ;;  %v7379_v27 = vld [vmem:[#allocation31_spill] sm:$0xff]  ;;  %v7380_v44 = vld [vmem:[#allocation32_spill] sm:$0xff] }
 0x601   :  { %2188 = vmatmul.mubr.f32.vlgmr.msra.gmra.mrb[24].mxu0 %v2122_v60  ;;  %2259 = vmatmul.mubr.f32.vlgmr.msra.gmra.mrb[24].mxu1 %v2122_v60 }
 0x602   :  { %4512 = vmatpush1.bf16.msra.mxu0 %v5708_v36  ;;  %4544 = vmatpush1.bf16.msra.mxu1 %v5713_v39 }
 0x603   :  { %4514 = vmatprep.subr.bf16.mxu0 %v5716_v43  ;;  %4546 = vmatprep.subr.bf16.mxu1 %v5722_v48 }
 0x604   :  { %2353 = vmatprep.mubr.f32.mxu0 %v7122_v17  ;;  %2424 = vmatprep.mubr.f32.mxu1 %v7122_v17 }
 0x606   :  { %4516 = vmatpush1.bf16.msra.mxu0 %v5726_v51  ;;  %4548 = vmatpush1.bf16.msra.mxu1 %v5730_v55 }
 0x607   :  { %4518 = vmatprep.subr.bf16.mxu0 %v5734_v58  ;;  %4550 = vmatprep.subr.bf16.mxu1 %v5738_v61 }
 0x60a   :  { %4520 = vmatpush1.bf16.msra.mxu0 %v5745_v2  ;;  %4552 = vmatpush1.bf16.msra.mxu1 %v5749_v5 }
 0x60b   :  { %4522 = vmatprep.subr.bf16.mxu0 %v5753_v8  ;;  %4554 = vmatprep.subr.bf16.mxu1 %v5757_v11 }
 0x60e   :  { %4524 = vmatpush1.bf16.msra.mxu0 %v5764_v15  ;;  %4556 = vmatpush1.bf16.msra.mxu1 %v5768_v18 }
 0x60f   :  { %4526 = vmatprep.subr.bf16.mxu0 %v5772_v21  ;;  %4558 = vmatprep.subr.bf16.mxu1 %v5776_v24 }
 0x612   :  { %4528 = vmatpush1.bf16.msra.mxu0 %v5783_v28  ;;  %4560 = vmatpush1.bf16.msra.mxu1 %v5787_v33 }
 0x613   :  { %4530 = vmatprep.subr.bf16.mxu0 %v5791_v37  ;;  %4562 = vmatprep.subr.bf16.mxu1 %v5795_v41 }
 0x616   :  { %4532 = vmatpush1.bf16.msra.mxu0 %v5802_v46  ;;  %4564 = vmatpush1.bf16.msra.mxu1 %v5806_v50 }
 0x617   :  { %4534 = vmatprep.subr.bf16.mxu0 %v5810_v54  ;;  %4566 = vmatprep.subr.bf16.mxu1 %v5814_v59 }
 0x61a   :  { %4536 = vmatpush1.bf16.msra.mxu0 %v5821_v1  ;;  %4568 = vmatpush1.bf16.msra.mxu1 %v5825_v6 }
 0x61b   :  { %4538 = vmatprep.subr.bf16.mxu0 %v5829_v10  ;;  %4570 = vmatprep.subr.bf16.mxu1 %v5833_v14 }
 0x61e   :  { %4540 = vmatpush1.bf16.msra.mxu0 %v5840_v20  ;;  %4572 = vmatpush1.bf16.msra.mxu1 %v5844_v25 }
 0x61f   :  { %4574 = vmatprep.subr.bf16.mxu0 %v5848_v32  ;;  %4638 = vmatprep.subr.bf16.mxu1 %v5852_v40 }
 0x621   :  { %2354 = vmatmul.mubr.f32.vlgmr.msra.gmra.mrb[10].mxu0 %v2122_v60  ;;  %2425 = vmatmul.mubr.f32.vlgmr.msra.gmra.mrb[10].mxu1 %v2122_v60  ;;  %v7381_v60 = vld [vmem:[#allocation33_spill] sm:$0xff] }
 0x622   :  { %4576 = vmatpush1.bf16.msra.mxu0 %v5856_v45  ;;  %4640 = vmatpush1.bf16.msra.mxu1 %v5860_v47 }
 0x623   :  { %4578 = vmatprep.subr.bf16.mxu0 %v5862_v49  ;;  %4642 = vmatprep.subr.bf16.mxu1 %v5866_v57 }
 0x626   :  { %4580 = vmatpush1.bf16.msra.mxu0 %v5872_v7  ;;  %4644 = vmatpush1.bf16.msra.mxu1 %v5876_v9 }
 0x627   :  { %4582 = vmatprep.subr.bf16.mxu0 %v5878_v12  ;;  %4646 = vmatprep.subr.bf16.mxu1 %v5881_v19 }
 0x62a   :  { %4584 = vmatpush1.bf16.msra.mxu0 %v7365_v4  ;;  %4648 = vmatpush1.bf16.msra.mxu1 %v7366_v16 }
 0x62b   :  { %4586 = vmatprep.subr.bf16.mxu0 %v7367_v26  ;;  %4650 = vmatprep.subr.bf16.mxu1 %v7368_v23 }
 0x62e   :  { %4588 = vmatpush1.bf16.msra.mxu0 %v7369_v62  ;;  %4652 = vmatpush1.bf16.msra.mxu1 %v7370_v52  ;;  %v7421_v52 = vld [vmem:[#allocation71_spill] sm:$0xff] }
 0x62f   :  { %4590 = vmatprep.subr.bf16.mxu0 %v7371_v13  ;;  %4654 = vmatprep.subr.bf16.mxu1 %v7372_v31  ;;  %v7382_v13 = vld [vmem:[#allocation34_spill] sm:$0xff]  ;;  %v7383_v31 = vld [vmem:[#allocation35_spill] sm:$0xff] }
 0x632   :  { %4592 = vmatpush1.bf16.msra.mxu0 %v7373_v0  ;;  %4656 = vmatpush1.bf16.msra.mxu1 %v7374_v22  ;;  %v7384_v0 = vld [vmem:[#allocation36_spill] sm:$0xff]  ;;  %v7385_v22 = vld [vmem:[#allocation37_spill] sm:$0xff] }
 0x633   :  { %4594 = vmatprep.subr.bf16.mxu0 %v7375_v63  ;;  %4658 = vmatprep.subr.bf16.mxu1 %v7376_v53  ;;  %v7386_v63 = vld [vmem:[#allocation38_spill] sm:$0xff]  ;;  %v7387_v53 = vld [vmem:[#allocation39_spill] sm:$0xff] }
 0x636   :  { %4596 = vmatpush1.bf16.msra.mxu0 %v7377_v35  ;;  %4660 = vmatpush1.bf16.msra.mxu1 %v7378_v29  ;;  %v7388_v35 = vld [vmem:[#allocation40_spill] sm:$0xff]  ;;  %v7389_v29 = vld [vmem:[#allocation41_spill] sm:$0xff] }
 0x637   :  { %4598 = vmatprep.subr.bf16.mxu0 %v7379_v27  ;;  %4662 = vmatprep.subr.bf16.mxu1 %v7380_v44  ;;  %v7390_v27 = vld [vmem:[#allocation42_spill] sm:$0xff]  ;;  %v7391_v44 = vld [vmem:[#allocation43_spill] sm:$0xff] }
 0x63a   :  { %4600 = vmatpush1.bf16.msra.mxu0 %v7381_v60  ;;  %4664 = vmatpush1.bf16.msra.mxu1 %v7382_v13  ;;  %v7392_v60 = vld [vmem:[#allocation44_spill] sm:$0xff]  ;;  %v7393_v13 = vld [vmem:[#allocation45_spill] sm:$0xff] }
 0x63b   :  { %4602 = vmatprep.subr.bf16.mxu0 %v7383_v31  ;;  %4666 = vmatprep.subr.bf16.mxu1 %v7384_v0  ;;  %v7394_v31 = vld [vmem:[#allocation46_spill] sm:$0xff]  ;;  %v7395_v0 = vld [vmem:[#allocation47_spill] sm:$0xff] }
 0x63e   :  { %4604 = vmatpush1.bf16.msra.mxu0 %v7385_v22  ;;  %4668 = vmatpush1.bf16.msra.mxu1 %v7386_v63  ;;  %v7396_v22 = vld [vmem:[#allocation48_spill] sm:$0xff]  ;;  %v7397_v63 = vld [vmem:[#allocation49_spill] sm:$0xff] }
 0x63f   :  { %4606 = vmatprep.subr.bf16.mxu0 %v7387_v53  ;;  %4670 = vmatprep.subr.bf16.mxu1 %v7388_v35  ;;  %v7398_v53 = vld [vmem:[#allocation50_spill] sm:$0xff]  ;;  %v7399_v35 = vld [vmem:[#allocation51_spill] sm:$0xff] }
 0x642   :  { %4608 = vmatpush1.bf16.msra.mxu0 %v7389_v29  ;;  %4672 = vmatpush1.bf16.msra.mxu1 %v7390_v27  ;;  %v7400_v29 = vld [vmem:[#allocation52_spill] sm:$0xff]  ;;  %v7401_v27 = vld [vmem:[#allocation53_spill] sm:$0xff] }
 0x643   :  { %4610 = vmatprep.subr.bf16.mxu0 %v7391_v44  ;;  %4674 = vmatprep.subr.bf16.mxu1 %v7392_v60  ;;  %v7402_v44 = vld [vmem:[#allocation54_spill] sm:$0xff]  ;;  %v7403_v60 = vld [vmem:[#allocation55_spill] sm:$0xff] }
 0x646   :  { %4612 = vmatpush1.bf16.msra.mxu0 %v7393_v13  ;;  %4676 = vmatpush1.bf16.msra.mxu1 %v7394_v31  ;;  %v7404_v13 = vld [vmem:[#allocation56_spill] sm:$0xff]  ;;  %v7405_v31 = vld [vmem:[#allocation57_spill] sm:$0xff] }
 0x647   :  { %4614 = vmatprep.subr.bf16.mxu0 %v7395_v0  ;;  %4678 = vmatprep.subr.bf16.mxu1 %v7396_v22  ;;  %v7406_v0 = vld [vmem:[#allocation58_spill] sm:$0xff]  ;;  %v7407_v22 = vld [vmem:[#allocation59_spill] sm:$0xff] }
 0x64a   :  { %4616 = vmatpush1.bf16.msra.mxu0 %v7397_v63  ;;  %4680 = vmatpush1.bf16.msra.mxu1 %v7398_v53  ;;  %v7408_v63 = vld [vmem:[#allocation60_spill] sm:$0xff]  ;;  %v7409_v53 = vld [vmem:[#allocation61_spill] sm:$0xff] }
 0x64b   :  { %4618 = vmatprep.subr.bf16.mxu0 %v7399_v35  ;;  %4682 = vmatprep.subr.bf16.mxu1 %v7400_v29  ;;  %v7410_v35 = vld [vmem:[#allocation62_spill] sm:$0xff]  ;;  %v7411_v29 = vld [vmem:[#allocation63_spill] sm:$0xff] }
 0x64e   :  { %4620 = vmatpush1.bf16.msra.mxu0 %v7401_v27  ;;  %4684 = vmatpush1.bf16.msra.mxu1 %v7402_v44  ;;  %v7412_v27 = vld [vmem:[#allocation64_spill] sm:$0xff]  ;;  %v7413_v44 = vld [vmem:[#allocation65_spill] sm:$0xff] }
 0x64f   :  { %4622 = vmatprep.subr.bf16.mxu0 %v7403_v60  ;;  %4686 = vmatprep.subr.bf16.mxu1 %v7404_v13  ;;  %v7414_v60 = vld [vmem:[#allocation66_spill] sm:$0xff]  ;;  %v7415_v13 = vld [vmem:[#allocation67_spill] sm:$0xff] }
 0x652   :  { %4624 = vmatpush1.bf16.msra.mxu0 %v7405_v31  ;;  %4688 = vmatpush1.bf16.msra.mxu1 %v7406_v0  ;;  %v7416_v31 = vld [vmem:[#allocation68_spill] sm:$0xff]  ;;  %v7417_v0 = vld [vmem:[#allocation69_spill] sm:$0xff] }
 0x653   :  { %4626 = vmatprep.subr.bf16.mxu0 %v7407_v22  ;;  %4690 = vmatprep.subr.bf16.mxu1 %v7408_v63  ;;  %v7418_v22 = vld [vmem:[#allocation70_spill] sm:$0xff]  ;;  %v7419_v63 = vld [vmem:[#allocation15_spill] sm:$0xff] }
 0x656   :  { %4628 = vmatpush1.bf16.msra.mxu0 %v7409_v53  ;;  %4692 = vmatpush1.bf16.msra.mxu1 %v7410_v35  ;;  %v7420_v53 = vld [vmem:[#allocation16_spill] sm:$0xff] }
 0x657   :  { %4630 = vmatprep.subr.bf16.mxu0 %v7411_v29  ;;  %4694 = vmatprep.subr.bf16.mxu1 %v7412_v27 }
 0x65a   :  { %4632 = vmatpush1.bf16.msra.mxu0 %v7413_v44  ;;  %4696 = vmatpush1.bf16.msra.mxu1 %v7414_v60 }
 0x65b   :  { %4634 = vmatprep.subr.bf16.mxu0 %v7415_v13  ;;  %4698 = vmatprep.subr.bf16.mxu1 %v7416_v31  ;;  %v7422_v31 = vld [vmem:[#allocation76_spill] sm:$0xff] }
 0x65e   :  { %4636 = vmatpush1.bf16.msra.mxu0 %v7417_v0  ;;  %4700 = vmatpush1.bf16.msra.mxu1 %v7418_v22 }
 0x65f   :  { %4702 = vmatprep.subr.bf16.mxu0 %v7419_v63  ;;  %4734 = vmatprep.subr.bf16.mxu1 %v7420_v53 }
 0x6d4   :  { %v2189_v35 = vpop.f32.mrb[24].mxu0  ;;  %v2260_v29 = vpop.f32.mrb[24].mxu1 }
 0x6d5   :  { %v2190_v27 = vadd.f32 %v2189_v35, %v7421_v52  ;;  %v2191_v62 = vpop.f32.mrb[25].mxu0  ;;  %v2262_v44 = vpop.f32.mrb[25].mxu1  ;;  %v2261_v22 = vadd.f32 %v2260_v29, %v7242_v3  ;;  %v7423_v29 = vld [vmem:[#allocation72_spill] sm:$0xff] }
 0x6d6   :  { %v2192_v60 = vadd.f32 %v2191_v62, %v7240_v30  ;;  %v2263_v0 = vadd.f32 %v2262_v44, %v7422_v31 }
 0x6d7   :  { %v3455_v23 = vmul.f32 -1.442695, %v2190_v27 }
 0x6d8   :  { %v3456_v13 = vmul.f32 -1.442695, %v2192_v60  ;;  %v3457_v26 = vmul.f32 -1.442695, %v2263_v0 }
 0x6d9   :  { %5330 = vpow2.f32 %v3455_v23 }
 0x6da   :  { %5332 = vpow2.f32 %v3456_v13 }
 0x6db   :  { %5334 = vpow2.f32 %v3457_v26 }
 0x6dc   :  { %5336 = vtanh.f32 %v2261_v22 }
 0x6e3   :  { %v5331_v63 = vpop.eup %5330 }
 0x6e4   :  { %v5333_v16 = vpop.eup %5332  ;;  %v2268_v53 = vadd.f32 1.0, %v5331_v63 }
 0x6e5   :  { %v2274_v4 = vadd.f32 1.0, %v5333_v16  ;;  %v5335_v35 = vpop.eup %5334 }
 0x6e6   :  { %5338 = vrcp.f32 %v2268_v53  ;;  %v5337_v52 = vpop.eup %5336  ;;  %v2281_v23 = vadd.f32 1.0, %v5335_v35 }
 0x6e7   :  { %5340 = vrcp.f32 %v2274_v4 }
 0x6e8   :  { %5342 = vrcp.f32 %v2281_v23 }
 0x6f0   :  { %v5339_v62 = vpop.eup %5338 }
 0x6f1   :  { %v5341_v27 = vpop.eup %5340  ;;  %v2285_v60 = vmul.f32 %v5339_v62, %v5337_v52  ;;  %v7424_v52 = vld [vmem:[#allocation74_spill] sm:$0xff] }
 0x6f2   :  { %v2284_v13 = vmul.f32 %v5341_v27, %v6548_v56  ;;  %v5343_v56 = vpop.eup %5342 }
 0x6f4   :  { %v2355_v44 = vpop.f32.mrb[10].mxu0  ;;  %v2426_v0 = vpop.f32.mrb[10].mxu1  ;;  %v6662_v31 = vadd.f32 %v2285_v60, %v2284_v13 }
 0x6f5   :  { %v5119_v63 = vadd.f32 %v2355_v44, %v7423_v29  ;;  %v2357_v26 = vpop.f32.mrb[11].mxu0  ;;  %v2428_v22 = vpop.f32.mrb[11].mxu1  ;;  %v5135_v60 = vadd.f32 %v2426_v0, %v6079_v42 }
 0x6f6   :  { %v5120_v16 = vadd.f32 %v2357_v26, %v7183_v38  ;;  %5344 = vtanh.f32 %v6662_v31  ;;  %v5136_v35 = vadd.f32 %v2428_v22, %v7424_v52 }
 0x6f7   :  { %v3458_v4 = vmul.f32 -1.442695, %v5119_v63 }
 0x6f8   :  { %v3459_v53 = vmul.f32 -1.442695, %v5120_v16  ;;  %v3460_v27 = vmul.f32 -1.442695, %v5136_v35 }
 0x6f9   :  { %5346 = vpow2.f32 %v3458_v4 }
 0x6fa   :  { %5348 = vpow2.f32 %v3459_v53 }
 0x6fb   :  { %5350 = vpow2.f32 %v3460_v27 }
 0x6fc   :  { %5352 = vtanh.f32 %v5135_v60  ;;  %v7428_v60 = vld [vmem:[#allocation20_spill] sm:$0xff] }
 0x700   :  { %v5345_v62 = vpop.eup %5344 }
 0x701   :  { %v2288_v23 = vmul.f32 %v5345_v62, %v5343_v56 }
 0x703   :  { %v5347_v13 = vpop.eup %5346  ;;  %2523 = vmatprep.mubr.f32.mxu0 %v2288_v23  ;;  %2594 = vmatprep.mubr.f32.mxu1 %v2288_v23  ;;  %v7429_v23 = vld [vmem:[#allocation21_spill] sm:$0xff] }
 0x704   :  { %v5349_v44 = vpop.eup %5348  ;;  %v2438_v29 = vadd.f32 1.0, %v5347_v13  ;;  %v7430_v13 = vld [vmem:[#allocation22_spill] sm:$0xff] }
 0x705   :  { %v2444_v26 = vadd.f32 1.0, %v5349_v44  ;;  %v5351_v63 = vpop.eup %5350  ;;  %v7431_v44 = vld [vmem:[#allocation23_spill] sm:$0xff] }
 0x706   :  { %5354 = vrcp.f32 %v2438_v29  ;;  %v5353_v16 = vpop.eup %5352  ;;  %v2451_v52 = vadd.f32 1.0, %v5351_v63  ;;  %v7426_v29 = vld [vmem:[#allocation18_spill] sm:$0xff]  ;;  %v7433_v63 = vld [vmem:[#allocation25_spill] sm:$0xff] }
 0x707   :  { %5356 = vrcp.f32 %v2444_v26  ;;  %v7432_v26 = vld [vmem:[#allocation24_spill] sm:$0xff] }
 0x708   :  { %5358 = vrcp.f32 %v2451_v52  ;;  %v7427_v52 = vld [vmem:[#allocation19_spill] sm:$0xff] }
 0x710   :  { %v5355_v4 = vpop.eup %5354 }
 0x711   :  { %v5357_v22 = vpop.eup %5356  ;;  %v2455_v53 = vmul.f32 %v5355_v4, %v5353_v16  ;;  %v7434_v16 = vld [vmem:[#allocation26_spill] sm:$0xff]  ;;  %v7435_v4 = vld [vmem:[#allocation27_spill] sm:$0xff] }
 0x712   :  { %v2454_v35 = vmul.f32 %v5357_v22, %v6556_v34  ;;  %v5359_v56 = vpop.eup %5358  ;;  %v7425_v34 = vld [vmem:[#allocation17_spill] sm:$0xff]  ;;  %v7436_v22 = vld [vmem:[#allocation28_spill] sm:$0xff] }
 0x714   :  { %v6670_v0 = vadd.f32 %v2455_v53, %v2454_v35  ;;  %v7437_v53 = vld [vmem:[#allocation29_spill] sm:$0xff]  ;;  %v7438_v35 = vld [vmem:[#allocation30_spill] sm:$0xff] }
 0x716   :  { %5360 = vtanh.f32 %v6670_v0 }
 0x720   :  { %v5361_v62 = vpop.eup %5360 }
 0x721   :  { %v2458_v27 = vmul.f32 %v5361_v62, %v5359_v56  ;;  %v7439_v56 = vld [vmem:[#allocation31_spill] sm:$0xff]  ;;  %v7440_v62 = vld [vmem:[#allocation32_spill] sm:$0xff] }
 0x723   :  { %2524 = vmatmul.mubr.f32.vlgmr.msra.gmra.mrb[26].mxu0 %v2458_v27  ;;  %2595 = vmatmul.mubr.f32.vlgmr.msra.gmra.mrb[26].mxu1 %v2458_v27 }
 0x724   :  { %4704 = vmatpush1.bf16.msra.mxu0 %v5708_v36  ;;  %4736 = vmatpush1.bf16.msra.mxu1 %v5713_v39 }
 0x725   :  { %4706 = vmatprep.subr.bf16.mxu0 %v5716_v43  ;;  %4738 = vmatprep.subr.bf16.mxu1 %v5722_v48 }
 0x726   :  { %2689 = vmatprep.mubr.f32.mxu0 %v7122_v17  ;;  %2760 = vmatprep.mubr.f32.mxu1 %v7122_v17 }
 0x728   :  { %4708 = vmatpush1.bf16.msra.mxu0 %v5726_v51  ;;  %4740 = vmatpush1.bf16.msra.mxu1 %v5730_v55 }
 0x729   :  { %4710 = vmatprep.subr.bf16.mxu0 %v5734_v58  ;;  %4742 = vmatprep.subr.bf16.mxu1 %v5738_v61 }
 0x72c   :  { %4712 = vmatpush1.bf16.msra.mxu0 %v5745_v2  ;;  %4744 = vmatpush1.bf16.msra.mxu1 %v5749_v5 }
 0x72d   :  { %4714 = vmatprep.subr.bf16.mxu0 %v5753_v8  ;;  %4746 = vmatprep.subr.bf16.mxu1 %v5757_v11 }
 0x730   :  { %4716 = vmatpush1.bf16.msra.mxu0 %v5764_v15  ;;  %4748 = vmatpush1.bf16.msra.mxu1 %v5768_v18 }
 0x731   :  { %4718 = vmatprep.subr.bf16.mxu0 %v5772_v21  ;;  %4750 = vmatprep.subr.bf16.mxu1 %v5776_v24 }
 0x734   :  { %4720 = vmatpush1.bf16.msra.mxu0 %v5783_v28  ;;  %4752 = vmatpush1.bf16.msra.mxu1 %v5787_v33 }
 0x735   :  { %4722 = vmatprep.subr.bf16.mxu0 %v5791_v37  ;;  %4754 = vmatprep.subr.bf16.mxu1 %v5795_v41 }
 0x738   :  { %4724 = vmatpush1.bf16.msra.mxu0 %v5802_v46  ;;  %4756 = vmatpush1.bf16.msra.mxu1 %v5806_v50 }
 0x739   :  { %4726 = vmatprep.subr.bf16.mxu0 %v5810_v54  ;;  %4758 = vmatprep.subr.bf16.mxu1 %v5814_v59 }
 0x73c   :  { %4728 = vmatpush1.bf16.msra.mxu0 %v5821_v1  ;;  %4760 = vmatpush1.bf16.msra.mxu1 %v5825_v6 }
 0x73d   :  { %4730 = vmatprep.subr.bf16.mxu0 %v5829_v10  ;;  %4762 = vmatprep.subr.bf16.mxu1 %v5833_v14 }
 0x740   :  { %4732 = vmatpush1.bf16.msra.mxu0 %v5840_v20  ;;  %4764 = vmatpush1.bf16.msra.mxu1 %v5844_v25 }
 0x741   :  { %4766 = vmatprep.subr.bf16.mxu0 %v5848_v32  ;;  %4830 = vmatprep.subr.bf16.mxu1 %v5852_v40 }
 0x743   :  { %2690 = vmatmul.mubr.f32.vlgmr.msra.gmra.mrb[12].mxu0 %v2458_v27  ;;  %2761 = vmatmul.mubr.f32.vlgmr.msra.gmra.mrb[12].mxu1 %v2458_v27  ;;  %v7441_v27 = vld [vmem:[#allocation33_spill] sm:$0xff] }
 0x744   :  { %4768 = vmatpush1.bf16.msra.mxu0 %v5856_v45  ;;  %4832 = vmatpush1.bf16.msra.mxu1 %v5860_v47 }
 0x745   :  { %4770 = vmatprep.subr.bf16.mxu0 %v5862_v49  ;;  %4834 = vmatprep.subr.bf16.mxu1 %v5866_v57 }
 0x748   :  { %4772 = vmatpush1.bf16.msra.mxu0 %v5872_v7  ;;  %4836 = vmatpush1.bf16.msra.mxu1 %v5876_v9 }
 0x749   :  { %4774 = vmatprep.subr.bf16.mxu0 %v5878_v12  ;;  %4838 = vmatprep.subr.bf16.mxu1 %v5881_v19 }
 0x74c   :  { %4776 = vmatpush1.bf16.msra.mxu0 %v7425_v34  ;;  %4840 = vmatpush1.bf16.msra.mxu1 %v7426_v29 }
 0x74d   :  { %4778 = vmatprep.subr.bf16.mxu0 %v7427_v52  ;;  %4842 = vmatprep.subr.bf16.mxu1 %v7428_v60 }
 0x750   :  { %4780 = vmatpush1.bf16.msra.mxu0 %v7429_v23  ;;  %4844 = vmatpush1.bf16.msra.mxu1 %v7430_v13  ;;  %v7481_v13 = vld [vmem:[#allocation71_spill] sm:$0xff] }
 0x751   :  { %4782 = vmatprep.subr.bf16.mxu0 %v7431_v44  ;;  %4846 = vmatprep.subr.bf16.mxu1 %v7432_v26  ;;  %v7442_v44 = vld [vmem:[#allocation34_spill] sm:$0xff]  ;;  %v7443_v26 = vld [vmem:[#allocation35_spill] sm:$0xff] }
 0x754   :  { %4784 = vmatpush1.bf16.msra.mxu0 %v7433_v63  ;;  %4848 = vmatpush1.bf16.msra.mxu1 %v7434_v16  ;;  %v7444_v63 = vld [vmem:[#allocation36_spill] sm:$0xff]  ;;  %v7445_v16 = vld [vmem:[#allocation37_spill] sm:$0xff] }
 0x755   :  { %4786 = vmatprep.subr.bf16.mxu0 %v7435_v4  ;;  %4850 = vmatprep.subr.bf16.mxu1 %v7436_v22  ;;  %v7446_v4 = vld [vmem:[#allocation38_spill] sm:$0xff]  ;;  %v7447_v22 = vld [vmem:[#allocation39_spill] sm:$0xff] }
 0x758   :  { %4788 = vmatpush1.bf16.msra.mxu0 %v7437_v53  ;;  %4852 = vmatpush1.bf16.msra.mxu1 %v7438_v35  ;;  %v7448_v53 = vld [vmem:[#allocation40_spill] sm:$0xff]  ;;  %v7449_v35 = vld [vmem:[#allocation41_spill] sm:$0xff] }
 0x759   :  { %4790 = vmatprep.subr.bf16.mxu0 %v7439_v56  ;;  %4854 = vmatprep.subr.bf16.mxu1 %v7440_v62  ;;  %v7450_v56 = vld [vmem:[#allocation42_spill] sm:$0xff]  ;;  %v7451_v62 = vld [vmem:[#allocation43_spill] sm:$0xff] }
 0x75c   :  { %4792 = vmatpush1.bf16.msra.mxu0 %v7441_v27  ;;  %4856 = vmatpush1.bf16.msra.mxu1 %v7442_v44  ;;  %v7452_v27 = vld [vmem:[#allocation44_spill] sm:$0xff]  ;;  %v7453_v44 = vld [vmem:[#allocation45_spill] sm:$0xff] }
 0x75d   :  { %4794 = vmatprep.subr.bf16.mxu0 %v7443_v26  ;;  %4858 = vmatprep.subr.bf16.mxu1 %v7444_v63  ;;  %v7454_v26 = vld [vmem:[#allocation46_spill] sm:$0xff]  ;;  %v7455_v63 = vld [vmem:[#allocation47_spill] sm:$0xff] }
 0x760   :  { %4796 = vmatpush1.bf16.msra.mxu0 %v7445_v16  ;;  %4860 = vmatpush1.bf16.msra.mxu1 %v7446_v4  ;;  %v7456_v16 = vld [vmem:[#allocation48_spill] sm:$0xff]  ;;  %v7457_v4 = vld [vmem:[#allocation49_spill] sm:$0xff] }
 0x761   :  { %4798 = vmatprep.subr.bf16.mxu0 %v7447_v22  ;;  %4862 = vmatprep.subr.bf16.mxu1 %v7448_v53  ;;  %v7458_v22 = vld [vmem:[#allocation50_spill] sm:$0xff]  ;;  %v7459_v53 = vld [vmem:[#allocation51_spill] sm:$0xff] }
 0x764   :  { %4800 = vmatpush1.bf16.msra.mxu0 %v7449_v35  ;;  %4864 = vmatpush1.bf16.msra.mxu1 %v7450_v56  ;;  %v7460_v35 = vld [vmem:[#allocation52_spill] sm:$0xff]  ;;  %v7461_v56 = vld [vmem:[#allocation53_spill] sm:$0xff] }
 0x765   :  { %4802 = vmatprep.subr.bf16.mxu0 %v7451_v62  ;;  %4866 = vmatprep.subr.bf16.mxu1 %v7452_v27  ;;  %v7462_v62 = vld [vmem:[#allocation54_spill] sm:$0xff]  ;;  %v7463_v27 = vld [vmem:[#allocation55_spill] sm:$0xff] }
 0x768   :  { %4804 = vmatpush1.bf16.msra.mxu0 %v7453_v44  ;;  %4868 = vmatpush1.bf16.msra.mxu1 %v7454_v26  ;;  %v7464_v44 = vld [vmem:[#allocation56_spill] sm:$0xff]  ;;  %v7465_v26 = vld [vmem:[#allocation57_spill] sm:$0xff] }
 0x769   :  { %4806 = vmatprep.subr.bf16.mxu0 %v7455_v63  ;;  %4870 = vmatprep.subr.bf16.mxu1 %v7456_v16  ;;  %v7466_v63 = vld [vmem:[#allocation58_spill] sm:$0xff]  ;;  %v7467_v16 = vld [vmem:[#allocation59_spill] sm:$0xff] }
 0x76c   :  { %4808 = vmatpush1.bf16.msra.mxu0 %v7457_v4  ;;  %4872 = vmatpush1.bf16.msra.mxu1 %v7458_v22  ;;  %v7468_v4 = vld [vmem:[#allocation60_spill] sm:$0xff]  ;;  %v7469_v22 = vld [vmem:[#allocation61_spill] sm:$0xff] }
 0x76d   :  { %4810 = vmatprep.subr.bf16.mxu0 %v7459_v53  ;;  %4874 = vmatprep.subr.bf16.mxu1 %v7460_v35  ;;  %v7470_v53 = vld [vmem:[#allocation62_spill] sm:$0xff]  ;;  %v7471_v35 = vld [vmem:[#allocation63_spill] sm:$0xff] }
 0x770   :  { %4812 = vmatpush1.bf16.msra.mxu0 %v7461_v56  ;;  %4876 = vmatpush1.bf16.msra.mxu1 %v7462_v62  ;;  %v7472_v56 = vld [vmem:[#allocation64_spill] sm:$0xff]  ;;  %v7473_v62 = vld [vmem:[#allocation65_spill] sm:$0xff] }
 0x771   :  { %4814 = vmatprep.subr.bf16.mxu0 %v7463_v27  ;;  %4878 = vmatprep.subr.bf16.mxu1 %v7464_v44  ;;  %v7474_v27 = vld [vmem:[#allocation66_spill] sm:$0xff]  ;;  %v7475_v44 = vld [vmem:[#allocation67_spill] sm:$0xff] }
 0x774   :  { %4816 = vmatpush1.bf16.msra.mxu0 %v7465_v26  ;;  %4880 = vmatpush1.bf16.msra.mxu1 %v7466_v63  ;;  %v7476_v26 = vld [vmem:[#allocation68_spill] sm:$0xff]  ;;  %v7477_v63 = vld [vmem:[#allocation69_spill] sm:$0xff] }
 0x775   :  { %4818 = vmatprep.subr.bf16.mxu0 %v7467_v16  ;;  %4882 = vmatprep.subr.bf16.mxu1 %v7468_v4  ;;  %v7478_v16 = vld [vmem:[#allocation70_spill] sm:$0xff]  ;;  %v7479_v4 = vld [vmem:[#allocation15_spill] sm:$0xff] }
 0x778   :  { %4820 = vmatpush1.bf16.msra.mxu0 %v7469_v22  ;;  %4884 = vmatpush1.bf16.msra.mxu1 %v7470_v53  ;;  %v7480_v22 = vld [vmem:[#allocation16_spill] sm:$0xff] }
 0x779   :  { %4822 = vmatprep.subr.bf16.mxu0 %v7471_v35  ;;  %4886 = vmatprep.subr.bf16.mxu1 %v7472_v56 }
 0x77c   :  { %4824 = vmatpush1.bf16.msra.mxu0 %v7473_v62  ;;  %4888 = vmatpush1.bf16.msra.mxu1 %v7474_v27 }
 0x77d   :  { %4826 = vmatprep.subr.bf16.mxu0 %v7475_v44  ;;  %4890 = vmatprep.subr.bf16.mxu1 %v7476_v26  ;;  %v7482_v26 = vld [vmem:[#allocation76_spill] sm:$0xff] }
 0x780   :  { %4828 = vmatpush1.bf16.msra.mxu0 %v7477_v63  ;;  %4892 = vmatpush1.bf16.msra.mxu1 %v7478_v16 }
 0x781   :  { %4894 = vmatprep.subr.bf16.mxu0 %v7479_v4  ;;  %4926 = vmatprep.subr.bf16.mxu1 %v7480_v22 }
 0x7f6   :  { %v2525_v53 = vpop.f32.mrb[26].mxu0  ;;  %v2596_v35 = vpop.f32.mrb[26].mxu1 }
 0x7f7   :  { %v2526_v56 = vadd.f32 %v2525_v53, %v7481_v13  ;;  %v2527_v23 = vpop.f32.mrb[27].mxu0  ;;  %v2598_v62 = vpop.f32.mrb[27].mxu1  ;;  %v2597_v16 = vadd.f32 %v2596_v35, %v7242_v3  ;;  %v7483_v35 = vld [vmem:[#allocation72_spill] sm:$0xff] }
 0x7f8   :  { %v2528_v27 = vadd.f32 %v2527_v23, %v7240_v30  ;;  %v2599_v63 = vadd.f32 %v2598_v62, %v7482_v26 }
 0x7f9   :  { %v3461_v60 = vmul.f32 -1.442695, %v2526_v56 }
 0x7fa   :  { %v3462_v44 = vmul.f32 -1.442695, %v2528_v27  ;;  %v3463_v52 = vmul.f32 -1.442695, %v2599_v63 }
 0x7fb   :  { %5362 = vpow2.f32 %v3461_v60 }
 0x7fc   :  { %5364 = vpow2.f32 %v3462_v44 }
 0x7fd   :  { %5366 = vpow2.f32 %v3463_v52 }
 0x7fe   :  { %5368 = vtanh.f32 %v2597_v16 }
 0x805   :  { %v5363_v4 = vpop.eup %5362 }
 0x806   :  { %v5365_v29 = vpop.eup %5364  ;;  %v2604_v22 = vadd.f32 1.0, %v5363_v4 }
 0x807   :  { %v2610_v34 = vadd.f32 1.0, %v5365_v29  ;;  %v5367_v53 = vpop.eup %5366 }
 0x808   :  { %5370 = vrcp.f32 %v2604_v22  ;;  %v5369_v13 = vpop.eup %5368  ;;  %v2617_v60 = vadd.f32 1.0, %v5367_v53 }
 0x809   :  { %5372 = vrcp.f32 %v2610_v34 }
 0x80a   :  { %5374 = vrcp.f32 %v2617_v60 }
 0x812   :  { %v5371_v23 = vpop.eup %5370 }
 0x813   :  { %v5373_v56 = vpop.eup %5372  ;;  %v2621_v27 = vmul.f32 %v5371_v23, %v5369_v13  ;;  %v7484_v13 = vld [vmem:[#allocation74_spill] sm:$0xff] }
 0x814   :  { %v2620_v44 = vmul.f32 %v5373_v56, %v6662_v31  ;;  %v5375_v31 = vpop.eup %5374 }
 0x816   :  { %v2691_v62 = vpop.f32.mrb[12].mxu0  ;;  %v2762_v63 = vpop.f32.mrb[12].mxu1  ;;  %v6776_v26 = vadd.f32 %v2621_v27, %v2620_v44 }
 0x817   :  { %v5121_v4 = vadd.f32 %v2691_v62, %v7483_v35  ;;  %v2693_v52 = vpop.f32.mrb[13].mxu0  ;;  %v2764_v16 = vpop.f32.mrb[13].mxu1  ;;  %v5137_v27 = vadd.f32 %v2762_v63, %v6079_v42 }
 0x818   :  { %v5122_v29 = vadd.f32 %v2693_v52, %v7183_v38  ;;  %5376 = vtanh.f32 %v6776_v26  ;;  %v5138_v53 = vadd.f32 %v2764_v16, %v7484_v13 }
 0x819   :  { %v3464_v34 = vmul.f32 -1.442695, %v5121_v4 }
 0x81a   :  { %v3465_v22 = vmul.f32 -1.442695, %v5122_v29  ;;  %v3466_v56 = vmul.f32 -1.442695, %v5138_v53 }
 0x81b   :  { %5378 = vpow2.f32 %v3464_v34 }
 0x81c   :  { %5380 = vpow2.f32 %v3465_v22 }
 0x81d   :  { %5382 = vpow2.f32 %v3466_v56 }
 0x81e   :  { %5384 = vtanh.f32 %v5137_v27  ;;  %v7528_v27 = vld [vmem:[#allocation60_spill] sm:$0xff] }
 0x822   :  { %v5377_v23 = vpop.eup %5376 }
 0x823   :  { %v2624_v60 = vmul.f32 %v5377_v23, %v5375_v31 }
 0x825   :  { %v5379_v44 = vpop.eup %5378  ;;  %2859 = vmatprep.mubr.f32.mxu0 %v2624_v60  ;;  %2930 = vmatprep.mubr.f32.mxu1 %v2624_v60  ;;  %v7529_v60 = vld [vmem:[#allocation61_spill] sm:$0xff] }
 0x826   :  { %v5381_v62 = vpop.eup %5380  ;;  %v2774_v35 = vadd.f32 1.0, %v5379_v44  ;;  %v7530_v44 = vld [vmem:[#allocation62_spill] sm:$0xff] }
 0x827   :  { %v2780_v52 = vadd.f32 1.0, %v5381_v62  ;;  %v5383_v4 = vpop.eup %5382  ;;  %v7531_v62 = vld [vmem:[#allocation63_spill] sm:$0xff] }
 0x828   :  { %5386 = vrcp.f32 %v2774_v35  ;;  %v5385_v29 = vpop.eup %5384  ;;  %v2787_v13 = vadd.f32 1.0, %v5383_v4  ;;  %v7526_v35 = vld [vmem:[#allocation58_spill] sm:$0xff]  ;;  %v7533_v4 = vld [vmem:[#allocation65_spill] sm:$0xff] }
 0x829   :  { %5388 = vrcp.f32 %v2780_v52  ;;  %v7532_v52 = vld [vmem:[#allocation64_spill] sm:$0xff] }
 0x82a   :  { %5390 = vrcp.f32 %v2787_v13  ;;  %v7527_v13 = vld [vmem:[#allocation59_spill] sm:$0xff] }
 0x832   :  { %v5387_v34 = vpop.eup %5386 }
 0x833   :  { %v5389_v16 = vpop.eup %5388  ;;  %v2791_v22 = vmul.f32 %v5387_v34, %v5385_v29  ;;  %v7534_v29 = vld [vmem:[#allocation66_spill] sm:$0xff]  ;;  %v7535_v34 = vld [vmem:[#allocation67_spill] sm:$0xff] }
 0x834   :  { %v2790_v53 = vmul.f32 %v5389_v16, %v6670_v0  ;;  %v5391_v31 = vpop.eup %5390  ;;  %v7525_v0 = vld [vmem:[#allocation57_spill] sm:$0xff]  ;;  %v7536_v16 = vld [vmem:[#allocation68_spill] sm:$0xff] }
 0x836   :  { %v6784_v63 = vadd.f32 %v2791_v22, %v2790_v53  ;;  %v7537_v22 = vld [vmem:[#allocation69_spill] sm:$0xff]  ;;  %v7538_v53 = vld [vmem:[#allocation70_spill] sm:$0xff] }
 0x838   :  { %5392 = vtanh.f32 %v6784_v63 }
 0x842   :  { %v5393_v23 = vpop.eup %5392 }
 0x843   :  { %v2794_v56 = vmul.f32 %v5393_v23, %v5391_v31 }
 0x845   :  { %2860 = vmatmul.mubr.f32.vlgmr.msra.gmra.mrb[28].mxu0 %v2794_v56  ;;  %2931 = vmatmul.mubr.f32.vlgmr.msra.gmra.mrb[28].mxu1 %v2794_v56 }
 0x846   :  { %4896 = vmatpush1.bf16.msra.mxu0 %v5708_v36  ;;  %4928 = vmatpush1.bf16.msra.mxu1 %v5713_v39  ;;  %v7485_v36 = vld [vmem:[#allocation17_spill] sm:$0xff]  ;;  %v7486_v39 = vld [vmem:[#allocation18_spill] sm:$0xff] }
 0x847   :  { %4898 = vmatprep.subr.bf16.mxu0 %v5716_v43  ;;  %4930 = vmatprep.subr.bf16.mxu1 %v5722_v48  ;;  %v7487_v43 = vld [vmem:[#allocation19_spill] sm:$0xff]  ;;  %v7488_v48 = vld [vmem:[#allocation20_spill] sm:$0xff] }
 0x848   :  { %3025 = vmatprep.mubr.f32.mxu0 %v7122_v17  ;;  %3096 = vmatprep.mubr.f32.mxu1 %v7122_v17 }
 0x84a   :  { %4900 = vmatpush1.bf16.msra.mxu0 %v5726_v51  ;;  %4932 = vmatpush1.bf16.msra.mxu1 %v5730_v55  ;;  %v7489_v51 = vld [vmem:[#allocation21_spill] sm:$0xff]  ;;  %v7490_v55 = vld [vmem:[#allocation22_spill] sm:$0xff] }
 0x84b   :  { %4902 = vmatprep.subr.bf16.mxu0 %v5734_v58  ;;  %4934 = vmatprep.subr.bf16.mxu1 %v5738_v61  ;;  %v7491_v58 = vld [vmem:[#allocation23_spill] sm:$0xff]  ;;  %v7492_v61 = vld [vmem:[#allocation24_spill] sm:$0xff] }
 0x84e   :  { %4904 = vmatpush1.bf16.msra.mxu0 %v5745_v2  ;;  %4936 = vmatpush1.bf16.msra.mxu1 %v5749_v5  ;;  %v7493_v2 = vld [vmem:[#allocation25_spill] sm:$0xff]  ;;  %v7494_v5 = vld [vmem:[#allocation26_spill] sm:$0xff] }
 0x84f   :  { %4906 = vmatprep.subr.bf16.mxu0 %v5753_v8  ;;  %4938 = vmatprep.subr.bf16.mxu1 %v5757_v11  ;;  %v7495_v8 = vld [vmem:[#allocation27_spill] sm:$0xff]  ;;  %v7496_v11 = vld [vmem:[#allocation28_spill] sm:$0xff] }
 0x852   :  { %4908 = vmatpush1.bf16.msra.mxu0 %v5764_v15  ;;  %4940 = vmatpush1.bf16.msra.mxu1 %v5768_v18  ;;  %v7497_v15 = vld [vmem:[#allocation29_spill] sm:$0xff]  ;;  %v7498_v18 = vld [vmem:[#allocation30_spill] sm:$0xff] }
 0x853   :  { %4910 = vmatprep.subr.bf16.mxu0 %v5772_v21  ;;  %4942 = vmatprep.subr.bf16.mxu1 %v5776_v24  ;;  %v7499_v21 = vld [vmem:[#allocation31_spill] sm:$0xff]  ;;  %v7500_v24 = vld [vmem:[#allocation32_spill] sm:$0xff] }
 0x856   :  { %4912 = vmatpush1.bf16.msra.mxu0 %v5783_v28  ;;  %4944 = vmatpush1.bf16.msra.mxu1 %v5787_v33  ;;  %v7501_v28 = vld [vmem:[#allocation33_spill] sm:$0xff]  ;;  %v7502_v33 = vld [vmem:[#allocation34_spill] sm:$0xff] }
 0x857   :  { %4914 = vmatprep.subr.bf16.mxu0 %v5791_v37  ;;  %4946 = vmatprep.subr.bf16.mxu1 %v5795_v41  ;;  %v7503_v37 = vld [vmem:[#allocation35_spill] sm:$0xff]  ;;  %v7504_v41 = vld [vmem:[#allocation36_spill] sm:$0xff] }
 0x85a   :  { %4916 = vmatpush1.bf16.msra.mxu0 %v5802_v46  ;;  %4948 = vmatpush1.bf16.msra.mxu1 %v5806_v50  ;;  %v7505_v46 = vld [vmem:[#allocation37_spill] sm:$0xff]  ;;  %v7506_v50 = vld [vmem:[#allocation38_spill] sm:$0xff] }
 0x85b   :  { %4918 = vmatprep.subr.bf16.mxu0 %v5810_v54  ;;  %4950 = vmatprep.subr.bf16.mxu1 %v5814_v59  ;;  %v7507_v54 = vld [vmem:[#allocation39_spill] sm:$0xff]  ;;  %v7508_v59 = vld [vmem:[#allocation40_spill] sm:$0xff] }
 0x85e   :  { %4920 = vmatpush1.bf16.msra.mxu0 %v5821_v1  ;;  %4952 = vmatpush1.bf16.msra.mxu1 %v5825_v6  ;;  %v7509_v1 = vld [vmem:[#allocation41_spill] sm:$0xff]  ;;  %v7510_v6 = vld [vmem:[#allocation42_spill] sm:$0xff] }
 0x85f   :  { %4922 = vmatprep.subr.bf16.mxu0 %v5829_v10  ;;  %4954 = vmatprep.subr.bf16.mxu1 %v5833_v14  ;;  %v7511_v10 = vld [vmem:[#allocation43_spill] sm:$0xff]  ;;  %v7512_v14 = vld [vmem:[#allocation44_spill] sm:$0xff] }
 0x862   :  { %4924 = vmatpush1.bf16.msra.mxu0 %v5840_v20  ;;  %4956 = vmatpush1.bf16.msra.mxu1 %v5844_v25  ;;  %v7513_v20 = vld [vmem:[#allocation45_spill] sm:$0xff]  ;;  %v7514_v25 = vld [vmem:[#allocation46_spill] sm:$0xff] }
 0x863   :  { %4958 = vmatprep.subr.bf16.mxu0 %v5848_v32  ;;  %5022 = vmatprep.subr.bf16.mxu1 %v5852_v40  ;;  %v7515_v32 = vld [vmem:[#allocation47_spill] sm:$0xff]  ;;  %v7516_v40 = vld [vmem:[#allocation48_spill] sm:$0xff] }
 0x865   :  { %3026 = vmatmul.mubr.f32.vlgmr.msra.gmra.mrb[14].mxu0 %v2794_v56  ;;  %3097 = vmatmul.mubr.f32.vlgmr.msra.gmra.mrb[14].mxu1 %v2794_v56  ;;  %v7539_v56 = vld [vmem:[#allocation71_spill] sm:$0xff] }
 0x866   :  { %4960 = vmatpush1.bf16.msra.mxu0 %v5856_v45  ;;  %5024 = vmatpush1.bf16.msra.mxu1 %v5860_v47  ;;  %v7517_v45 = vld [vmem:[#allocation49_spill] sm:$0xff]  ;;  %v7518_v47 = vld [vmem:[#allocation50_spill] sm:$0xff] }
 0x867   :  { %4962 = vmatprep.subr.bf16.mxu0 %v5862_v49  ;;  %5026 = vmatprep.subr.bf16.mxu1 %v5866_v57  ;;  %v7519_v49 = vld [vmem:[#allocation51_spill] sm:$0xff]  ;;  %v7520_v57 = vld [vmem:[#allocation52_spill] sm:$0xff] }
 0x86a   :  { %4964 = vmatpush1.bf16.msra.mxu0 %v5872_v7  ;;  %5028 = vmatpush1.bf16.msra.mxu1 %v5876_v9  ;;  %v7521_v7 = vld [vmem:[#allocation53_spill] sm:$0xff]  ;;  %v7522_v9 = vld [vmem:[#allocation54_spill] sm:$0xff] }
 0x86b   :  { %4966 = vmatprep.subr.bf16.mxu0 %v5878_v12  ;;  %5030 = vmatprep.subr.bf16.mxu1 %v5881_v19  ;;  %v7523_v12 = vld [vmem:[#allocation55_spill] sm:$0xff]  ;;  %v7524_v19 = vld [vmem:[#allocation56_spill] sm:$0xff] }
 0x86e   :  { %4968 = vmatpush1.bf16.msra.mxu0 %v7485_v36  ;;  %5032 = vmatpush1.bf16.msra.mxu1 %v7486_v39 }
 0x86f   :  { %4970 = vmatprep.subr.bf16.mxu0 %v7487_v43  ;;  %5034 = vmatprep.subr.bf16.mxu1 %v7488_v48 }
 0x872   :  { %4972 = vmatpush1.bf16.msra.mxu0 %v7489_v51  ;;  %5036 = vmatpush1.bf16.msra.mxu1 %v7490_v55 }
 0x873   :  { %4974 = vmatprep.subr.bf16.mxu0 %v7491_v58  ;;  %5038 = vmatprep.subr.bf16.mxu1 %v7492_v61  ;;  %v7540_v58 = vld [vmem:[#allocation76_spill] sm:$0xff] }
 0x876   :  { %4976 = vmatpush1.bf16.msra.mxu0 %v7493_v2  ;;  %5040 = vmatpush1.bf16.msra.mxu1 %v7494_v5 }
 0x877   :  { %4978 = vmatprep.subr.bf16.mxu0 %v7495_v8  ;;  %5042 = vmatprep.subr.bf16.mxu1 %v7496_v11 }
 0x87a   :  { %4980 = vmatpush1.bf16.msra.mxu0 %v7497_v15  ;;  %5044 = vmatpush1.bf16.msra.mxu1 %v7498_v18 }
 0x87b   :  { %4982 = vmatprep.subr.bf16.mxu0 %v7499_v21  ;;  %5046 = vmatprep.subr.bf16.mxu1 %v7500_v24 }
 0x87e   :  { %4984 = vmatpush1.bf16.msra.mxu0 %v7501_v28  ;;  %5048 = vmatpush1.bf16.msra.mxu1 %v7502_v33 }
 0x87f   :  { %4986 = vmatprep.subr.bf16.mxu0 %v7503_v37  ;;  %5050 = vmatprep.subr.bf16.mxu1 %v7504_v41 }
 0x882   :  { %4988 = vmatpush1.bf16.msra.mxu0 %v7505_v46  ;;  %5052 = vmatpush1.bf16.msra.mxu1 %v7506_v50 }
 0x883   :  { %4990 = vmatprep.subr.bf16.mxu0 %v7507_v54  ;;  %5054 = vmatprep.subr.bf16.mxu1 %v7508_v59 }
 0x886   :  { %4992 = vmatpush1.bf16.msra.mxu0 %v7509_v1  ;;  %5056 = vmatpush1.bf16.msra.mxu1 %v7510_v6  ;;  %v7541_v1 = vld [vmem:[#allocation72_spill] sm:$0xff] }
 0x887   :  { %4994 = vmatprep.subr.bf16.mxu0 %v7511_v10  ;;  %5058 = vmatprep.subr.bf16.mxu1 %v7512_v14 }
 0x88a   :  { %4996 = vmatpush1.bf16.msra.mxu0 %v7513_v20  ;;  %5060 = vmatpush1.bf16.msra.mxu1 %v7514_v25 }
 0x88b   :  { %4998 = vmatprep.subr.bf16.mxu0 %v7515_v32  ;;  %5062 = vmatprep.subr.bf16.mxu1 %v7516_v40  ;;  %v7542_v40 = vld [vmem:[#allocation74_spill] sm:$0xff] }
 0x88e   :  { %5000 = vmatpush1.bf16.msra.mxu0 %v7517_v45  ;;  %5064 = vmatpush1.bf16.msra.mxu1 %v7518_v47 }
 0x88f   :  { %5002 = vmatprep.subr.bf16.mxu0 %v7519_v49  ;;  %5066 = vmatprep.subr.bf16.mxu1 %v7520_v57 }
 0x892   :  { %5004 = vmatpush1.bf16.msra.mxu0 %v7521_v7  ;;  %5068 = vmatpush1.bf16.msra.mxu1 %v7522_v9 }
 0x893   :  { %5006 = vmatprep.subr.bf16.mxu0 %v7523_v12  ;;  %5070 = vmatprep.subr.bf16.mxu1 %v7524_v19 }
 0x896   :  { %5008 = vmatpush1.bf16.msra.mxu0 %v7525_v0  ;;  %5072 = vmatpush1.bf16.msra.mxu1 %v7526_v35 }
 0x897   :  { %5010 = vmatprep.subr.bf16.mxu0 %v7527_v13  ;;  %5074 = vmatprep.subr.bf16.mxu1 %v7528_v27 }
 0x89a   :  { %5012 = vmatpush1.bf16.msra.mxu0 %v7529_v60  ;;  %5076 = vmatpush1.bf16.msra.mxu1 %v7530_v44 }
 0x89b   :  { %5014 = vmatprep.subr.bf16.mxu0 %v7531_v62  ;;  %5078 = vmatprep.subr.bf16.mxu1 %v7532_v52 }
 0x89e   :  { %5016 = vmatpush1.bf16.msra.mxu0 %v7533_v4  ;;  %5080 = vmatpush1.bf16.msra.mxu1 %v7534_v29 }
 0x89f   :  { %5018 = vmatprep.subr.bf16.mxu0 %v7535_v34  ;;  %5082 = vmatprep.subr.bf16.mxu1 %v7536_v16  ;;  %v3297_v34 = vld [vmem:[#allocation8] sm:$0xff]  ;;  %v3298_v16 = vld [vmem:[#allocation8 + $0x8] sm:$0xff] }
 0x8a2   :  { %5020 = vmatpush1.bf16.msra.mxu0 %v7537_v22  ;;  %5084 = vmatpush1.bf16.msra.mxu1 %v7538_v53  ;;  %v5086_v22 = vpack.c.bf16 %v3298_v16, %v3297_v34  ;;  %v5570_v53 = vmov 0.0|0.0  }
 0x8a3   :  { %5085 = vmatprep.subr.bf16.mxu0 %v5570_v53 }
 0x918   :  { %v2861_v31 = vpop.f32.mrb[28].mxu0  ;;  %v2932_v23 = vpop.f32.mrb[28].mxu1 }
 0x919   :  { %v2862_v36 = vadd.f32 %v2861_v31, %v7539_v56  ;;  %v2863_v39 = vpop.f32.mrb[29].mxu0  ;;  %v2934_v43 = vpop.f32.mrb[29].mxu1  ;;  %v2933_v5 = vadd.f32 %v2932_v23, %v7242_v3  ;;  %v3299_v31 = vld [vmem:[#allocation8 + $0x10] sm:$0xff]  ;;  %v3300_v23 = vld [vmem:[#allocation8 + $0x18] sm:$0xff] }
 0x91a   :  { %v2864_v48 = vadd.f32 %v2863_v39, %v7240_v30  ;;  %v2935_v61 = vadd.f32 %v2934_v43, %v7540_v58  ;;  %v3302_v39 = vld [vmem:[#allocation8 + $0x28] sm:$0xff] }
 0x91b   :  { %v3467_v51 = vmul.f32 -1.442695, %v2862_v36  ;;  %v5089_v36 = vpack.c.bf16 %v3300_v23, %v3299_v31 }
 0x91c   :  { %v3468_v55 = vmul.f32 -1.442695, %v2864_v48  ;;  %v3469_v2 = vmul.f32 -1.442695, %v2935_v61  ;;  %v3303_v48 = vld [vmem:[#allocation8 + $0x30] sm:$0xff]  ;;  %v3305_v61 = vld [vmem:[#allocation8 + $0x40] sm:$0xff] }
 0x91d   :  { %5394 = vpow2.f32 %v3467_v51  ;;  %v3304_v51 = vld [vmem:[#allocation8 + $0x38] sm:$0xff] }
 0x91e   :  { %5396 = vpow2.f32 %v3468_v55  ;;  %v5095_v55 = vpack.c.bf16 %v3304_v51, %v3303_v48 }
 0x91f   :  { %5398 = vpow2.f32 %v3469_v2  ;;  %v3306_v2 = vld [vmem:[#allocation8 + $0x48] sm:$0xff] }
 0x920   :  { %5400 = vtanh.f32 %v2933_v5  ;;  %v5098_v5 = vpack.c.bf16 %v3306_v2, %v3305_v61 }
 0x927   :  { %v5395_v8 = vpop.eup %5394 }
 0x928   :  { %v5397_v11 = vpop.eup %5396  ;;  %v2940_v15 = vadd.f32 1.0, %v5395_v8  ;;  %v3307_v8 = vld [vmem:[#allocation8 + $0x50] sm:$0xff] }
 0x929   :  { %v2946_v18 = vadd.f32 1.0, %v5397_v11  ;;  %v5399_v21 = vpop.eup %5398  ;;  %v3308_v11 = vld [vmem:[#allocation8 + $0x58] sm:$0xff] }
 0x92a   :  { %5402 = vrcp.f32 %v2940_v15  ;;  %v5401_v24 = vpop.eup %5400  ;;  %v2953_v41 = vadd.f32 1.0, %v5399_v21  ;;  %v3309_v15 = vld [vmem:[#allocation8 + $0x60] sm:$0xff]  ;;  %v3310_v21 = vld [vmem:[#allocation8 + $0x68] sm:$0xff] }
 0x92b   :  { %5404 = vrcp.f32 %v2946_v18  ;;  %v5101_v18 = vpack.c.bf16 %v3308_v11, %v3307_v8 }
 0x92c   :  { %5406 = vrcp.f32 %v2953_v41 }
 0x934   :  { %v5403_v28 = vpop.eup %5402 }
 0x935   :  { %v5405_v33 = vpop.eup %5404  ;;  %v2957_v37 = vmul.f32 %v5403_v28, %v5401_v24  ;;  %v5104_v24 = vpack.c.bf16 %v3310_v21, %v3309_v15  ;;  %v3311_v28 = vld [vmem:[#allocation8 + $0x70] sm:$0xff] }
 0x936   :  { %v2956_v46 = vmul.f32 %v5405_v33, %v6776_v26  ;;  %v5407_v26 = vpop.eup %5406  ;;  %v3312_v33 = vld [vmem:[#allocation8 + $0x78] sm:$0xff] }
 0x938   :  { %v3027_v50 = vpop.f32.mrb[14].mxu0  ;;  %v3098_v54 = vpop.f32.mrb[14].mxu1  ;;  %v6888_v59 = vadd.f32 %v2957_v37, %v2956_v46  ;;  %v5107_v37 = vpack.c.bf16 %v3312_v33, %v3311_v28 }
 0x939   :  { %v5123_v6 = vadd.f32 %v3027_v50, %v7541_v1  ;;  %v3029_v10 = vpop.f32.mrb[15].mxu0  ;;  %v3100_v14 = vpop.f32.mrb[15].mxu1  ;;  %v5139_v57 = vadd.f32 %v3098_v54, %v6079_v42 }
 0x93a   :  { %v5124_v20 = vadd.f32 %v3029_v10, %v7183_v38  ;;  %5408 = vtanh.f32 %v6888_v59  ;;  %v5140_v45 = vadd.f32 %v3100_v14, %v7542_v40 }
 0x93b   :  { %v3470_v25 = vmul.f32 -1.442695, %v5123_v6 }
 0x93c   :  { %v3471_v32 = vmul.f32 -1.442695, %v5124_v20  ;;  %v3472_v49 = vmul.f32 -1.442695, %v5140_v45 }
 0x93d   :  { %5410 = vpow2.f32 %v3470_v25 }
 0x93e   :  { %5412 = vpow2.f32 %v3471_v32 }
 0x93f   :  { %5414 = vpow2.f32 %v3472_v49 }
 0x940   :  { %5416 = vtanh.f32 %v5139_v57 }
 0x944   :  { %v5409_v47 = vpop.eup %5408 }
 0x945   :  { %v2960_v7 = vmul.f32 %v5409_v47, %v5407_v26 }
 0x947   :  { %v5411_v9 = vpop.eup %5410  ;;  %3195 = vmatprep.mubr.f32.mxu0 %v2960_v7  ;;  %3266 = vmatprep.mubr.f32.mxu1 %v2960_v7 }
 0x948   :  { %v5413_v12 = vpop.eup %5412  ;;  %v3110_v19 = vadd.f32 1.0, %v5411_v9 }
 0x949   :  { %v3116_v38 = vadd.f32 1.0, %v5413_v12  ;;  %v5415_v0 = vpop.eup %5414 }
 0x94a   :  { %5418 = vrcp.f32 %v3110_v19  ;;  %v5417_v35 = vpop.eup %5416  ;;  %v3123_v44 = vadd.f32 1.0, %v5415_v0 }
 0x94b   :  { %5420 = vrcp.f32 %v3116_v38  ;;  %v3476_v38 = vld [vmem:[%s6924_s7] ss:$0 sm:$0xff] }
 0x94c   :  { %5422 = vrcp.f32 %v3123_v44 }
 0x954   :  { %v5419_v13 = vpop.eup %5418 }
 0x955   :  { %v5421_v27 = vpop.eup %5420  ;;  %v3127_v60 = vmul.f32 %v5419_v13, %v5417_v35 }
 0x956   :  { %v3126_v62 = vmul.f32 %v5421_v27, %v6784_v63  ;;  %v5423_v52 = vpop.eup %5422  ;;  %v3301_v63 = vld [vmem:[#allocation8 + $0x20] sm:$0xff] }
 0x957   :  { %v5092_v43 = vpack.c.bf16 %v3302_v39, %v3301_v63 }
 0x958   :  { %v3128_v42 = vadd.f32 %v3127_v60, %v3126_v62 }
 0x95a   :  { %5424 = vtanh.f32 %v3128_v42 }
 0x964   :  { %v5425_v4 = vpop.eup %5424 }
 0x965   :  { %v3130_v29 = vmul.f32 %v5425_v4, %v5423_v52 }
 0x967   :  { %3196 = vmatmul.mubr.f32.vlgmr.msra.gmra.mrb[30].mxu0 %v3130_v29  ;;  %3267 = vmatmul.mubr.f32.vlgmr.msra.gmra.mrb[30].mxu1 %v3130_v29 }
 0x968   :  { %5087 = vmatpush3.bf16.msra.mxu0 %v5086_v22  ;;  %3526 = vmatprep.mubr.msk.f32.mxu0 %vm5571_vm4, %v7122_v17 }
 0x969   :  { %5088 = vmatprep.subr.bf16.mxu0 %v5570_v53 }
 0x96c   :  { %5090 = vmatpush3.bf16.msra.mxu0 %v5089_v36 }
 0x96d   :  { %5091 = vmatprep.subr.bf16.mxu0 %v5570_v53 }
 0x970   :  { %5093 = vmatpush3.bf16.msra.mxu0 %v5092_v43 }
 0x971   :  { %5094 = vmatprep.subr.bf16.mxu0 %v5570_v53 }
 0x974   :  { %5096 = vmatpush3.bf16.msra.mxu0 %v5095_v55 }
 0x975   :  { %5097 = vmatprep.subr.bf16.mxu0 %v5570_v53 }
 0x978   :  { %5099 = vmatpush3.bf16.msra.mxu0 %v5098_v5 }
 0x979   :  { %5100 = vmatprep.subr.bf16.mxu0 %v5570_v53 }
 0x97c   :  { %5102 = vmatpush3.bf16.msra.mxu0 %v5101_v18 }
 0x97d   :  { %5103 = vmatprep.subr.bf16.mxu0 %v5570_v53 }
 0x980   :  { %5105 = vmatpush3.bf16.msra.mxu0 %v5104_v24 }
 0x981   :  { %5106 = vmatprep.subr.bf16.mxu0 %v5570_v53 }
 0x984   :  { %5108 = vmatpush3.bf16.msra.mxu0 %v5107_v37 }
 0xa3a   :  { %v3197_v41 = vpop.f32.mrb[30].mxu0  ;;  %v3268_v46 = vpop.f32.mrb[30].mxu1 }
 0xa3b   :  { %v3198_v50 = vadd.f32 %v3197_v41, %v7539_v56  ;;  %v3199_v54 = vpop.f32.mrb[31].mxu0  ;;  %v3270_v1 = vpop.f32.mrb[31].mxu1  ;;  %v3269_v25 = vadd.f32 %v3268_v46, %v7242_v3 }
 0xa3c   :  { %v3200_v6 = vadd.f32 %v3199_v54, %v7240_v30  ;;  %v3271_v17 = vadd.f32 %v3270_v1, %v7540_v58 }
 0xa3d   :  { %v3473_v10 = vmul.f32 -1.442695, %v3198_v50 }
 0xa3e   :  { %v3474_v14 = vmul.f32 -1.442695, %v3200_v6  ;;  %v3475_v20 = vmul.f32 -1.442695, %v3271_v17 }
 0xa3f   :  { %5426 = vpow2.f32 %v3473_v10 }
 0xa40   :  { %5428 = vpow2.f32 %v3474_v14 }
 0xa41   :  { %5430 = vpow2.f32 %v3475_v20 }
 0xa42   :  { %5432 = vtanh.f32 %v3269_v25 }
 0xa49   :  { %v5427_v32 = vpop.eup %5426 }
 0xa4a   :  { %v5429_v40 = vpop.eup %5428  ;;  %v3276_v45 = vadd.f32 1.0, %v5427_v32 }
 0xa4b   :  { %v3282_v26 = vadd.f32 1.0, %v5429_v40  ;;  %v5431_v56 = vpop.eup %5430 }
 0xa4c   :  { %5434 = vrcp.f32 %v3276_v45  ;;  %v5433_v47 = vpop.eup %5432  ;;  %v3289_v7 = vadd.f32 1.0, %v5431_v56 }
 0xa4d   :  { %5436 = vrcp.f32 %v3282_v26 }
 0xa4e   :  { %5438 = vrcp.f32 %v3289_v7 }
 0xa56   :  { %v5435_v30 = vpop.eup %5434 }
 0xa57   :  { %v5437_v49 = vpop.eup %5436  ;;  %v3293_v57 = vmul.f32 %v5435_v30, %v5433_v47 }
 0xa58   :  { %v3292_v9 = vmul.f32 %v5437_v49, %v6888_v59  ;;  %v5439_v3 = vpop.eup %5438 }
 0xa5a   :  { %v3294_v58 = vadd.f32 %v3293_v57, %v3292_v9 }
 0xa5c   :  { %5440 = vtanh.f32 %v3294_v58 }
 0xa66   :  { %v5441_v12 = vpop.eup %5440 }
 0xa67   :  { %v3296_v19 = vmul.f32 %v5441_v12, %v5439_v3 }
 0xa69   :  { %3527 = vmatmul.mubr.f32.vlgmr.msra.gmra.mrb[32].mxu0 %v3296_v19 }
 0xb3c   :  { %v3386_v0 = vpop.f32.mrb[32].mxu0 }
 0xb3d   :  { %v3387_v35 = vadd.f32 %v3476_v38, %v3386_v0  ;;  %v3528_v13 = vpop.f32.mrb[33].mxu0 }
 0xb3f   :  { %3390 = vst [vmem:[#allocation10] sm:$0xff] %v3387_v35 }
 0xb40   :  { %5541 = shalt.err (!%p5538_p8)
}
 0xb41   :  { %s5542_s18 = scalar_lea.hbm %s6925_s8, 128 }
 0xb42   :  { %p5543_p9 = scmp.ne.s32.totalorder %s6925_s8, %s5542_s18  ;;  %p5546_p10 = scmp.lt.u32.totalorder %s5542_s18, %s6925_s8 }
 0xb44   :  { %p5548_p11 = pnand %p5546_p10, %p5543_p9 }
 0xb46   :  { %5551 = shalt.err (!%p5548_p11)
}
 0xb47   :  { %3400 = dma.vmem_to_hbm [thread:$0]  %s3398_s3, 128, %s6925_s8, [#allocation4]  }
 0xb48   :  { %5558 = dma.done.wait [#allocation4], 128  }
 0xb49   :  { %5559 = vsyncadd [#allocation4], 4294967168 }
 0xb4a   :  { %3404 = vsyncpa [#allocation3], 1 }
 0xb4b   :  { %3405 = vsyncpa [#allocation6], 1 }
 0xb4c   :  { %3406 = vsyncpa [#allocation9], 1 }
 0xb4d   :  { %3407 = vsyncpa [#allocation4], 1 }

</bundles_post_ra>
